<compile_context>
chip_gen: v7x
topology: tpu7x:2x2x1
jax: 0.10.0
libtpu: 0.0.40
codegen_flags: <defaults>
</compile_context>

<pallas_src>
import functools

import jax
import jax.numpy as jnp
from jax.experimental import pallas as pl
from jax.experimental.pallas import tpu as pltpu


def _round_up(x, m):
    return (x + m - 1) // m * m


def _choose_tile_m(n, tile_m):
    """M tile: multiple of 128 (sublane/bf16-packing friendly), not absurdly
    larger than N, and giving >=2 grid blocks when N allows so the 'parallel'
    axis can shard across v7x's two TensorCores."""
    tile_m = max(128, _round_up(tile_m, 128))
    tile_m = min(tile_m, _round_up(n, 128))
    if n > 128 and pl.cdiv(n, tile_m) < 2:
        tile_m = _round_up(pl.cdiv(n, 2), 128)
    return tile_m


def siren_kernel(x_ref, w_ref, b_ref, o_ref, *, w0, is_last, compute_dtype):
    # Cast happens in VMEM (no extra HBM pass); MXU matmul, f32 accumulate.
    x = x_ref[...].astype(compute_dtype)
    y = jnp.dot(x, w_ref[...], preferred_element_type=jnp.float32)
    y = y + b_ref[...]                      # bias f32 (1, out_f), broadcast
    if not is_last:
        y = jnp.sin(w0 * y)                 # f32 epilogue (w0 = 30!)
    o_ref[...] = y.astype(o_ref.dtype)


def siren_layer(x, weight, bias, *, w0=30.0, is_last=False,
                tile_m=1024, use_bf16=True, out_dtype=None):
    """x: (N, in_f); weight: (out_f, in_f) PyTorch convention; bias: (out_f,)."""
    n, in_f = x.shape
    out_f, in_f_w = weight.shape
    assert in_f_w == in_f, "weight shape must be (out_f, in_f)"

    compute_dtype = jnp.bfloat16 if use_bf16 else jnp.float32
    if out_dtype is None:
        # bf16 between layers (next layer re-casts anyway); f32 for the last.
        out_dtype = jnp.float32 if is_last else compute_dtype

    tile_m = _choose_tile_m(n, tile_m)

    # Weight/bias prep (tiny arrays; transpose + cast once per call).
    w_t = weight.T.astype(compute_dtype)                 # (in_f, out_f)
    b_2d = bias.astype(jnp.float32).reshape(1, out_f)    # (1, out_f) f32

    # --- VMEM budgeting (generation-aware; v7x has only 64 MiB physical) ---
    bx = jnp.dtype(x.dtype).itemsize
    bw = jnp.dtype(compute_dtype).itemsize
    bo = jnp.dtype(out_dtype).itemsize

    def footprint(tm):
        # double-buffered x/out tiles + (conservatively) double-buffered w/b.
        return (2 * tm * in_f * bx + 2 * tm * out_f * bo
                + 2 * in_f * out_f * bw + 2 * out_f * 4)

    try:
        vmem_cap = int(getattr(pltpu.get_tpu_info(),
                               "vmem_capacity_bytes", 64 << 20))
    except Exception:  # conservative fallback (v7x)
        vmem_cap = 64 << 20
    budget = int(0.6 * vmem_cap)

    while tile_m > 256 and footprint(tile_m) > budget:
        tile_m = max(256, tile_m // 2)

    need = footprint(tile_m)
    vmem_limit = None
    if need > (16 << 20):
        vmem_limit = int(min(need + (8 << 20), budget))

    grid_m = pl.cdiv(n, tile_m)  # boundary block is partial; Pallas masks it

    kernel = functools.partial(siren_kernel, w0=float(w0), is_last=is_last,
                               compute_dtype=compute_dtype)

    return pl.pallas_call(
        kernel,
        out_shape=jax.ShapeDtypeStruct((n, out_f), out_dtype),
        grid_spec=pltpu.PrefetchScalarGridSpec(
            num_scalar_prefetch=0,
            grid=(grid_m,),
            in_specs=[
                # Last dims equal full array extents (legal), so no HBM padding.
                pl.BlockSpec((tile_m, in_f), lambda i: (i, 0)),   # x tile
                pl.BlockSpec((in_f, out_f), lambda i: (0, 0)),    # full weight
                pl.BlockSpec((1, out_f), lambda i: (0, 0)),       # bias
            ],
            out_specs=pl.BlockSpec((tile_m, out_f), lambda i: (i, 0)),
        ),
        compiler_params=pltpu.CompilerParams(
            dimension_semantics=("parallel",),
            vmem_limit_bytes=vmem_limit,
        ),
    )(x, w_t, b_2d)


def init_siren_params(key, in_f, out_f, *, w0=30.0, is_first=False):
    """Deterministic parameter init matching SirenLayer.init_weights."""
    kw, kb = jax.random.split(key)
    if is_first:
        bound = 1.0 / in_f
    else:
        bound = float(jnp.sqrt(6.0 / in_f)) / w0
    weight = jax.random.uniform(
        kw, (out_f, in_f), jnp.float32, minval=-bound, maxval=bound)
    # nn.Linear default bias init: U(-1/sqrt(in_f), 1/sqrt(in_f))
    bb = 1.0 / (in_f ** 0.5)
    bias = jax.random.uniform(kb, (out_f,), jnp.float32, minval=-bb, maxval=bb)
    return weight, bias


def _reference(x, weight, bias, *, w0, is_last, compute_dtype, out_dtype):
    # Reference matching the kernel's quantization: compute-dtype operands,
    # f32 math, cast on store.
    xq = x.astype(compute_dtype).astype(jnp.float32)
    wq = weight.astype(compute_dtype).astype(jnp.float32)
    y = xq @ wq.T + bias.astype(jnp.float32)
    if not is_last:
        y = jnp.sin(w0 * y)
    return y.astype(out_dtype)


if __name__ == "__main__":
    key = jax.random.PRNGKey(0)
    k_x, k_p1, k_p2 = jax.random.split(key, 3)

    # Small SIREN-like shapes: 300 2-D coordinates, hidden 64, 3 output
    # channels.  N=300 exercises the cdiv grid with a masked boundary block;
    # in_f=2 and out_f=3 exercise the unpadded narrow-dim path.
    N, in_f, hidden, out_c = 300, 2, 64, 3
    w0 = 30.0

    x = jax.random.uniform(k_x, (N, in_f), jnp.float32, minval=-1.0, maxval=1.0)

    # Layer 1: first layer (sin activation), bf16 intermediate output.
    w1, b1 = init_siren_params(k_p1, in_f, hidden, w0=w0, is_first=True)
    h = siren_layer(x, w1, b1, w0=w0, is_last=False)
    h = jax.block_until_ready(h)
    assert h.shape == (N, hidden) and h.dtype == jnp.bfloat16
    h_ref = _reference(x, w1, b1, w0=w0, is_last=False,
                       compute_dtype=jnp.bfloat16, out_dtype=jnp.bfloat16)
    assert jnp.allclose(h.astype(jnp.float32), h_ref.astype(jnp.float32),
                        atol=1e-2, rtol=1e-2), "layer-1 mismatch"

    # Layer 2: last layer (no activation), f32 output.
    w2, b2 = init_siren_params(k_p2, hidden, out_c, w0=w0, is_first=False)
    y = siren_layer(h, w2, b2, w0=w0, is_last=True)
    y = jax.block_until_ready(y)
    assert y.shape == (N, out_c) and y.dtype == jnp.float32
    y_ref = _reference(h, w2, b2, w0=w0, is_last=True,
                       compute_dtype=jnp.bfloat16, out_dtype=jnp.float32)
    assert jnp.allclose(y, y_ref, atol=2e-3, rtol=2e-3), "layer-2 mismatch"

    print("KERNEL_OK")
</pallas_src>

<mosaic_0001>
module attributes {stable_mosaic.version = 11 : i64} {
  func.func @siren_kernel(%arg0: i32, %arg1: memref<256x2xf32, #tpu.memory_space<vmem>>, %arg2: memref<2x64xbf16, #tpu.memory_space<vmem>>, %arg3: memref<1x64xf32, #tpu.memory_space<vmem>>, %arg4: memref<256x64xbf16, #tpu.memory_space<vmem>>) attributes {dimension_semantics = [#tpu.dimension_semantics<parallel>], iteration_bounds = array<i64: 2>, scalar_prefetch = 0 : i64, scratch_operands = 0 : i64, tpu.core_type = #tpu.core_type<tc>, window_params = [{transform_indices = @transform_0, window_bounds = array<i64: 256, 2>}, {pipeline_mode = #tpu.pipeline_mode<synchronous>, transform_indices = @transform_1, window_bounds = array<i64: 2, 64>}, {pipeline_mode = #tpu.pipeline_mode<synchronous>, transform_indices = @transform_2, window_bounds = array<i64: 1, 64>}, {transform_indices = @transform_3, window_bounds = array<i64: 256, 64>}]} {
    %c0 = arith.constant 0 : index
    %c0_0 = arith.constant 0 : index
    %0 = vector.load %arg1[%c0, %c0_0] : memref<256x2xf32, #tpu.memory_space<vmem>>, vector<256x2xf32>
    %1 = arith.truncf %0 : vector<256x2xf32> to vector<256x2xbf16>
    %c0_1 = arith.constant 0 : index
    %c0_2 = arith.constant 0 : index
    %2 = vector.load %arg2[%c0_1, %c0_2] : memref<2x64xbf16, #tpu.memory_space<vmem>>, vector<2x64xbf16>
    %cst = arith.constant dense<0.000000e+00> : vector<256x64xf32>
    %3 = tpu.matmul %1, %2, %cst {dimension_numbers = #tpu.dot_dimension_numbers<[1], [0], [0], [1], [0, 0, 1, 1], [], []>} : vector<256x2xbf16>, vector<2x64xbf16>, vector<256x64xf32> -> vector<256x64xf32>
    %c0_3 = arith.constant 0 : index
    %c0_4 = arith.constant 0 : index
    %4 = vector.load %arg3[%c0_3, %c0_4] : memref<1x64xf32, #tpu.memory_space<vmem>>, vector<1x64xf32>
    %5 = vector.broadcast %4 : vector<1x64xf32> to vector<256x64xf32>
    %6 = arith.addf %3, %5 : vector<256x64xf32>
    %cst_5 = arith.constant 3.000000e+01 : f32
    %7 = vector.broadcast %cst_5 : f32 to vector<256x64xf32>
    %8 = arith.mulf %7, %6 : vector<256x64xf32>
    %9 = math.sin %8 : vector<256x64xf32>
    %10 = arith.truncf %9 : vector<256x64xf32> to vector<256x64xbf16>
    %c0_6 = arith.constant 0 : index
    %c0_7 = arith.constant 0 : index
    %11 = vector.load %arg4[%c0_6, %c0_7] : memref<256x64xbf16, #tpu.memory_space<vmem>>, vector<256x64xbf16>
    tpu.vector_store %arg4[%c0_6, %c0_7], %10 {strides = array<i32>} : memref<256x64xbf16, #tpu.memory_space<vmem>>, vector<256x64xbf16>,
    return
  }
  func.func @transform_0(%arg0: i32) -> (i32, i32) {
    %c0_i32 = arith.constant 0 : i32
    %c0_i32_0 = arith.constant 0 : i32
    return %arg0, %c0_i32 : i32, i32
  }
  func.func @transform_1(%arg0: i32) -> (i32, i32) {
    %c0_i32 = arith.constant 0 : i32
    %c0_i32_0 = arith.constant 0 : i32
    %c0_i32_1 = arith.constant 0 : i32
    return %c0_i32, %c0_i32_0 : i32, i32
  }
  func.func @transform_2(%arg0: i32) -> (i32, i32) {
    %c0_i32 = arith.constant 0 : i32
    %c0_i32_0 = arith.constant 0 : i32
    %c0_i32_1 = arith.constant 0 : i32
    return %c0_i32, %c0_i32_0 : i32, i32
  }
  func.func @transform_3(%arg0: i32) -> (i32, i32) {
    %c0_i32 = arith.constant 0 : i32
    %c0_i32_0 = arith.constant 0 : i32
    return %arg0, %c0_i32 : i32, i32
  }
}

</mosaic_0001>

<bundles_post_ra>
// kernel: tpu_custom_call.1
= control target key start
LH: loop header
LB: loop body
LE: loop exit
PB: predicated region body
PF: predicated region fallthrough
CT: control target
= control target key end

     0   :  { %s5077_s12 = smov 0   ;;  %s5079_s13 = smov 0   ;;  %s9232_s0 = inlined_call_operand.vmem [shape: f32[300,2], index: 0, kind: input, shape index: {}]   ;;  %s9233_s1 = inlined_call_operand.vmem [shape: bf16[2,64], index: 1, kind: input, shape index: {}]   ;;  %s9234_s2 = inlined_call_operand.vmem [shape: f32[1,64], index: 2, kind: input, shape index: {}]   ;;  %s9235_s3 = inlined_call_operand.vmem [shape: bf16[300,64], index: 3, kind: output, shape index: {}]  }
   0x1   :  { %s5081_s14 = smov 0  }
   0x2 LB: > { %s5090_s15 = sadd.s32 4294967295, %s5017_s14   ;;  %s5092_s16 = sadd.s32 1, %s5017_s14   ;;  %s5017_s14 = sphi %s5081_s14, %s9561_s14   ;;  %s5013_s13 = sphi %s5079_s13, %s9560_s13   ;;  %s5009_s12 = sphi %s5077_s12, %s9559_s12  }
   0x3   : > { %s85_s17 = ssub.s32 %s5017_s14, %s5092_s16  ;;  %s88_s18 = sadd.s32 1, %s5013_s13 }
   0x4   : > { %p86_p0 = scmp.eq.s32.totalorder %s85_s17, 0  ;;  %p98_p1 = scmp.ne.s32.totalorder %s5013_s13, %s5009_s12 }
   0x5   : > { %p99_p2 = scmp.eq.s32.totalorder %s5090_s15, 1  ;;  %p4325_p3 = scmp.ge.s32.totalorder %s5017_s14, 1 }
   0x6   : > { %s5100_s19 = scalar_select %p86_p0, %s5013_s13, %s88_s18  }
   0x7   : > { %p5102_p4 = por %p99_p2, %p98_p1  ;;  %p146_p5 = scmp.lt.s32.totalorder %s5017_s14, 3 }
   0x9   : > { %p147_p6 = pnand %p4325_p3, %p146_p5 }
   0xb   : > { %150 = sbr.rel (%p147_p6) target bundleno = 1174 (0x496), region = 32 }
  0x12   : > { %s5107_s21 = sshll.u32 %s5090_s15, 5  ;;  %v241_v0 = vld [vmem:[%s9233_s1] sm:$0x1]  ;;  %vm298_vm0 = vcmask 1040384   ;;  %vm249_vm1 = vcmask 15360   ;;  %s170_s4 = sand.u32 1, %s5009_s12  }
  0x13   : > { %p178_p7 = scmp.lt.s32.totalorder %s5107_s21, 37  ;;  %v300_v1 = vsel %vm298_vm0, %v241_v0, 0  ;;  %4611 = vmatprep.subr.msk.bf16.mxu0 %vm298_vm0, %v241_v0  ;;  %4612 = vmatprep.subr.msk.bf16.mxu1 %vm298_vm0, %v241_v0  ;;  %v5170_v50 = vld [vmem:[%s9234_s2] ss:$0 sm:$0xff]  ;;  %s4326_s5 = sshll.u32 %s170_s4, 7 }
  0x14   : > { %4576 = vmatpush3.bf16.msra.mxu0 %v300_v1  ;;  %4610 = vmatpush3.bf16.msra.mxu1 %v300_v1  ;;  %s8979_s6 = scalar_lea.vmem [#allocation2], %s4326_s5   ;;  %s3992_s7 = ssub.s32 (%p5102_p4), 38, %s5107_s21 }
  0x15   : > { %s179_s24 = scalar_select %p178_p7, %s5107_s21, 37 }
  0x16   : > { %s4555_s8 = sshll.u32 (%p5102_p4), %s5090_s15, 7  ;;  %p3993_p8 = scmp.lt.s32.totalorder (%p5102_p4), %s3992_s7, 32 }
  0x17   : > { %s4328_s25 = sshll.u32 %s179_s24, 3  ;;  %s9104_s11 = scalar_lea.vmem (%p5102_p4), %s9235_s3, %s4555_s8  }
  0x18   : > { %s5117_s28 = scalar_lea.vmem %s9232_s0, %s4328_s25 }
  0x19   : > { %v193_v2 = vld [vmem:[%s5117_s28] sm:$0xff]  ;;  %v194_v3 = vld [vmem:[%s5117_s28 + $0x8] sm:$0xff]  ;;  %v195_v4 = vld [vmem:[%s5117_s28 + $0x10] sm:$0xff] }
  0x1a   : > { %v196_v5 = vld [vmem:[%s5117_s28 + $0x18] sm:$0xff]  ;;  %v197_v6 = vld [vmem:[%s5117_s28 + $0x20] sm:$0xff]  ;;  %v198_v7 = vld [vmem:[%s5117_s28 + $0x28] sm:$0xff]  ;;  %v225_v8 = vpack.c.bf16 %v194_v3, %v193_v2 }
  0x1b   : > { %v226_v9 = vpack.c.bf16 %v196_v5, %v195_v4  ;;  %v227_v10 = vpack.c.bf16 %v198_v7, %v197_v6  ;;  %v199_v11 = vld [vmem:[%s5117_s28 + $0x30] sm:$0xff]  ;;  %v200_v12 = vld [vmem:[%s5117_s28 + $0x38] sm:$0xff]  ;;  %v201_v13 = vld [vmem:[%s5117_s28 + $0x40] sm:$0xff] }
  0x1c   : > { %4577 = vmatprep.mubr.msk.bf16.mxu0 %vm249_vm1, %v225_v8  ;;  %v202_v14 = vld [vmem:[%s5117_s28 + $0x48] sm:$0xff]  ;;  %v209_v15 = vld [vmem:[%s5117_s28 + $0x80] sm:$0xff]  ;;  %v211_v17 = vld [vmem:[%s5117_s28 + $0x90] sm:$0xff]  ;;  %v228_v23 = vpack.c.bf16 %v200_v12, %v199_v11 }
  0x1d   : > { %4578 = vmatmul.mubr.msk.bf16.vlgmr.msra.gmra.mrb[0].mxu0 %vm249_vm1, %v226_v9  ;;  %v210_v16 = vld [vmem:[%s5117_s28 + $0x88] sm:$0xff]  ;;  %v212_v18 = vld [vmem:[%s5117_s28 + $0x98] sm:$0xff]  ;;  %v213_v19 = vld [vmem:[%s5117_s28 + $0xa0] sm:$0xff]  ;;  %v229_v25 = vpack.c.bf16 %v202_v14, %v201_v13 }
  0x1e   : > { %4581 = vmatprep.mubr.msk.bf16.mxu0 %vm249_vm1, %v227_v10  ;;  %v233_v20 = vpack.c.bf16 %v210_v16, %v209_v15  ;;  %v214_v21 = vld [vmem:[%s5117_s28 + $0xa8] sm:$0xff]  ;;  %v234_v22 = vpack.c.bf16 %v212_v18, %v211_v17  ;;  %v215_v26 = vld [vmem:[%s5117_s28 + $0xb0] sm:$0xff]  ;;  %v216_v27 = vld [vmem:[%s5117_s28 + $0xb8] sm:$0xff] }
  0x1f   : > { %v235_v24 = vpack.c.bf16 %v214_v21, %v213_v19  ;;  %v217_v28 = vld [vmem:[%s5117_s28 + $0xc0] sm:$0xff]  ;;  %v218_v29 = vld [vmem:[%s5117_s28 + $0xc8] sm:$0xff]  ;;  %v203_v30 = vld [vmem:[%s5117_s28 + $0x50] sm:$0xff]  ;;  %v236_v32 = vpack.c.bf16 %v216_v27, %v215_v26 }
  0x20   : > { %4593 = vmatprep.mubr.msk.bf16.mxu1 %vm249_vm1, %v233_v20  ;;  %v204_v31 = vld [vmem:[%s5117_s28 + $0x58] sm:$0xff]  ;;  %v205_v33 = vld [vmem:[%s5117_s28 + $0x60] sm:$0xff]  ;;  %v206_v34 = vld [vmem:[%s5117_s28 + $0x68] sm:$0xff]  ;;  %v237_v35 = vpack.c.bf16 %v218_v29, %v217_v28 }
  0x21   : > { %4594 = vmatmul.mubr.msk.bf16.vlgmr.msra.gmra.mrb[0].mxu1 %vm249_vm1, %v234_v22  ;;  %v230_v36 = vpack.c.bf16 %v204_v31, %v203_v30  ;;  %v231_v37 = vpack.c.bf16 %v206_v34, %v205_v33  ;;  %v219_v38 = vld [vmem:[%s5117_s28 + $0xd0] sm:$0xff]  ;;  %v220_v39 = vld [vmem:[%s5117_s28 + $0xd8] sm:$0xff]  ;;  %v221_v40 = vld [vmem:[%s5117_s28 + $0xe0] sm:$0xff] }
  0x22   : > { %4597 = vmatprep.mubr.msk.bf16.mxu1 %vm249_vm1, %v235_v24  ;;  %v222_v41 = vld [vmem:[%s5117_s28 + $0xe8] sm:$0xff]  ;;  %v207_v42 = vld [vmem:[%s5117_s28 + $0x70] sm:$0xff]  ;;  %v208_v43 = vld [vmem:[%s5117_s28 + $0x78] sm:$0xff]  ;;  %v238_v44 = vpack.c.bf16 %v220_v39, %v219_v38  ;;  %v9239_v39 = vmov 2102212464  }
  0x23   : > { %v239_v45 = vpack.c.bf16 %v222_v41, %v221_v40  ;;  %v232_v46 = vpack.c.bf16 %v208_v43, %v207_v42  ;;  %v223_v47 = vld [vmem:[%s5117_s28 + $0xf0] sm:$0xff]  ;;  %v224_v48 = vld [vmem:[%s5117_s28 + $0xf8] sm:$0xff]  ;;  %v9260_v41 = vmov 2475754826   ;;  %v9252_v43 = vmov 2131351028  }
  0x24   : > { %v240_v49 = vpack.c.bf16 %v224_v48, %v223_v47 }
  0x25   : > { %4582 = vmatmul.mubr.msk.bf16.gmra.mrb[4].mxu0 %vm249_vm1, %v228_v23 }
  0x26   : > { %4585 = vmatprep.mubr.msk.bf16.mxu0 %vm249_vm1, %v229_v25 }
  0x29   : > { %4598 = vmatmul.mubr.msk.bf16.gmra.mrb[4].mxu1 %vm249_vm1, %v236_v32  ;;  %v9241_v32 = vmov 920167782  }
  0x2a   : > { %4601 = vmatprep.mubr.msk.bf16.mxu1 %vm249_vm1, %v237_v35  ;;  %v9237_v35 = vmov 1326507024  }
  0x2d   : > { %4586 = vmatmul.mubr.msk.bf16.gmra.mrb[8].mxu0 %vm249_vm1, %v230_v36 }
  0x2e   : > { %4589 = vmatprep.mubr.msk.bf16.mxu0 %vm249_vm1, %v231_v37 }
  0x31   : > { %4602 = vmatmul.mubr.msk.bf16.gmra.mrb[8].mxu1 %vm249_vm1, %v238_v44 }
  0x32   : > { %4605 = vmatprep.mubr.msk.bf16.mxu1 %vm249_vm1, %v239_v45 }
  0x35   : > { %4590 = vmatmul.mubr.msk.bf16.gmra.mrb[12].mxu0 %vm249_vm1, %v232_v46 }
  0x39   : > { %4606 = vmatmul.mubr.msk.bf16.gmra.mrb[12].mxu1 %vm249_vm1, %v240_v49  ;;  %v9258_v49 = vmov 683565275  }
  0xf0   : > { %v5172_v51 = vpop.f32.mrb[0].mxu0 }
  0xf1   : > { %v336_v52 = vpop.f32.mrb[1].mxu0 }
  0xf2   : > { %v337_v53 = vadd.f32 %v5170_v50, %v336_v52  ;;  %v5175_v54 = vpop.f32.mrb[2].mxu0 }
  0xf3   : > { %v339_v55 = vpop.f32.mrb[3].mxu0 }
  0xf4   : > { %v5177_v56 = vmul.f32 30.0, %v337_v53  ;;  %v5179_v57 = vpop.f32.mrb[0].mxu1  ;;  %v340_v10 = vadd.f32 %v5170_v50, %v339_v55 }
  0xf5   : > { %v5181_v58 = vpop.f32.mrb[1].mxu1 }
  0xf6   : > { %v5183_v59 = vpop.f32.mrb[2].mxu1  ;;  %v498_v60 = vand.u32 2139095040, %v5177_v56  ;;  %v5215_v15 = vmul.f32 30.0, %v340_v10  ;;  %v9236_v37 = vand.u32 2147483647, %v5177_v56 }
  0xf7   : > { %v5186_v61 = vpop.f32.mrb[3].mxu1 }
  0xf8   : > { %v5188_v62 = vpop.f32.mrb[4].mxu0  ;;  %v499_v0 = vshrl.u32 %v498_v60, 23  ;;  %9326 = vst [vmem:[#allocation3_spill] sm:$0xff] %v5215_v15  ;;  %v602_v23 = vand.u32 2139095040, %v5215_v15 }
  0xf9   : > { %v5190_v63 = vpop.f32.mrb[5].mxu0 }
  0xfa   : > { %v5192_v1 = vpop.f32.mrb[6].mxu0  ;;  %v4346_v3 = vadd.s32 4294967169, %v499_v0  ;;  %v603_v28 = vshrl.u32 %v602_v23, 23  ;;  %v345_v0 = vadd.f32 %v5172_v51, %v5170_v50 }
  0xfb   : > { %v5194_v2 = vpop.f32.mrb[7].mxu0 }
  0xfc   : > { %v5196_v4 = vpop.f32.mrb[4].mxu1  ;;  %v505_v7 = vadd.s32 1, %v4346_v3  ;;  %v4350_v34 = vadd.s32 4294967169, %v603_v28  ;;  %v502_v3 = vand.u32 8388607, %v9236_v37 }
  0xfd   : > { %v5198_v5 = vpop.f32.mrb[5].mxu1 }
  0xfe   : > { %v5200_v6 = vpop.f32.mrb[6].mxu1  ;;  %vm506_vm2 = vcmp.gt.s32.totalorder %v505_v7, 0  ;;  %v609_v48 = vadd.s32 1, %v4350_v34  ;;  %v503_v51 = vor.u32 8388608, %v502_v3 }
  0xff   : > { %v5202_v8 = vpop.f32.mrb[7].mxu1  ;;  %v507_v17 = vsel %vm506_vm2, %v505_v7, 0 }
 0x100   : > { %v5204_v9 = vpop.f32.mrb[8].mxu0  ;;  %v509_v22 = vand.u32 31, %v507_v17  ;;  %v5243_v38 = vshrl.u32 %v507_v17, 5  ;;  %vm610_vm4 = vcmp.gt.s32.totalorder %v609_v48, 0 }
 0x101   : > { %v5207_v11 = vpop.f32.mrb[9].mxu0 }
 0x102   : > { %v5209_v12 = vpop.f32.mrb[10].mxu0  ;;  %v510_v27 = vsub.s32 32, %v509_v22  ;;  %v521_v40 = vshll.u32 %v9239_v39, %v509_v22  ;;  %v524_v46 = vshll.u32 %v9241_v32, %v509_v22  ;;  %v512_v52 = vshll.u32 %v9258_v49, %v509_v22 }
 0x103   : > { %v5211_v13 = vpop.f32.mrb[11].mxu0  ;;  %v515_v53 = vshll.u32 %v9260_v41, %v509_v22  ;;  %v518_v55 = vshll.u32 %v9252_v43, %v509_v22  ;;  %vm530_vm3 = vcmp.lt.s32.totalorder %v5243_v38, 4  ;;  %v5262_v22 = vmul.f32 30.0, %v345_v0 }
 0x104   : > { %v5213_v14 = vpop.f32.mrb[8].mxu1  ;;  %v522_v33 = vshrl.u32 %v9241_v32, %v510_v27  ;;  %v525_v36 = vshrl.u32 %v9237_v35, %v510_v27  ;;  %v513_v42 = vshrl.u32 %v9260_v41, %v510_v27  ;;  %v516_v44 = vshrl.u32 %v9252_v43, %v510_v27 }
 0x105   : > { %v5217_v16 = vpop.f32.mrb[9].mxu1  ;;  %v519_v45 = vshrl.u32 %v9239_v39, %v510_v27  ;;  %9331 = vst [vmem:[#allocation8_spill] sm:$0xff] %v5262_v22  ;;  %vm527_vm5 = vcmp.lt.s32.totalorder %v5243_v38, 1  ;;  %vm529_vm6 = vcmp.lt.s32.totalorder %v5243_v38, 3  ;;  %vm528_vm7 = vcmp.lt.s32.totalorder %v5243_v38, 2 }
 0x106   : > { %v5219_v18 = vpop.f32.mrb[10].mxu1  ;;  %v523_v47 = vor.u32 %v522_v33, %v521_v40  ;;  %v526_v60 = vor.u32 %v525_v36, %v524_v46  ;;  %v514_v7 = vor.u32 %v513_v42, %v512_v52  ;;  %v517_v10 = vor.u32 %v516_v44, %v515_v53 }
 0x107   : > { %v5221_v19 = vpop.f32.mrb[11].mxu1  ;;  %v520_v17 = vor.u32 %v519_v45, %v518_v55  ;;  %v611_v36 = vsel %vm610_vm4, %v609_v48, 0  ;;  %v706_v46 = vand.u32 2139095040, %v5262_v22  ;;  %v543_v53 = vshll.u32 %v503_v51, 8 }
 0x108   : > { %v5223_v20 = vpop.f32.mrb[12].mxu0  ;;  %v536_v23 = vsel %vm530_vm3, %v523_v47, 920167782  ;;  %v540_v28 = vsel %vm530_vm3, %v526_v60, 1326507024  ;;  %v535_v33 = vsel %vm527_vm5, %v514_v7, %v517_v10  ;;  %v613_v45 = vand.u32 31, %v611_v36 }
 0x109   : > { %v5225_v21 = vpop.f32.mrb[13].mxu0  ;;  %v537_v34 = vsel %vm529_vm6, %v520_v17, %v536_v23  ;;  %v539_v40 = vsel %vm527_vm5, %v517_v10, %v520_v17  ;;  %v541_v42 = vsel %vm529_vm6, %v523_v47, %v540_v28  ;;  %v707_v3 = vshrl.u32 %v706_v46, 23 }
 0x10a   : > { %v5228_v24 = vpop.f32.mrb[14].mxu0  ;;  %v538_v44 = vsel %vm528_vm7, %v535_v33, %v537_v34  ;;  %v542_v52 = vsel %vm528_vm7, %v539_v40, %v541_v42  ;;  %v5287_v47 = vsub.s32 32, %v613_v45  ;;  %v348_v23 = vadd.f32 %v5175_v54, %v5170_v50 }
 0x10b   : > { %v5230_v25 = vpop.f32.mrb[15].mxu0  ;;  %v5280_v55 = vmul.u32.u64.low %v543_v53, %v538_v44  ;;  %v5281_v48 = vmul.u32.u64.high %v543_v53, %v538_v44, %v5280_v55  ;;  %v5284_v60 = vmul.u32.u64.low %v543_v53, %v542_v52  ;;  %v5285_v0 = vmul.u32.u64.high %v543_v53, %v542_v52, %v5284_v60 }
 0x10c   : > { %v5232_v26 = vpop.f32.mrb[12].mxu1  ;;  %v532_v28 = vsel %vm530_vm3, %v520_v17, 2102212464  ;;  %v511_v33 = vshrl.u32 %v9258_v49, %v510_v27  ;;  %v626_v51 = vshrl.u32 %v9241_v32, %v5287_v47  ;;  %v4354_v34 = vadd.s32 4294967169, %v707_v3 }
 0x10d   : > { %9327 = vst [vmem:[#allocation4_spill] sm:$0xff] %v5232_v26  ;;  %v5234_v29 = vpop.f32.mrb[13].mxu1  ;;  %v5296_v40 = vmul.f32 30.0, %v348_v23  ;;  %v629_v44 = vshrl.u32 %v9237_v35, %v5287_v47  ;;  %v533_v54 = vsel %vm529_vm6, %v517_v10, %v532_v28  ;;  %v5305_v17 = vshrl.u32 %v611_v36, 5 }
 0x10e   : > { %9328 = vst [vmem:[#allocation5_spill] sm:$0xff] %v5234_v29  ;;  %v5236_v30 = vpop.f32.mrb[14].mxu1  ;;  %v531_v46 = vsel %vm527_vm5, %v511_v33, %v514_v7  ;;  %v625_v27 = vshll.u32 %v9239_v39, %v613_v45  ;;  %v617_v52 = vshrl.u32 %v9260_v41, %v5287_v47  ;;  %v620_v60 = vshrl.u32 %v9252_v43, %v5287_v47 }
 0x10f   : > { %9329 = vst [vmem:[#allocation6_spill] sm:$0xff] %v5236_v30  ;;  %v5238_v31 = vpop.f32.mrb[15].mxu1  ;;  %9332 = vst [vmem:[#allocation9_spill] sm:$0xff] %v5296_v40  ;;  %v623_v3 = vshrl.u32 %v9239_v39, %v5287_v47  ;;  %v628_v23 = vshll.u32 %v9241_v32, %v613_v45  ;;  %vm552_vm8 = vc.u32 %v5285_v0, %v5280_v55  ;;  %v553_v7 = vadd.s32 1, %v5281_v48 }
 0x110   : > { %9330 = vst [vmem:[#allocation7_spill] sm:$0xff] %v5238_v31  ;;  %v627_v10 = vor.u32 %v626_v51, %v625_v27  ;;  %v713_v36 = vadd.s32 1, %v4354_v34  ;;  %v616_v28 = vshll.u32 %v9258_v49, %v613_v45  ;;  %v619_v33 = vshll.u32 %v9260_v41, %v613_v45 }
 0x111   : > { %v622_v37 = vshll.u32 %v9252_v43, %v613_v45  ;;  %v630_v35 = vor.u32 %v629_v44, %v628_v23  ;;  %v534_v42 = vsel %vm528_vm7, %v531_v46, %v533_v54  ;;  %v9333_v39 = vand.u32 2147483647, %v5215_v15 }
 0x112   : > { %v618_v31 = vor.u32 %v617_v52, %v616_v28  ;;  %v621_v30 = vor.u32 %v620_v60, %v619_v33  ;;  %vm634_vm9 = vcmp.lt.s32.totalorder %v5305_v17, 4  ;;  %v554_v51 = vsel %vm552_vm8, %v553_v7, %v5281_v48 }
 0x113   : > { %v606_v32 = vand.u32 8388607, %v9333_v39  ;;  %v624_v29 = vor.u32 %v623_v3, %v622_v37  ;;  %v640_v34 = vsel %vm634_vm9, %v627_v10, 920167782  ;;  %v550_v27 = vmul.u32 %v543_v53, %v534_v42 }
 0x114   : > { %v644_v45 = vsel %vm634_vm9, %v630_v35, 1326507024  ;;  %vm714_vm10 = vcmp.gt.s32.totalorder %v713_v36, 0  ;;  %v810_v38 = vand.u32 2139095040, %v5296_v40  ;;  %vm631_vm11 = vcmp.lt.s32.totalorder %v5305_v17, 1 }
 0x115   : > { %vm633_vm12 = vcmp.lt.s32.totalorder %v5305_v17, 3  ;;  %v555_v39 = vadd.s32 %v554_v51, %v550_v27  ;;  %v607_v37 = vor.u32 8388608, %v606_v32  ;;  %v639_v44 = vsel %vm631_vm11, %v618_v31, %v621_v30 }
 0x116   : > { %v641_v48 = vsel %vm633_vm12, %v624_v29, %v640_v34  ;;  %v643_v53 = vsel %vm631_vm11, %v621_v30, %v624_v29  ;;  %v645_v35 = vsel %vm633_vm12, %v627_v10, %v644_v45  ;;  %v715_v42 = vsel %vm714_vm10, %v713_v36, 0 }
 0x117   : > { %vm632_vm13 = vcmp.lt.s32.totalorder %v5305_v17, 2  ;;  %v811_v46 = vshrl.u32 %v810_v38, 23  ;;  %v556_v32 = vadd.s32 536870912, %v555_v39  ;;  %v647_v60 = vshll.u32 %v607_v37, 8 }
 0x118   : > { %v642_v54 = vsel %vm632_vm13, %v639_v44, %v641_v48  ;;  %v646_v52 = vsel %vm632_vm13, %v643_v53, %v645_v35  ;;  %v717_v3 = vand.u32 31, %v715_v42  ;;  %v409_v23 = vadd.f32 %v5179_v57, %v5170_v50 }
 0x119   : > { %v5349_v7 = vmul.u32.u64.low %v647_v60, %v642_v54  ;;  %v5350_v28 = vmul.u32.u64.high %v647_v60, %v642_v54, %v5349_v7  ;;  %v4358_v10 = vadd.s32 4294967169, %v811_v46  ;;  %v401_v36 = vadd.f32 %v5170_v50, %v5181_v58 }
 0x11a   : > { %v5355_v33 = vmul.u32.u64.low %v647_v60, %v646_v52  ;;  %v5356_v51 = vmul.u32.u64.high %v647_v60, %v646_v52, %v5355_v33  ;;  %v412_v34 = vadd.f32 %v5183_v59, %v5170_v50  ;;  %v5360_v27 = vshrl.u32 %v556_v32, 30 }
 0x11b   : > { %9334 = vst [vmem:[#allocation10_spill] sm:$0xff] %v5349_v7  ;;  %v5362_v45 = vsub.s32 32, %v717_v3  ;;  %v361_v57 = vadd.f32 %v5188_v62, %v5170_v50  ;;  %v5366_v38 = vmul.f32 30.0, %v409_v23  ;;  %v636_v37 = vsel %vm634_vm9, %v624_v29, 2102212464 }
 0x11c   : > { %9335 = vst [vmem:[#allocation11_spill] sm:$0xff] %v5356_v51  ;;  %v817_v44 = vadd.s32 1, %v4358_v10  ;;  %v404_v48 = vadd.f32 %v5170_v50, %v5186_v61  ;;  %v353_v59 = vadd.f32 %v5170_v50, %v5190_v63  ;;  %v5375_v53 = vmul.f32 30.0, %v401_v36 }
 0x11d   : > { %9336 = vst [vmem:[#allocation12_spill] sm:$0xff] %v5366_v38  ;;  %v615_v35 = vshrl.u32 %v9258_v49, %v5287_v47  ;;  %v364_v62 = vadd.f32 %v5192_v1, %v5170_v50  ;;  %v5381_v46 = vmul.f32 30.0, %v412_v34  ;;  %v558_v29 = vshll.u32 %v5360_v27, 30 }
 0x11e   : > { %9337 = vst [vmem:[#allocation13_spill] sm:$0xff] %v5375_v53  ;;  %v9339_v54 = vmov 920167782   ;;  %v5386_v52 = vmul.f32 30.0, %v361_v57  ;;  %v637_v63 = vsel %vm633_vm12, %v621_v30, %v636_v37  ;;  %v5392_v23 = vshrl.u32 %v715_v42, 5 }
 0x11f   : > { %9338 = vst [vmem:[#allocation14_spill] sm:$0xff] %v5381_v46  ;;  %v730_v32 = vshrl.u32 %v9339_v54, %v5362_v45  ;;  %v635_v61 = vsel %vm631_vm11, %v615_v35, %v618_v31  ;;  %v657_v47 = vadd.s32 1, %v5350_v28  ;;  %v721_v1 = vshrl.u32 %v9260_v41, %v5362_v45 }
 0x120   : > { %9340 = vst [vmem:[#allocation15_spill] sm:$0xff] %v5386_v52  ;;  %v9341_v10 = vmov 2102212464   ;;  %vm818_vm14 = vcmp.gt.s32.totalorder %v817_v44, 0  ;;  %vm656_vm15 = vc.u32 %v5356_v51, %v5349_v7  ;;  %v724_v33 = vshrl.u32 %v9252_v43, %v5362_v45 }
 0x121   : > { %v729_v36 = vshll.u32 %v9341_v10, %v717_v3  ;;  %v727_v31 = vshrl.u32 %v9341_v10, %v5362_v45  ;;  %v9342_v30 = vmov 1326507024   ;;  %v5406_v34 = vsub.s32 %v555_v39, %v558_v29 }
 0x122   : > { %v733_v42 = vshrl.u32 %v9342_v30, %v5362_v45  ;;  %v638_v57 = vsel %vm632_vm13, %v635_v61, %v637_v63  ;;  %v720_v37 = vshll.u32 %v9258_v49, %v717_v3  ;;  %v723_v58 = vshll.u32 %v9260_v41, %v717_v3 }
 0x123   : > { %v731_v35 = vor.u32 %v730_v32, %v729_v36  ;;  %v726_v46 = vshll.u32 %v9252_v43, %v717_v3  ;;  %v732_v38 = vshll.u32 %v9339_v54, %v717_v3  ;;  %v819_v53 = vsel %vm818_vm14, %v817_v44, 0 }
 0x124   : > { %v5414_v15 = vmul.f32 30.0, %v353_v59  ;;  %v658_v7 = vsel %vm656_vm15, %v657_v47, %v5350_v28  ;;  %v9343_v39 = vand.u32 2147483647, %v5262_v22  ;;  %v5419_v51 = vor.u32 %v721_v1, %v720_v37 }
 0x125   : > { %v5421_v17 = vor.u32 %v724_v33, %v723_v58  ;;  %v728_v61 = vor.u32 %v727_v31, %v726_v46  ;;  %v734_v32 = vor.u32 %v733_v42, %v732_v38  ;;  %vm738_vm0 = vcmp.lt.s32.totalorder %v5392_v23, 4 }
 0x126   : > { %v710_v29 = vand.u32 8388607, %v9343_v39  ;;  %v356_v63 = vadd.f32 %v5170_v50, %v5194_v2  ;;  %v654_v3 = vmul.u32 %v647_v60, %v638_v57  ;;  %v744_v44 = vsel %vm738_vm0, %v731_v35, 920167782 }
 0x127   : > { %v821_v59 = vand.u32 31, %v819_v53  ;;  %v417_v28 = vadd.f32 %v5170_v50, %v5198_v5  ;;  %v425_v47 = vadd.f32 %v5196_v4, %v5170_v50  ;;  %v5432_v58 = vmul.f32 30.0, %v404_v48 }
 0x128   : > { %v561_v38 = vsub.s32 0, %v5406_v34  ;;  %v5435_v46 = vadd.s32 %v658_v7, %v654_v3  ;;  %v711_v1 = vor.u32 8388608, %v710_v29  ;;  %vm735_vm1 = vcmp.lt.s32.totalorder %v5392_v23, 1 }
 0x129   : > { %9344 = vst [vmem:[#allocation16_spill] sm:$0xff] %v5432_v58  ;;  %vm737_vm2 = vcmp.lt.s32.totalorder %v5392_v23, 3  ;;  %v743_v2 = vsel %vm735_vm1, %v5419_v51, %v5421_v17  ;;  %v748_v4 = vsel %vm738_vm0, %v734_v32, 1326507024  ;;  %v914_v60 = vand.u32 2139095040, %v5414_v15 }
 0x12a   : > { %v745_v5 = vsel %vm737_vm2, %v728_v61, %v744_v44  ;;  %v5450_v7 = vadd.f32 %v5200_v6, %v5170_v50  ;;  %v5452_v48 = vmul.f32 30.0, %v356_v63  ;;  %v5454_v36 = vmul.f32 30.0, %v364_v62 }
 0x12b   : > { %v5456_v33 = vsub.s32 32, %v821_v59  ;;  %v5460_v31 = vadd.f32 %v5170_v50, %v5202_v8  ;;  %v5462_v42 = vmul.f32 30.0, %v425_v47  ;;  %v4347_v57 = vmin.u32 %v561_v38, %v5406_v34 }
 0x12c   : > { %9345 = vst [vmem:[#allocation17_spill] sm:$0xff] %v5454_v36  ;;  %vm736_vm3 = vcmp.lt.s32.totalorder %v5392_v23, 2  ;;  %v377_v6 = vadd.f32 %v5204_v9, %v5170_v50  ;;  %v747_v62 = vsel %vm735_vm1, %v5421_v17, %v728_v61  ;;  %v749_v8 = vsel %vm737_vm2, %v731_v35, %v748_v4 }
 0x12d   : > { %9346 = vst [vmem:[#allocation18_spill] sm:$0xff] %v5462_v42  ;;  %v746_v37 = vsel %vm736_vm3, %v743_v2, %v745_v5  ;;  %v5475_v39 = vmul.f32 30.0, %v417_v28  ;;  %v660_v29 = vadd.s32 536870912, %v5435_v46  ;;  %v5478_v32 = vshll.u32 %v711_v1, 8 }
 0x12e   : > { %v915_v63 = vshrl.u32 %v914_v60, 23  ;;  %v369_v9 = vadd.f32 %v5170_v50, %v5207_v11  ;;  %v834_v44 = vshrl.u32 %v9339_v54, %v5456_v33  ;;  %v837_v47 = vshrl.u32 %v9342_v30, %v5456_v33 }
 0x12f   : > { %9347 = vst [vmem:[#allocation19_spill] sm:$0xff] %v5475_v39  ;;  %v563_v38 = vclz %v4347_v57  ;;  %v750_v35 = vsel %vm736_vm3, %v747_v62, %v749_v8  ;;  %v5490_v28 = vmul.u32.u64.low %v5478_v32, %v746_v37  ;;  %v5491_v1 = vmul.u32.u64.high %v5478_v32, %v746_v37, %v5490_v28 }
 0x130   : > { %v825_v11 = vshrl.u32 %v9260_v41, %v5456_v33  ;;  %v828_v2 = vshrl.u32 %v9252_v43, %v5456_v33  ;;  %v833_v5 = vshll.u32 %v9341_v10, %v821_v59  ;;  %v836_v4 = vshll.u32 %v9339_v54, %v821_v59 }
 0x131   : > { %9348 = vst [vmem:[#allocation20_spill] sm:$0xff] %v5490_v28  ;;  %v5500_v60 = vshrl.u32 %v660_v29, 30  ;;  %v5502_v57 = vshrl.u32 %v819_v53, 5  ;;  %v831_v62 = vshrl.u32 %v9341_v10, %v5456_v33  ;;  %v4362_v37 = vadd.s32 4294967169, %v915_v63 }
 0x132   : > { %v824_v8 = vshll.u32 %v9258_v49, %v821_v59  ;;  %v827_v3 = vshll.u32 %v9260_v41, %v821_v59  ;;  %v835_v42 = vor.u32 %v834_v44, %v833_v5  ;;  %v838_v39 = vor.u32 %v837_v47, %v836_v4 }
 0x133   : > { %v380_v43 = vadd.f32 %v5209_v12, %v5170_v50  ;;  %v5511_v58 = vmul.u32.u64.low %v5478_v32, %v750_v35  ;;  %v5512_v22 = vmul.u32.u64.high %v5478_v32, %v750_v35, %v5511_v58  ;;  %v9349_v29 = vmov 2131351028  }
 0x134   : > { %v830_v53 = vshll.u32 %v9349_v29, %v821_v59  ;;  %v740_v36 = vsel %vm738_vm0, %v728_v61, 2102212464  ;;  %v9350_v63 = vand.u32 2147483647, %v5296_v40  ;;  %v5519_v49 = vor.u32 %v825_v11, %v824_v8 }
 0x135   : > { %v5521_v41 = vor.u32 %v828_v2, %v827_v3  ;;  %v9351_v44 = vmov 683565275   ;;  %vm842_vm4 = vcmp.lt.s32.totalorder %v5502_v57, 4  ;;  %v921_v35 = vadd.s32 1, %v4362_v37 }
 0x136   : > { %v814_v26 = vand.u32 8388607, %v9350_v63  ;;  %v719_v47 = vshrl.u32 %v9351_v44, %v5362_v45  ;;  %v832_v12 = vor.u32 %v831_v62, %v830_v53  ;;  %v4348_v58 = vadd.s32 4294967294, %v563_v38 }
 0x137   : > { %v662_v59 = vshll.u32 %v5500_v60, 30  ;;  %v848_v61 = vsel %vm842_vm4, %v835_v42, 920167782  ;;  %v852_v5 = vsel %vm842_vm4, %v838_v39, 1326507024  ;;  %v741_v45 = vsel %vm737_vm2, %v5421_v17, %v740_v36 }
 0x138   : > { %v739_v3 = vsel %vm735_vm1, %v719_v47, %v5419_v51  ;;  %vm839_vm5 = vcmp.lt.s32.totalorder %v5502_v57, 1  ;;  %vm922_vm6 = vcmp.gt.s32.totalorder %v921_v35, 0  ;;  %v815_v38 = vor.u32 8388608, %v814_v26 }
 0x139   : > { %vm841_vm7 = vcmp.lt.s32.totalorder %v5502_v57, 3  ;;  %v847_v11 = vsel %vm839_vm5, %v5519_v49, %v5521_v41  ;;  %v923_v39 = vsel %vm922_vm6, %v921_v35, 0  ;;  %v851_v51 = vsel %vm839_vm5, %v5521_v41, %v832_v12 }
 0x13a   : > { %v849_v2 = vsel %vm841_vm7, %v832_v12, %v848_v61  ;;  %v853_v17 = vsel %vm841_vm7, %v835_v42, %v852_v5  ;;  %v925_v36 = vand.u32 31, %v923_v39  ;;  %v5550_v26 = vmul.f32 30.0, %v377_v6 }
 0x13b   : > { %v5553_v4 = vmul.f32 30.0, %v5450_v7  ;;  %v5556_v62 = vsub.s32 %v5435_v46, %v662_v59  ;;  %v761_v37 = vadd.s32 1, %v5491_v1  ;;  %v5560_v8 = vmul.f32 30.0, %v5460_v31 }
 0x13c   : > { %9352 = vst [vmem:[#allocation21_spill] sm:$0xff] %v5550_v26  ;;  %v742_v53 = vsel %vm736_vm3, %v739_v3, %v741_v45  ;;  %vm760_vm8 = vc.u32 %v5512_v22, %v5490_v28  ;;  %vm840_vm9 = vcmp.lt.s32.totalorder %v5502_v57, 2  ;;  %v5569_v7 = vadd.f32 %v5170_v50, %v5211_v13 }
 0x13d   : > { %9353 = vst [vmem:[#allocation22_spill] sm:$0xff] %v5553_v4  ;;  %9354 = vst [vmem:[#allocation23_spill] sm:$0xff] %v5560_v8  ;;  %v850_v46 = vsel %vm840_vm9, %v847_v11, %v849_v2  ;;  %v854_v42 = vsel %vm840_vm9, %v851_v51, %v853_v17  ;;  %v5575_v31 = vsub.s32 32, %v925_v36  ;;  %v5577_v6 = vmul.f32 30.0, %v369_v9 }
 0x13e   : > { %v5579_v23 = vmul.f32 30.0, %v380_v43  ;;  %vm4349_vm10 = vcmp.lt.s32.totalorder %v4348_v58, 0  ;;  %v5581_v63 = vshll.u32 %v815_v38, 8  ;;  %v665_v47 = vsub.s32 0, %v5556_v62 }
 0x13f   : > { %9355 = vst [vmem:[#allocation24_spill] sm:$0xff] %v5577_v6  ;;  %v758_v13 = vmul.u32 %v5478_v32, %v742_v53  ;;  %v762_v35 = vsel %vm760_vm8, %v761_v37, %v5491_v1  ;;  %v9270_v59 = vand.u32 2147483647, %v5414_v15  ;;  %v9357_v43 = vmov 2475754826  }
 0x140   : > { %9356 = vst [vmem:[#allocation25_spill] sm:$0xff] %v5579_v23  ;;  %v5588_v61 = vmul.u32.u64.low %v5581_v63, %v854_v42  ;;  %v5589_v5 = vmul.u32.u64.high %v5581_v63, %v854_v42, %v5588_v61  ;;  %v5592_v9 = vmul.u32.u64.low %v5581_v63, %v850_v46  ;;  %v5593_v3 = vmul.u32.u64.high %v5581_v63, %v850_v46, %v5592_v9 }
 0x141   : > { %v929_v45 = vshrl.u32 %v9357_v43, %v5575_v31  ;;  %v932_v38 = vshrl.u32 %v9349_v29, %v5575_v31  ;;  %v935_v32 = vshrl.u32 %v9341_v10, %v5575_v31  ;;  %v938_v1 = vshrl.u32 %v9339_v54, %v5575_v31 }
 0x142   : > { %v5604_v11 = vadd.s32 %v762_v35, %v758_v13  ;;  %v5606_v2 = vshrl.u32 %v923_v39, 5  ;;  %v937_v51 = vshll.u32 %v9341_v10, %v925_v36  ;;  %v1018_v17 = vand.u32 2139095040, %v5452_v48 }
 0x143   : > { %v928_v37 = vshll.u32 %v9351_v44, %v925_v36  ;;  %v931_v53 = vshll.u32 %v9357_v43, %v925_v36  ;;  %v934_v46 = vshll.u32 %v9349_v29, %v925_v36  ;;  %v941_v42 = vshrl.u32 %v9342_v30, %v5575_v31 }
 0x144   : > { %v844_v61 = vsel %vm842_vm4, %v832_v12, 2102212464  ;;  %v918_v39 = vand.u32 8388607, %v9270_v59  ;;  %v939_v13 = vor.u32 %v938_v1, %v937_v51  ;;  %v940_v35 = vshll.u32 %v9339_v54, %v925_v36 }
 0x145   : > { %v823_v4 = vshrl.u32 %v9351_v44, %v5456_v33  ;;  %v5622_v8 = vor.u32 %v929_v45, %v928_v37  ;;  %v5624_v23 = vor.u32 %v932_v38, %v931_v53  ;;  %v936_v26 = vor.u32 %v935_v32, %v934_v46 }
 0x146   : > { %v5627_v40 = vsel %vm4349_vm10, 0, %v4348_v58  ;;  %v4351_v6 = vmin.u32 %v665_v47, %v5556_v62  ;;  %v942_v12 = vor.u32 %v941_v42, %v940_v35  ;;  %v1019_v28 = vshrl.u32 %v1018_v17, 23 }
 0x147   : > { %v764_v59 = vadd.s32 536870912, %v5604_v11  ;;  %v843_v36 = vsel %vm839_vm5, %v823_v4, %v5519_v49  ;;  %v845_v33 = vsel %vm841_vm7, %v5521_v41, %v844_v61  ;;  %vm946_vm11 = vcmp.lt.s32.totalorder %v5606_v2, 4 }
 0x148   : > { %v865_v45 = vadd.s32 1, %v5593_v3  ;;  %vm943_vm12 = vcmp.lt.s32.totalorder %v5606_v2, 1  ;;  %vm945_vm13 = vcmp.lt.s32.totalorder %v5606_v2, 3  ;;  %v952_v58 = vsel %vm946_vm11, %v939_v13, 920167782 }
 0x149   : > { %vm864_vm14 = vc.u32 %v5589_v5, %v5592_v9  ;;  %v919_v47 = vor.u32 8388608, %v918_v39  ;;  %v951_v41 = vsel %vm943_vm12, %v5622_v8, %v5624_v23  ;;  %v953_v49 = vsel %vm945_vm13, %v936_v26, %v952_v58 }
 0x14a   : > { %v846_v4 = vsel %vm840_vm9, %v843_v36, %v845_v33  ;;  %v955_v38 = vsel %vm943_vm12, %v5624_v23, %v936_v26  ;;  %v956_v32 = vsel %vm946_vm11, %v942_v12, 1326507024  ;;  %v4366_v1 = vadd.s32 4294967169, %v1019_v28 }
 0x14b   : > { %v441_v51 = vadd.f32 %v5213_v14, %v5170_v50  ;;  %v571_v17 = vsub.s32 4294967266, %v5627_v40  ;;  %v667_v37 = vclz %v4351_v6  ;;  %vm944_vm15 = vcmp.lt.s32.totalorder %v5606_v2, 2 }
 0x14c   : > { %v5662_v53 = vshrl.u32 %v764_v59, 30  ;;  %v866_v57 = vsel %vm864_vm14, %v865_v45, %v5593_v3  ;;  %v954_v46 = vsel %vm944_vm15, %v951_v41, %v953_v49  ;;  %v957_v42 = vsel %vm945_vm13, %v939_v13, %v956_v32 }
 0x14d   : > { %v862_v28 = vmul.u32 %v5581_v63, %v846_v4  ;;  %v958_v14 = vsel %vm944_vm15, %v955_v38, %v957_v42  ;;  %v5672_v61 = vshll.u32 %v919_v47, 8  ;;  %v1025_v6 = vadd.s32 1, %v4366_v1 }
 0x14e   : > { %v433_v59 = vadd.f32 %v5170_v50, %v5217_v16  ;;  %v444_v3 = vadd.f32 %v5219_v18, %v5170_v50  ;;  %v551_v39 = vadd.s32 %v5280_v55, %v5285_v0  ;;  %v567_v35 = vsub.s32 32, %v5627_v40 }
 0x14f   : > { %v5681_v13 = vadd.s32 %v866_v57, %v862_v28  ;;  %v5684_v63 = vmul.u32.u64.low %v5672_v61, %v954_v46  ;;  %v5685_v12 = vmul.u32.u64.high %v5672_v61, %v954_v46, %v5684_v63  ;;  %vm1026_vm0 = vcmp.gt.s32.totalorder %v1025_v6, 0 }
 0x150   : > { %v572_v36 = vadd.s32 127, %v571_v17  ;;  %v766_v33 = vshll.u32 %v5662_v53, 30  ;;  %v5690_v16 = vmul.u32.u64.low %v5672_v61, %v958_v14  ;;  %v5691_v45 = vmul.u32.u64.high %v5672_v61, %v958_v14, %v5690_v16 }
 0x151   : > { %v393_v18 = vadd.f32 %v5223_v20, %v5170_v50  ;;  %v5696_v55 = vmul.f32 30.0, %v5569_v7  ;;  %v4352_v0 = vadd.s32 4294967294, %v667_v37  ;;  %v1027_v58 = vsel %vm1026_vm0, %v1025_v6, 0 }
 0x152   : > { %v436_v47 = vadd.f32 %v5170_v50, %v5221_v19  ;;  %v5700_v41 = vmul.f32 30.0, %v433_v59  ;;  %v5702_v49 = vmul.f32 30.0, %v441_v51  ;;  %v569_v4 = vshrl.u32 %v551_v39, %v567_v35 }
 0x153   : > { %9358 = vst [vmem:[#allocation26_spill] sm:$0xff] %v5696_v55  ;;  %v385_v38 = vadd.f32 %v5170_v50, %v5225_v21  ;;  %v5706_v32 = vmul.f32 30.0, %v444_v3  ;;  %v568_v20 = vshll.u32 %v5406_v34, %v5627_v40  ;;  %v868_v7 = vadd.s32 536870912, %v5681_v13 }
 0x154   : > { %9359 = vst [vmem:[#allocation27_spill] sm:$0xff] %v5700_v41  ;;  %9360 = vst [vmem:[#allocation28_spill] sm:$0xff] %v5702_v49  ;;  %v573_v1 = vshll.u32 %v572_v36, 23  ;;  %v5712_v17 = vsub.s32 %v5604_v11, %v766_v33  ;;  %v948_v19 = vsel %vm946_vm11, %v936_v26, 2102212464  ;;  %v1029_v51 = vand.u32 31, %v1027_v58 }
 0x155   : > { %9361 = vst [vmem:[#allocation29_spill] sm:$0xff] %v5706_v32  ;;  %v5718_v37 = vadd.f32 %v5228_v24, %v5170_v50  ;;  %v5720_v21 = vmul.f32 30.0, %v393_v18  ;;  %vm4353_vm1 = vcmp.lt.s32.totalorder %v4352_v0, 0  ;;  %v927_v40 = vshrl.u32 %v9351_v44, %v5575_v31  ;;  %v9372_v32 = vld [vmem:[#allocation6_spill] sm:$0xff] }
 0x156   : > { %v5726_v34 = vadd.f32 %v5170_v50, %v5230_v25  ;;  %v5728_v11 = vmul.f32 30.0, %v436_v47  ;;  %v570_v57 = vor.u32 %v569_v4, %v568_v20  ;;  %v5730_v46 = vsub.s32 32, %v1029_v51 }
 0x157   : > { %9362 = vst [vmem:[#allocation30_spill] sm:$0xff] %v5720_v21  ;;  %v5732_v26 = vshrl.u32 %v868_v7, 30  ;;  %v947_v24 = vsel %vm943_vm12, %v927_v40, %v5622_v8  ;;  %v949_v42 = vsel %vm945_vm13, %v5624_v23, %v948_v19  ;;  %v969_v31 = vadd.s32 1, %v5685_v12 }
 0x158   : > { %9363 = vst [vmem:[#allocation31_spill] sm:$0xff] %v5728_v11  ;;  %v574_v28 = vor.u32 4788187, %v573_v1  ;;  %v5741_v25 = vsel %vm4353_vm1, 0, %v4352_v0  ;;  %v769_v14 = vsub.s32 0, %v5712_v17  ;;  %vm968_vm2 = vc.u32 %v5691_v45, %v5684_v63 }
 0x159   : > { %v9271_v6 = vand.u32 2147483647, %v5452_v48  ;;  %v1033_v59 = vshrl.u32 %v9357_v43, %v5730_v46  ;;  %v1041_v8 = vshll.u32 %v9341_v10, %v1029_v51  ;;  %v1042_v23 = vshrl.u32 %v9339_v54, %v5730_v46 }
 0x15a   : > { %v950_v3 = vsel %vm944_vm15, %v947_v24, %v949_v42  ;;  %v5754_v39 = vshrl.u32 %v1027_v58, 5  ;;  %v1036_v35 = vshrl.u32 %v9349_v29, %v5730_v46  ;;  %v1039_v36 = vshrl.u32 %v9341_v10, %v5730_v46 }
 0x15b   : > { %v870_v33 = vshll.u32 %v5732_v26, 30  ;;  %v970_v16 = vsel %vm968_vm2, %v969_v31, %v5685_v12  ;;  %v1032_v18 = vshll.u32 %v9351_v44, %v1029_v51  ;;  %v1043_v0 = vor.u32 %v1042_v23, %v1041_v8 }
 0x15c   : > { %v1035_v47 = vshll.u32 %v9357_v43, %v1029_v51  ;;  %v1038_v2 = vshll.u32 %v9349_v29, %v1029_v51  ;;  %v1044_v58 = vshll.u32 %v9339_v54, %v1029_v51  ;;  %v1045_v4 = vshrl.u32 %v9342_v30, %v5730_v46 }
 0x15d   : > { %v4355_v20 = vmin.u32 %v769_v14, %v5712_v17  ;;  %v966_v7 = vmul.u32 %v5672_v61, %v950_v3  ;;  %v1022_v1 = vand.u32 8388607, %v9271_v6  ;;  %v5772_v12 = vor.u32 %v1033_v59, %v1032_v18 }
 0x15e   : > { %vm497_vm3 = vcmp.lt.s32.totalorder %v5177_v56, 0  ;;  %v5775_v19 = vor.u32 %v1036_v35, %v1035_v47  ;;  %v1040_v40 = vor.u32 %v1039_v36, %v1038_v2  ;;  %v1046_v24 = vor.u32 %v1045_v4, %v1044_v58  ;;  %v9368_v58 = vld [vmem:[#allocation4_spill] sm:$0xff] }
 0x15f   : > { %vm1050_vm4 = vcmp.lt.s32.totalorder %v5754_v39, 4  ;;  %v5778_v51 = vmul.f32 30.0, %v385_v38  ;;  %v575_v42 = vand.u32 2147483647, %v574_v28  ;;  %v5780_v31 = vadd.s32 %v970_v16, %v966_v7 }
 0x160   : > { %v1056_v61 = vsel %vm1050_vm4, %v1043_v0, 920167782  ;;  %v577_v14 = vcvt.s32.f32 %v570_v57  ;;  %v581_v59 = vsub.s32 4, %v5360_v27  ;;  %v675_v8 = vsub.s32 4294967266, %v5741_v25 }
 0x161   : > { %9364 = vst [vmem:[#allocation32_spill] sm:$0xff] %v5778_v51  ;;  %v5787_v23 = vsub.s32 %v5681_v13, %v870_v33  ;;  %v9365_v3 = vand.u32 2147483647, %v5177_v56  ;;  %vm1047_vm6 = vcmp.lt.s32.totalorder %v5754_v39, 1  ;;  %vm1049_vm7 = vcmp.lt.s32.totalorder %v5754_v39, 3 }
 0x162   : > { %v1060_v38 = vsel %vm1050_vm4, %v1046_v24, 1326507024  ;;  %v1122_v57 = vand.u32 2139095040, %v5386_v52  ;;  %v771_v28 = vclz %v4355_v20  ;;  %v1023_v36 = vor.u32 8388608, %v1022_v1  ;;  %v9370_v1 = vld [vmem:[#allocation5_spill] sm:$0xff] }
 0x163   : > { %vm5791_vm5 = vcmp.le.f32.partialorder %v9365_v3, 0.7853982  ;;  %v1055_v13 = vsel %vm1047_vm6, %v5772_v12, %v5775_v19  ;;  %v1057_v33 = vsel %vm1049_vm7, %v1040_v40, %v1056_v61  ;;  %v578_v16 = vmul.f32 %v577_v14, %v575_v42 }
 0x164   : > { %v972_v18 = vadd.s32 536870912, %v5780_v31  ;;  %v1059_v47 = vsel %vm1047_vm6, %v5775_v19, %v1040_v40  ;;  %v1061_v2 = vsel %vm1049_vm7, %v1043_v0, %v1060_v38  ;;  %v457_v4 = vadd.f32 %v9368_v58, %v5170_v50 }
 0x165   : > { %v5815_v20 = vmul.f32 30.0, %v5718_v37  ;;  %v873_v7 = vsub.s32 0, %v5787_v23  ;;  %vm1048_vm8 = vcmp.lt.s32.totalorder %v5754_v39, 2  ;;  %v449_v24 = vadd.f32 %v5170_v50, %v9370_v1 }
 0x166   : > { %v5822_v42 = vmul.f32 30.0, %v5726_v34  ;;  %v1058_v61 = vsel %vm1048_vm8, %v1055_v13, %v1057_v33  ;;  %v1123_v0 = vshrl.u32 %v1122_v57, 23  ;;  %v676_v14 = vadd.s32 127, %v675_v8 }
 0x167   : > { %9369 = vst [vmem:[#allocation4_spill] sm:$0xff] %v5815_v20  ;;  %v4356_v3 = vadd.s32 4294967294, %v771_v28  ;;  %v1062_v37 = vsel %vm1048_vm8, %v1059_v47, %v1061_v2  ;;  %v5828_v38 = vshll.u32 %v1023_v36, 8  ;;  %v579_v58 = vxor.u32 2147483648, %v578_v16  ;;  %v9374_v47 = vld [vmem:[#allocation7_spill] sm:$0xff] }
 0x168   : > { %9371 = vst [vmem:[#allocation5_spill] sm:$0xff] %v5822_v42  ;;  %v582_v6 = vsel %vm497_vm3, %v581_v59, %v5360_v27  ;;  %v5833_v1 = vshrl.u32 %v972_v18, 30  ;;  %v4370_v34 = vadd.s32 4294967169, %v1123_v0  ;;  %v5837_v49 = vadd.f32 %v9372_v32, %v5170_v50  ;;  %v9376_v0 = vld [vmem:[#allocation10_spill] sm:$0xff] }
 0x169   : > { %v4359_v8 = vmin.u32 %v873_v7, %v5787_v23  ;;  %v5841_v57 = vmul.u32.u64.low %v5828_v38, %v1058_v61  ;;  %v5842_v28 = vmul.u32.u64.high %v5828_v38, %v1058_v61, %v5841_v57  ;;  %v5845_v36 = vmul.f32 30.0, %v457_v4  ;;  %v9375_v61 = vld [vmem:[#allocation11_spill] sm:$0xff] }
 0x16a   : > { %v5848_v13 = vmul.u32.u64.low %v5828_v38, %v1062_v37  ;;  %v5849_v33 = vmul.u32.u64.high %v5828_v38, %v1062_v37, %v5848_v13  ;;  %v1129_v27 = vadd.s32 1, %v4370_v34  ;;  %v584_v59 = vsel %vm5791_vm5, 0, %v582_v6 }
 0x16b   : > { %9373 = vst [vmem:[#allocation6_spill] sm:$0xff] %v5845_v36  ;;  %v671_v32 = vsub.s32 32, %v5741_v25  ;;  %v677_v18 = vshll.u32 %v676_v14, 23  ;;  %vm4357_vm9 = vcmp.lt.s32.totalorder %v4356_v3, 0  ;;  %v5856_v2 = vadd.f32 %v5170_v50, %v9374_v47 }
 0x16c   : > { %v580_v4 = vsel %vm497_vm3, %v579_v58, %v578_v16  ;;  %v974_v7 = vshll.u32 %v5833_v1, 30  ;;  %vm1130_vm10 = vcmp.gt.s32.totalorder %v1129_v27, 0  ;;  %v655_v37 = vadd.s32 %v9376_v0, %v9375_v61 }
 0x16d   : > { %v875_v34 = vclz %v4359_v8  ;;  %v1052_v6 = vsel %vm1050_vm4, %v1040_v40, 2102212464  ;;  %v1131_v13 = vsel %vm1130_vm10, %v1129_v27, 0  ;;  %v588_v14 = vadd.s32 3, %v584_v59 }
 0x16e   : > { %v5865_v36 = vsel %vm4357_vm9, 0, %v4356_v3  ;;  %v1031_v50 = vshrl.u32 %v9351_v44, %v5730_v46  ;;  %v1133_v47 = vand.u32 31, %v1131_v13  ;;  %v5869_v11 = vmul.f32 30.0, %v449_v24 }
 0x16f   : > { %v583_v16 = vsel %vm5791_vm5, %v5177_v56, %v580_v4  ;;  %v673_v58 = vshrl.u32 %v655_v37, %v671_v32  ;;  %v678_v61 = vor.u32 4788187, %v677_v18  ;;  %v5875_v8 = vsub.s32 %v5780_v31, %v974_v7  ;;  %v9380_v37 = vld [vmem:[#allocation17_spill] sm:$0xff] }
 0x170   : > { %9377 = vst [vmem:[#allocation7_spill] sm:$0xff] %v5869_v11  ;;  %v1051_v40 = vsel %vm1047_vm6, %v1031_v50, %v5772_v12  ;;  %v1053_v46 = vsel %vm1049_vm7, %v5775_v19, %v1052_v6  ;;  %v5883_v3 = vsub.s32 32, %v1133_v47  ;;  %v672_v24 = vshll.u32 %v5556_v62, %v5741_v25  ;;  %v9378_v19 = vld [vmem:[#allocation20_spill] sm:$0xff]  ;;  %v9379_v25 = vld [vmem:[#allocation3_spill] sm:$0xff] }
 0x171   : > { %v779_v35 = vsub.s32 4294967266, %v5865_v36  ;;  %v4360_v27 = vadd.s32 4294967294, %v875_v34  ;;  %v1073_v59 = vadd.s32 1, %v5842_v28  ;;  %4835 = vcosq.f32 %v583_v16 }
 0x172   : > { %v5889_v31 = vand.u32 3, %v588_v14  ;;  %v685_v32 = vsub.s32 4, %v5500_v60  ;;  %vm1072_vm11 = vc.u32 %v5849_v33, %v5841_v57  ;;  %4837 = vsinq.f32 %v583_v16 }
 0x173   : > { %v674_v12 = vor.u32 %v673_v58, %v672_v24  ;;  %v759_v18 = vadd.s32 %v9378_v19, %v5512_v22  ;;  %v1054_v62 = vsel %vm1048_vm8, %v1051_v40, %v1053_v46  ;;  %vm601_vm12 = vcmp.lt.s32.totalorder %v9379_v25, 0 }
 0x174   : > { %v679_v4 = vand.u32 2147483647, %v678_v61  ;;  %v977_v7 = vsub.s32 0, %v5875_v8  ;;  %v1146_v0 = vshrl.u32 %v9339_v54, %v5883_v3  ;;  %v1226_v34 = vand.u32 2139095040, %v9380_v37 }
 0x175   : > { %v780_v6 = vadd.s32 127, %v779_v35  ;;  %vm4361_vm13 = vcmp.lt.s32.totalorder %v4360_v27, 0  ;;  %v1074_v14 = vsel %vm1072_vm11, %v1073_v59, %v5842_v28  ;;  %v1070_v22 = vmul.u32 %v5828_v38, %v1054_v62 }
 0x176   : > { %v5906_v39 = vshrl.u32 %v1131_v13, 5  ;;  %v1137_v16 = vshrl.u32 %v9357_v43, %v5883_v3  ;;  %v1145_v58 = vshll.u32 %v9341_v10, %v1133_v47  ;;  %v1140_v61 = vshrl.u32 %v9349_v29, %v5883_v3 }
 0x177   : > { %v1143_v40 = vshrl.u32 %v9341_v10, %v5883_v3  ;;  %v1148_v46 = vshll.u32 %v9339_v54, %v1133_v47  ;;  %v1149_v28 = vshrl.u32 %v9342_v30, %v5883_v3  ;;  %v4363_v38 = vmin.u32 %v977_v7, %v5875_v8 }
 0x178   : > { %v5919_v13 = vadd.s32 %v1074_v14, %v1070_v22  ;;  %v1147_v24 = vor.u32 %v1146_v0, %v1145_v58  ;;  %v1227_v35 = vshrl.u32 %v1226_v34, 23  ;;  %v9381_v59 = vand.u32 2147483647, %v9379_v25 }
 0x179   : > { %v1136_v62 = vshll.u32 %v9351_v44, %v1133_v47  ;;  %v1139_v50 = vshll.u32 %v9357_v43, %v1133_v47  ;;  %v1142_v11 = vshll.u32 %v9349_v29, %v1133_v47  ;;  %v1150_v41 = vor.u32 %v1149_v28, %v1148_v46 }
 0x17a   : > { %vm5923_vm14 = vcmp.le.f32.partialorder %v9381_v59, 0.7853982  ;;  %v681_v20 = vcvt.s32.f32 %v674_v12  ;;  %v775_v7 = vsub.s32 32, %v5865_v36  ;;  %v781_v14 = vshll.u32 %v780_v6, 23 }
 0x17b   : > { %v9384_v0 = vand.u32 2147483647, %v5386_v52  ;;  %v5933_v22 = vor.u32 %v1137_v16, %v1136_v62  ;;  %v5935_v58 = vor.u32 %v1140_v61, %v1139_v50  ;;  %v1144_v59 = vor.u32 %v1143_v40, %v1142_v11  ;;  %v5938_v21 = vpop.eup %4835  ;;  %v9385_v50 = vld [vmem:[#allocation8_spill] sm:$0xff] }
 0x17c   : > { %vm1154_vm15 = vcmp.lt.s32.totalorder %v5906_v39, 4  ;;  %v5941_v42 = vsel %vm4361_vm13, 0, %v4360_v27  ;;  %v979_v47 = vclz %v4363_v38  ;;  %v1076_v12 = vadd.s32 536870912, %v5919_v13  ;;  %v5946_v46 = vpop.eup %4837 }
 0x17d   : > { %v1126_v34 = vand.u32 8388607, %v9384_v0  ;;  %v1160_v6 = vsel %vm1154_vm15, %v1147_v24, 920167782  ;;  %v682_v16 = vmul.f32 %v681_v20, %v679_v4  ;;  %v686_v11 = vsel %vm601_vm12, %v685_v32, %v5500_v60 }
 0x17e   : > { %vm705_vm0 = vcmp.lt.s32.totalorder %v9385_v50, 0  ;;  %v1164_v61 = vsel %vm1154_vm15, %v1150_v41, 1326507024  ;;  %v4374_v27 = vadd.s32 4294967169, %v1227_v35  ;;  %v777_v40 = vshrl.u32 %v759_v18, %v775_v7 }
 0x17f   : > { %v782_v28 = vor.u32 4788187, %v781_v14  ;;  %vm1151_vm1 = vcmp.lt.s32.totalorder %v5906_v39, 1  ;;  %vm1153_vm2 = vcmp.lt.s32.totalorder %v5906_v39, 3  ;;  %v883_v38 = vsub.s32 4294967266, %v5941_v42 }
 0x180   : > { %v1127_v62 = vor.u32 8388608, %v1126_v34  ;;  %v1159_v60 = vsel %vm1151_vm1, %v5933_v22, %v5935_v58  ;;  %v1161_v20 = vsel %vm1153_vm2, %v1144_v59, %v1160_v6  ;;  %v4364_v32 = vadd.s32 4294967294, %v979_v47 }
 0x181   : > { %v5963_v41 = vshrl.u32 %v1076_v12, 30  ;;  %v1163_v18 = vsel %vm1151_vm1, %v5935_v58, %v1144_v59  ;;  %v1165_v4 = vsel %vm1153_vm2, %v1147_v24, %v1164_v61  ;;  %v5971_v35 = vmul.f32 30.0, %v5837_v49 }
 0x182   : > { %v9387_v7 = vand.u32 2147483647, %v9385_v50  ;;  %v776_v0 = vshll.u32 %v5712_v17, %v5865_v36  ;;  %vm1152_vm4 = vcmp.lt.s32.totalorder %v5906_v39, 2  ;;  %v1233_v34 = vadd.s32 1, %v4374_v27 }
 0x183   : > { %9386 = vst [vmem:[#allocation11_spill] sm:$0xff] %v5971_v35  ;;  %v5983_v47 = vmul.f32 30.0, %v5856_v2  ;;  %v688_v24 = vsel %vm5923_vm14, 0, %v686_v11  ;;  %v789_v49 = vsub.s32 4, %v5662_v53  ;;  %v1162_v12 = vsel %vm1152_vm4, %v1159_v60, %v1161_v20 }
 0x184   : > { %vm5975_vm3 = vcmp.le.f32.partialorder %v9387_v7, 0.7853982  ;;  %v778_v6 = vor.u32 %v777_v40, %v776_v0  ;;  %v884_v61 = vadd.s32 127, %v883_v38  ;;  %v1166_v7 = vsel %vm1152_vm4, %v1163_v18, %v1165_v4 }
 0x185   : > { %9390 = vst [vmem:[#allocation10_spill] sm:$0xff] %v5983_v47  ;;  %v5992_v17 = vshll.u32 %v1127_v62, 8  ;;  %vm591_vm5 = vcmp.eq.s32.totalorder %v5889_v31, 0  ;;  %v683_v36 = vxor.u32 2147483648, %v682_v16  ;;  %v783_v2 = vand.u32 2147483647, %v782_v28 }
 0x186   : > { %vm4365_vm6 = vcmp.lt.s32.totalorder %v4364_v32, 0  ;;  %v1078_v27 = vshll.u32 %v5963_v41, 30  ;;  %v879_v11 = vsub.s32 32, %v5941_v42  ;;  %vm1234_vm7 = vcmp.gt.s32.totalorder %v1233_v34, 0 }
 0x187   : > { %v5998_v35 = vmul.u32.u64.low %v5992_v17, %v1162_v12  ;;  %v5999_v47 = vmul.u32.u64.high %v5992_v17, %v1162_v12, %v5998_v35  ;;  %v595_v40 = vxor.u32 2147483648, %v5938_v21  ;;  %v790_v38 = vsel %vm705_vm0, %v789_v49, %v5662_v53 }
 0x188   : > { %v6007_v62 = vmul.u32.u64.low %v5992_v17, %v1166_v7  ;;  %v6008_v28 = vmul.u32.u64.high %v5992_v17, %v1166_v7, %v6007_v62  ;;  %vm590_vm8 = vcmp.lt.s32.totalorder %v5889_v31, 2  ;;  %v785_v60 = vcvt.s32.f32 %v778_v6 }
 0x189   : > { %v863_v20 = vadd.s32 %v5592_v9, %v5589_v5  ;;  %v885_v18 = vshll.u32 %v884_v61, 23  ;;  %v6013_v4 = vsel %vm4365_vm6, 0, %v4364_v32  ;;  %v592_v0 = vxor.u32 2147483648, %v5946_v46 }
 0x18a   : > { %vm594_vm9 = vcmp.eq.s32.totalorder %v5889_v31, 2  ;;  %v6018_v12 = vsub.s32 %v5919_v13, %v1078_v27  ;;  %v1235_v53 = vsel %vm1234_vm7, %v1233_v34, 0  ;;  %v684_v49 = vsel %vm601_vm12, %v683_v36, %v682_v16 }
 0x18b   : > { %v786_v7 = vmul.f32 %v785_v60, %v783_v2  ;;  %v881_v62 = vshrl.u32 %v863_v20, %v879_v11  ;;  %v1156_v6 = vsel %vm1154_vm15, %v1144_v59, 2102212464  ;;  %v692_v5 = vadd.s32 3, %v688_v24 }
 0x18c   : > { %v792_v9 = vsel %vm5975_vm3, 0, %v790_v38  ;;  %v987_v32 = vsub.s32 4294967266, %v6013_v4  ;;  %v1135_v61 = vshrl.u32 %v9351_v44, %v5883_v3  ;;  %v596_v13 = vsel %vm594_vm9, %v595_v40, %v5946_v46 }
 0x18d   : > { %v880_v34 = vshll.u32 %v5787_v23, %v5941_v42  ;;  %v886_v16 = vor.u32 4788187, %v885_v18  ;;  %v1237_v36 = vand.u32 31, %v1235_v53  ;;  %v687_v59 = vsel %vm5923_vm14, %v9379_v25, %v684_v49 }
 0x18e   : > { %v1081_v24 = vsub.s32 0, %v6018_v12  ;;  %v1155_v2 = vsel %vm1151_vm1, %v1135_v61, %v5933_v22  ;;  %v1157_v3 = vsel %vm1153_vm2, %v5935_v58, %v1156_v6  ;;  %v593_v23 = vsel %vm591_vm5, %v5938_v21, %v592_v0 }
 0x18f   : > { %v787_v42 = vxor.u32 2147483648, %v786_v7  ;;  %v882_v46 = vor.u32 %v881_v62, %v880_v34  ;;  %v1177_v27 = vadd.s32 1, %v5999_v47  ;;  %v6046_v19 = vand.u32 3, %v692_v5  ;;  %v9391_v5 = vld [vmem:[#allocation24_spill] sm:$0xff] }
 0x190   : > { %v6048_v11 = vadd.s32 3, %v792_v9  ;;  %v988_v40 = vadd.s32 127, %v987_v32  ;;  %vm1176_vm10 = vc.u32 %v6008_v28, %v5998_v35  ;;  %4839 = vcosq.f32 %v687_v59 }
 0x191   : > { %v887_v22 = vand.u32 2147483647, %v886_v16  ;;  %v1158_v58 = vsel %vm1152_vm4, %v1155_v2, %v1157_v3  ;;  %v6054_v38 = vsub.s32 32, %v1237_v36  ;;  %v6058_v21 = vsel %vm590_vm8, %v593_v23, %v596_v13  ;;  %v9392_v23 = vld [vmem:[#allocation9_spill] sm:$0xff] }
 0x192   : > { %4841 = vsinq.f32 %v687_v59  ;;  %v983_v60 = vsub.s32 32, %v6013_v4  ;;  %v4367_v20 = vmin.u32 %v1081_v24, %v6018_v12  ;;  %v788_v18 = vsel %vm705_vm0, %v787_v42, %v786_v7 }
 0x193   : > { %v889_v0 = vcvt.s32.f32 %v882_v46  ;;  %v893_v49 = vsub.s32 4, %v5732_v26  ;;  %v1178_v39 = vsel %vm1176_vm10, %v1177_v27, %v5999_v47  ;;  %v967_v62 = vadd.s32 %v5684_v63, %v5691_v45 }
 0x194   : > { %v989_v6 = vshll.u32 %v988_v40, 23  ;;  %v1174_v31 = vmul.u32 %v5992_v17, %v1158_v58  ;;  %v1330_v9 = vand.u32 2139095040, %v9391_v5  ;;  %v9283_v61 = vand.u32 2147483647, %v9380_v37 }
 0x195   : > { %v890_v32 = vmul.f32 %v889_v0, %v887_v22  ;;  %v1250_v13 = vshrl.u32 %v9339_v54, %v6054_v38  ;;  %v1253_v7 = vshrl.u32 %v9342_v30, %v6054_v38  ;;  %v984_v47 = vshll.u32 %v5875_v8, %v6013_v4 }
 0x196   : > { %v985_v34 = vshrl.u32 %v967_v62, %v983_v60  ;;  %v1083_v16 = vclz %v4367_v20  ;;  %v6077_v63 = vadd.s32 %v1178_v39, %v1174_v31  ;;  %v1241_v45 = vshrl.u32 %v9357_v43, %v6054_v38 }
 0x197   : > { %v1244_v17 = vshrl.u32 %v9349_v29, %v6054_v38  ;;  %v1249_v59 = vshll.u32 %v9341_v10, %v1237_v36  ;;  %v1252_v24 = vshll.u32 %v9339_v54, %v1237_v36  ;;  %vm587_vm11 = vweird.f32 %v5177_v56 }
 0x198   : > { %v990_v2 = vor.u32 4788187, %v989_v6  ;;  %v6086_v3 = vshrl.u32 %v1235_v53, 5  ;;  %v1247_v8 = vshrl.u32 %v9341_v10, %v6054_v38  ;;  %v1331_v4 = vshrl.u32 %v1330_v9, 23 }
 0x199   : > { %vm809_vm12 = vcmp.lt.s32.totalorder %v9392_v23, 0  ;;  %v1240_v42 = vshll.u32 %v9351_v44, %v1237_v36  ;;  %v1243_v46 = vshll.u32 %v9357_v43, %v1237_v36  ;;  %v1251_v27 = vor.u32 %v1250_v13, %v1249_v59 }
 0x19a   : > { %v1254_v40 = vor.u32 %v1253_v7, %v1252_v24  ;;  %v986_v22 = vor.u32 %v985_v34, %v984_v47  ;;  %v4368_v58 = vadd.s32 4294967294, %v1083_v16  ;;  %v1246_v60 = vshll.u32 %v9349_v29, %v1237_v36  ;;  %v6094_v0 = vpop.eup %4839 }
 0x19b   : > { %v4378_v20 = vadd.s32 4294967169, %v1331_v4  ;;  %v1180_v53 = vadd.s32 536870912, %v6077_v63  ;;  %v1230_v39 = vand.u32 8388607, %v9283_v61  ;;  %v6099_v62 = vor.u32 %v1241_v45, %v1240_v42 }
 0x19c   : > { %v6101_v6 = vor.u32 %v1244_v17, %v1243_v46  ;;  %v6103_v31 = vpop.eup %4841  ;;  %v9393_v9 = vand.u32 2147483647, %v9392_v23  ;;  %v891_v36 = vxor.u32 2147483648, %v890_v32  ;;  %v1248_v7 = vor.u32 %v1247_v8, %v1246_v60 }
 0x19d   : > { %vm1258_vm14 = vcmp.lt.s32.totalorder %v6086_v3, 4  ;;  %v1337_v47 = vadd.s32 1, %v4378_v20  ;;  %v791_v34 = vsel %vm5975_vm3, %v9385_v50, %v788_v18  ;;  %v991_v16 = vand.u32 2147483647, %v990_v2 }
 0x19e   : > { %vm6107_vm13 = vcmp.le.f32.partialorder %v9393_v9, 0.7853982  ;;  %v1264_v45 = vsel %vm1258_vm14, %v1251_v27, 920167782  ;;  %v1268_v17 = vsel %vm1258_vm14, %v1254_v40, 1326507024  ;;  %v993_v59 = vcvt.s32.f32 %v986_v22 }
 0x19f   : > { %vm4369_vm15 = vcmp.lt.s32.totalorder %v4368_v58, 0  ;;  %vm1255_vm0 = vcmp.lt.s32.totalorder %v6086_v3, 1  ;;  %vm1338_vm1 = vcmp.gt.s32.totalorder %v1337_v47, 0  ;;  %v6120_v24 = vshrl.u32 %v1180_v53, 30 }
 0x1a0   : > { %v1231_v8 = vor.u32 8388608, %v1230_v39  ;;  %vm1257_vm2 = vcmp.lt.s32.totalorder %v6086_v3, 3  ;;  %v1263_v14 = vsel %vm1255_vm0, %v6099_v62, %v6101_v6  ;;  %v1267_v2 = vsel %vm1255_vm0, %v6101_v6, %v1248_v7 }
 0x1a1   : > { %9396 = vst [vmem:[#allocation20_spill] sm:$0xff] %v6120_v24  ;;  %v1265_v18 = vsel %vm1257_vm2, %v1248_v7, %v1264_v45  ;;  %v1269_v4 = vsel %vm1257_vm2, %v1251_v27, %v1268_v17  ;;  %v1339_v42 = vsel %vm1338_vm1, %v1337_v47, 0  ;;  %v6137_v46 = vsel %vm587_vm11, nan, %v6058_v21 }
 0x1a2   : > { %9397 = vst [vmem:[#allocation3_spill] sm:$0xff] %v6137_v46  ;;  %4843 = vcosq.f32 %v791_v34  ;;  %v6140_v40 = vand.u32 3, %v6048_v11  ;;  %vm913_vm3 = vcmp.lt.s32.totalorder %v5414_v15, 0  ;;  %v994_v22 = vmul.f32 %v993_v59, %v991_v16 }
 0x1a3   : > { %v892_v60 = vsel %vm809_vm12, %v891_v36, %v890_v32  ;;  %v6146_v20 = vsel %vm4369_vm15, 0, %v4368_v58  ;;  %vm1256_vm4 = vcmp.lt.s32.totalorder %v6086_v3, 2  ;;  %v1341_v27 = vand.u32 31, %v1339_v42 }
 0x1a4   : > { %4845 = vsinq.f32 %v791_v34  ;;  %v6154_v56 = vsel %vm809_vm12, %v893_v49, %v5732_v26  ;;  %v1266_v11 = vsel %vm1256_vm4, %v1263_v14, %v1265_v18  ;;  %v1270_v21 = vsel %vm1256_vm4, %v1267_v2, %v1269_v4 }
 0x1a5   : > { %v1182_v58 = vshll.u32 %v6120_v24, 30  ;;  %v6162_v53 = vshll.u32 %v1231_v8, 8  ;;  %v6164_v39 = vsub.s32 32, %v1341_v27  ;;  %v6169_v9 = vsel %vm6107_vm13, %v9392_v23, %v892_v60 }
 0x1a6   : > { %v995_v26 = vxor.u32 2147483648, %v994_v22  ;;  %v1091_v49 = vsub.s32 4294967266, %v6146_v20  ;;  %v6193_v2 = vshrl.u32 %v1339_v42, 5  ;;  %v1353_v4 = vshll.u32 %v9341_v10, %v1341_v27 }
 0x1a7   : > { %v6174_v47 = vmul.u32.u64.low %v6162_v53, %v1270_v21  ;;  %v6175_v34 = vmul.u32.u64.high %v6162_v53, %v1270_v21, %v6174_v47  ;;  %v6178_v16 = vmul.u32.u64.low %v6162_v53, %v1266_v11  ;;  %v6179_v45 = vmul.u32.u64.high %v6162_v53, %v1266_v11, %v6178_v16 }
 0x1a8   : > { %v1345_v17 = vshrl.u32 %v9357_v43, %v6164_v39  ;;  %v1348_v59 = vshrl.u32 %v9349_v29, %v6164_v39  ;;  %v1351_v8 = vshrl.u32 %v9341_v10, %v6164_v39  ;;  %v1354_v14 = vshrl.u32 %v9339_v54, %v6164_v39 }
 0x1a9   : > { %v6191_v18 = vsub.s32 %v6077_v63, %v1182_v58  ;;  %v1357_v60 = vshrl.u32 %v9342_v30, %v6164_v39  ;;  %v9398_v11 = vand.u32 2147483647, %v5414_v15  ;;  %v1344_v47 = vshll.u32 %v9351_v44, %v1341_v27 }
 0x1aa   : > { %v1347_v61 = vshll.u32 %v9357_v43, %v1341_v27  ;;  %v1350_v63 = vshll.u32 %v9349_v29, %v1341_v27  ;;  %v1434_v42 = vand.u32 2139095040, %v5696_v55  ;;  %v996_v58 = vsel %vm913_vm3, %v995_v26, %v994_v22 }
 0x1ab   : > { %vm6200_vm5 = vcmp.le.f32.partialorder %v9398_v11, 0.7853982  ;;  %v1260_v32 = vsel %vm1258_vm14, %v1248_v7, 2102212464  ;;  %v1355_v36 = vor.u32 %v1354_v14, %v1353_v4  ;;  %v1356_v11 = vshll.u32 %v9339_v54, %v1341_v27 }
 0x1ac   : > { %v6213_v46 = vpop.eup %4843  ;;  %v9401_v51 = vand.u32 2147483647, %v9391_v5  ;;  %v6217_v23 = vor.u32 %v1345_v17, %v1344_v47  ;;  %v6219_v50 = vor.u32 %v1348_v59, %v1347_v61  ;;  %v1352_v24 = vor.u32 %v1351_v8, %v1350_v63 }
 0x1ad   : > { %v1185_v52 = vsub.s32 0, %v6191_v18  ;;  %v1239_v22 = vshrl.u32 %v9351_v44, %v6054_v38  ;;  %v1358_v26 = vor.u32 %v1357_v60, %v1356_v11  ;;  %vm1362_vm6 = vcmp.lt.s32.totalorder %v6193_v2, 4 }
 0x1ae   : > { %v1334_v37 = vand.u32 8388607, %v9401_v51  ;;  %v6225_v7 = vpop.eup %4845  ;;  %v1087_v27 = vsub.s32 32, %v6146_v20  ;;  %v1092_v14 = vadd.s32 127, %v1091_v49  ;;  %v1368_v51 = vsel %vm1362_vm6, %v1355_v36, 920167782 }
 0x1af   : > { %v1435_v17 = vshrl.u32 %v1434_v42, 23  ;;  %v1259_v61 = vsel %vm1255_vm0, %v1239_v22, %v6099_v62  ;;  %v1261_v38 = vsel %vm1257_vm2, %v6101_v6, %v1260_v32  ;;  %vm1359_vm7 = vcmp.lt.s32.totalorder %v6193_v2, 1 }
 0x1b0   : > { %vm1361_vm8 = vcmp.lt.s32.totalorder %v6193_v2, 3  ;;  %v1281_v59 = vadd.s32 1, %v6179_v45  ;;  %v1335_v8 = vor.u32 8388608, %v1334_v37  ;;  %v1367_v49 = vsel %vm1359_vm7, %v6217_v23, %v6219_v50 }
 0x1b1   : > { %v1369_v4 = vsel %vm1361_vm8, %v1352_v24, %v1368_v51  ;;  %v4371_v62 = vmin.u32 %v1185_v52, %v6191_v18  ;;  %vm1280_vm9 = vc.u32 %v6175_v34, %v6178_v16  ;;  %v1371_v6 = vsel %vm1359_vm7, %v6219_v50, %v1352_v24 }
 0x1b2   : > { %v1372_v37 = vsel %vm1362_vm6, %v1358_v26, 1326507024  ;;  %v1262_v32 = vsel %vm1256_vm4, %v1259_v61, %v1261_v38  ;;  %vm1360_vm10 = vcmp.lt.s32.totalorder %v6193_v2, 2  ;;  %v4382_v47 = vadd.s32 4294967169, %v1435_v17 }
 0x1b3   : > { %v1373_v60 = vsel %vm1361_vm8, %v1355_v36, %v1372_v37  ;;  %4847 = vcosq.f32 %v6169_v9  ;;  %v999_v52 = vsel %vm6200_vm5, %v5414_v15, %v996_v58  ;;  %v1071_v63 = vadd.s32 %v5841_v57, %v5849_v33 }
 0x1b4   : > { %v1370_v42 = vsel %vm1360_vm10, %v1367_v49, %v1369_v4  ;;  %v1093_v3 = vshll.u32 %v1092_v14, 23  ;;  %v1282_v11 = vsel %vm1280_vm9, %v1281_v59, %v6179_v45  ;;  %v1374_v22 = vsel %vm1360_vm10, %v1371_v6, %v1373_v60 }
 0x1b5   : > { %v6269_v36 = vshll.u32 %v1335_v8, 8  ;;  %vm695_vm11 = vcmp.eq.s32.totalorder %v6046_v19, 0  ;;  %vm698_vm12 = vcmp.eq.s32.totalorder %v6046_v19, 2  ;;  %4849 = vsinq.f32 %v6169_v9 }
 0x1b6   : > { %v1187_v58 = vclz %v4371_v62  ;;  %v1278_v57 = vmul.u32 %v6162_v53, %v1262_v32  ;;  %v1441_v33 = vadd.s32 1, %v4382_v47  ;;  %v9402_v26 = vsub.s32 4, %v5833_v1 }
 0x1b7   : > { %v1089_v14 = vshrl.u32 %v1071_v63, %v1087_v27  ;;  %v6281_v51 = vmul.u32.u64.low %v6269_v36, %v1370_v42  ;;  %v6282_v17 = vmul.u32.u64.high %v6269_v36, %v1370_v42, %v6281_v51  ;;  %4851 = vcosq.f32 %v999_v52 }
 0x1b8   : > { %v998_v45 = vsel %vm913_vm3, %v9402_v26, %v5833_v1  ;;  %v6285_v61 = vadd.s32 %v1282_v11, %v1278_v57  ;;  %v6288_v9 = vmul.u32.u64.low %v6269_v36, %v1374_v22  ;;  %v6289_v38 = vmul.u32.u64.high %v6269_v36, %v1374_v22, %v6288_v9 }
 0x1b9   : > { %vm694_vm14 = vcmp.lt.s32.totalorder %v6046_v19, 2  ;;  %vm799_vm15 = vcmp.eq.s32.totalorder %v6140_v40, 0  ;;  %vm802_vm0 = vcmp.eq.s32.totalorder %v6140_v40, 2  ;;  %v896_v1 = vsel %vm6107_vm13, 0, %v6154_v56 }
 0x1ba   : > { %vm1017_vm1 = vcmp.lt.s32.totalorder %v5452_v48, 0  ;;  %v1088_v53 = vshll.u32 %v6018_v12, %v6146_v20  ;;  %v1094_v27 = vor.u32 4788187, %v1093_v3  ;;  %v699_v59 = vxor.u32 2147483648, %v6094_v0 }
 0x1bb   : > { %4853 = vsinq.f32 %v999_v52  ;;  %v9403_v8 = vand.u32 2147483647, %v5452_v48  ;;  %v4372_v4 = vadd.s32 4294967294, %v1187_v58  ;;  %vm1442_vm3 = vcmp.gt.s32.totalorder %v1441_v33, 0 }
 0x1bc   : > { %v696_v13 = vxor.u32 2147483648, %v6103_v31  ;;  %v1000_v56 = vsel %vm6200_vm5, 0, %v998_v45  ;;  %v1090_v62 = vor.u32 %v1089_v14, %v1088_v53  ;;  %v1364_v12 = vsel %vm1362_vm6, %v1352_v24, 2102212464 }
 0x1bd   : > { %vm6303_vm2 = vcmp.le.f32.partialorder %v9403_v8, 0.7853982  ;;  %vm691_vm13 = vweird.f32 %v9379_v25  ;;  %v900_v20 = vadd.s32 3, %v896_v1  ;;  %v1101_v6 = vsub.s32 4, %v5963_v41  ;;  %v4848_v24 = vpop.eup %4847 }
 0x1be   : > { %v1284_v37 = vadd.s32 536870912, %v6285_v61  ;;  %v1343_v32 = vshrl.u32 %v9351_v44, %v6164_v39  ;;  %vm798_vm4 = vcmp.lt.s32.totalorder %v6140_v40, 2  ;;  %v800_v60 = vxor.u32 2147483648, %v6225_v7 }
 0x1bf   : > { %v803_v21 = vxor.u32 2147483648, %v6213_v46  ;;  %v1095_v47 = vand.u32 2147483647, %v1094_v27  ;;  %v1443_v52 = vsel %vm1442_vm3, %v1441_v33, 0  ;;  %v1004_v63 = vadd.s32 3, %v1000_v56  ;;  %v4850_v57 = vpop.eup %4849 }
 0x1c0   : > { %vm4373_vm5 = vcmp.lt.s32.totalorder %v4372_v4, 0  ;;  %v1363_v42 = vsel %vm1359_vm7, %v1343_v32, %v6217_v23  ;;  %v1365_v39 = vsel %vm1361_vm8, %v6219_v50, %v1364_v12  ;;  %v697_v3 = vsel %vm695_vm11, %v6094_v0, %v696_v13 }
 0x1c1   : > { %v700_v11 = vsel %vm698_vm12, %v699_v59, %v6103_v31  ;;  %v1097_v22 = vcvt.s32.f32 %v1090_v62  ;;  %v1385_v58 = vadd.s32 1, %v6282_v17  ;;  %v1102_v23 = vsel %vm1017_vm1, %v1101_v6, %v5963_v41  ;;  %v6347_v14 = vpop.eup %4851 }
 0x1c2   : > { %v6337_v33 = vshrl.u32 %v1284_v37, 30  ;;  %vm1384_vm6 = vc.u32 %v6289_v38, %v6281_v51  ;;  %v1445_v50 = vand.u32 31, %v1443_v52  ;;  %v6341_v26 = vand.u32 3, %v900_v20 }
 0x1c3   : > { %v1098_v0 = vmul.f32 %v1097_v22, %v1095_v47  ;;  %v6343_v45 = vsel %vm4373_vm5, 0, %v4372_v4  ;;  %v1366_v31 = vsel %vm1360_vm10, %v1363_v42, %v1365_v39  ;;  %v701_v9 = vsel %vm694_vm14, %v697_v3, %v700_v11 }
 0x1c4   : > { %v801_v41 = vsel %vm799_vm15, %v6213_v46, %v800_v60  ;;  %v804_v1 = vsel %vm802_vm0, %v803_v21, %v6225_v7  ;;  %v6357_v53 = vand.u32 3, %v1004_v63  ;;  %v904_v27 = vxor.u32 2147483648, %v4850_v57 }
 0x1c5   : > { %v907_v59 = vxor.u32 2147483648, %v4848_v24  ;;  %v1104_v2 = vsel %vm6303_vm2, 0, %v1102_v23  ;;  %v1386_v8 = vsel %vm1384_vm6, %v1385_v58, %v6282_v17  ;;  %v6362_v4 = vpop.eup %4853  ;;  %v1195_v19 = vsub.s32 4294967266, %v6343_v45 }
 0x1c6   : > { %v1286_v13 = vshll.u32 %v6337_v33, 30  ;;  %v1382_v46 = vmul.u32 %v6269_v36, %v1366_v31  ;;  %v6367_v56 = vsub.s32 32, %v1445_v50  ;;  %v6371_v7 = vsel %vm691_vm13, nan, %v701_v9  ;;  %v9408_v9 = vld [vmem:[#allocation15_spill] sm:$0xff] }
 0x1c7   : > { %9406 = vst [vmem:[#allocation24_spill] sm:$0xff] %v6371_v7  ;;  %vm903_vm7 = vcmp.eq.s32.totalorder %v6341_v26, 0  ;;  %v1011_v62 = vxor.u32 2147483648, %v6347_v14  ;;  %v1099_v12 = vxor.u32 2147483648, %v1098_v0  ;;  %v6377_v17 = vsel %vm798_vm4, %v801_v41, %v804_v1 }
 0x1c8   : > { %vm906_vm8 = vcmp.eq.s32.totalorder %v6341_v26, 2  ;;  %vm1010_vm9 = vcmp.eq.s32.totalorder %v6357_v53, 2  ;;  %v6381_v36 = vadd.s32 %v1386_v8, %v1382_v46  ;;  %v6383_v20 = vsel %vm903_vm7, %v4848_v24, %v904_v27 }
 0x1c9   : > { %v6385_v25 = vsel %vm906_vm8, %v907_v59, %v4850_v57  ;;  %v1008_v6 = vxor.u32 2147483648, %v6362_v4  ;;  %v6388_v37 = vadd.s32 3, %v1104_v2  ;;  %v1175_v32 = vadd.s32 %v5998_v35, %v6008_v28 }
 0x1ca   : > { %v1196_v40 = vadd.s32 127, %v1195_v19  ;;  %v6393_v60 = vsub.s32 %v6285_v61, %v1286_v13  ;;  %v1458_v21 = vshrl.u32 %v9339_v54, %v6367_v56  ;;  %v6398_v47 = vsel %vm1010_vm9, %v1011_v62, %v6362_v4 }
 0x1cb   : > { %v1100_v24 = vsel %vm1017_vm1, %v1099_v12, %v1098_v0  ;;  %v9294_v63 = vand.u32 2147483647, %v5696_v55  ;;  %v1461_v42 = vshrl.u32 %v9342_v30, %v6367_v56  ;;  %v1191_v35 = vsub.s32 32, %v6343_v45  ;;  %v9407_v0 = vld [vmem:[#allocation21_spill] sm:$0xff] }
 0x1cc   : > { %v1388_v28 = vadd.s32 536870912, %v6381_v36  ;;  %v6407_v61 = vshrl.u32 %v1443_v52, 5  ;;  %v1457_v39 = vshll.u32 %v9341_v10, %v1445_v50  ;;  %v1449_v3 = vshrl.u32 %v9357_v43, %v6367_v56 }
 0x1cd   : > { %v1452_v11 = vshrl.u32 %v9349_v29, %v6367_v56  ;;  %v1455_v22 = vshrl.u32 %v9341_v10, %v6367_v56  ;;  %v1460_v58 = vshll.u32 %v9339_v54, %v1445_v50  ;;  %vm1007_vm10 = vcmp.eq.s32.totalorder %v6357_v53, 0 }
 0x1ce   : > { %v1197_v57 = vshll.u32 %v1196_v40, 23  ;;  %v1289_v23 = vsub.s32 0, %v6393_v60  ;;  %v1459_v52 = vor.u32 %v1458_v21, %v1457_v39  ;;  %v1538_v31 = vand.u32 2139095040, %v9407_v0 }
 0x1cf   : > { %vm1121_vm11 = vcmp.lt.s32.totalorder %v9408_v9, 0  ;;  %v1448_v41 = vshll.u32 %v9351_v44, %v1445_v50  ;;  %v1451_v1 = vshll.u32 %v9357_v43, %v1445_v50  ;;  %v1454_v27 = vshll.u32 %v9349_v29, %v1445_v50 }
 0x1d0   : > { %v1462_v59 = vor.u32 %v1461_v42, %v1460_v58  ;;  %v1193_v2 = vshrl.u32 %v1175_v32, %v1191_v35  ;;  %v6424_v8 = vshrl.u32 %v1388_v28, 30  ;;  %v1438_v4 = vand.u32 8388607, %v9294_v63  ;;  %v9409_v42 = vld [vmem:[#allocation20_spill] sm:$0xff] }
 0x1d1   : > { %v1539_v19 = vshrl.u32 %v1538_v31, 23  ;;  %v1450_v13 = vor.u32 %v1449_v3, %v1448_v41  ;;  %v1453_v46 = vor.u32 %v1452_v11, %v1451_v1  ;;  %v1456_v62 = vor.u32 %v1455_v22, %v1454_v27 }
 0x1d2   : > { %vm1466_vm12 = vcmp.lt.s32.totalorder %v6407_v61, 4  ;;  %v1192_v12 = vshll.u32 %v6191_v18, %v6343_v45  ;;  %v1198_v40 = vor.u32 4788187, %v1197_v57  ;;  %v1103_v32 = vsel %vm6303_vm2, %v5452_v48, %v1100_v24 }
 0x1d3   : > { %v1472_v50 = vsel %vm1466_vm12, %v1459_v52, 920167782  ;;  %v4386_v21 = vadd.s32 4294967169, %v1539_v19  ;;  %v1205_v35 = vsub.s32 4, %v9409_v42  ;;  %v4375_v28 = vmin.u32 %v1289_v23, %v6393_v60 }
 0x1d4   : > { %v1476_v39 = vsel %vm1466_vm12, %v1462_v59, 1326507024  ;;  %v1194_v3 = vor.u32 %v1193_v2, %v1192_v12  ;;  %vm1463_vm14 = vcmp.lt.s32.totalorder %v6407_v61, 1  ;;  %vm1465_vm15 = vcmp.lt.s32.totalorder %v6407_v61, 3 }
 0x1d5   : > { %v1545_v18 = vadd.s32 1, %v4386_v21  ;;  %v1390_v45 = vshll.u32 %v6424_v8, 30  ;;  %v1439_v11 = vor.u32 8388608, %v1438_v4  ;;  %v1471_v49 = vsel %vm1463_vm14, %v1450_v13, %v1453_v46 }
 0x1d6   : > { %v1473_v24 = vsel %vm1465_vm15, %v1456_v62, %v1472_v50  ;;  %v1199_v22 = vand.u32 2147483647, %v1198_v40  ;;  %v1475_v58 = vsel %vm1463_vm14, %v1453_v46, %v1456_v62  ;;  %v1477_v57 = vsel %vm1465_vm15, %v1459_v52, %v1476_v39 }
 0x1d7   : > { %vm1546_vm0 = vcmp.gt.s32.totalorder %v1545_v18, 0  ;;  %v6454_v23 = vsel %vm1007_vm10, %v6347_v14, %v1008_v6  ;;  %v1291_v31 = vclz %v4375_v28  ;;  %vm1464_vm1 = vcmp.lt.s32.totalorder %v6407_v61, 2  ;;  %v9412_v28 = vld [vmem:[#allocation25_spill] sm:$0xff] }
 0x1d8   : > { %v1547_v41 = vsel %vm1546_vm0, %v1545_v18, 0  ;;  %v1201_v1 = vcvt.s32.f32 %v1194_v3  ;;  %v6460_v27 = vsel %vm1121_vm11, %v1205_v35, %v9409_v42  ;;  %v1474_v59 = vsel %vm1464_vm1, %v1471_v49, %v1473_v24  ;;  %v9417_v61 = vld [vmem:[#allocation9_spill] sm:$0xff] }
 0x1d9   : > { %v1549_v52 = vand.u32 31, %v1547_v41  ;;  %4855 = vcosq.f32 %v1103_v32  ;;  %v6465_v2 = vsub.s32 %v6381_v36, %v1390_v45  ;;  %v1478_v14 = vsel %vm1464_vm1, %v1475_v58, %v1477_v57 }
 0x1da   : > { %v6469_v6 = vshll.u32 %v1439_v11, 8  ;;  %4857 = vsinq.f32 %v1103_v32  ;;  %v6471_v4 = vmul.f32 %v1201_v1, %v1199_v22  ;;  %v9293_v19 = vand.u32 2147483647, %v9407_v0 }
 0x1db   : > { %v6474_v12 = vsub.s32 32, %v1549_v52  ;;  %v6476_v40 = vadd.s32 4294967294, %v1291_v31  ;;  %v1447_v50 = vshrl.u32 %v9351_v44, %v6367_v56  ;;  %v1642_v39 = vand.u32 2139095040, %v9412_v28 }
 0x1dc   : > { %v6481_v36 = vmul.u32.u64.low %v6469_v6, %v1474_v59  ;;  %v6482_v21 = vmul.u32.u64.high %v6469_v6, %v1474_v59, %v6481_v36  ;;  %v6486_v42 = vmul.u32.u64.low %v6469_v6, %v1478_v14  ;;  %v6487_v35 = vmul.u32.u64.high %v6469_v6, %v1478_v14, %v6486_v42 }
 0x1dd   : > { %v1553_v32 = vshrl.u32 %v9357_v43, %v6474_v12  ;;  %v1393_v3 = vsub.s32 0, %v6465_v2  ;;  %v1468_v18 = vsel %vm1466_vm12, %v1456_v62, 2102212464  ;;  %v1556_v56 = vshrl.u32 %v9349_v29, %v6474_v12 }
 0x1de   : > { %9410 = vst [vmem:[#allocation15_spill] sm:$0xff] %v6481_v36  ;;  %9411 = vst [vmem:[#allocation20_spill] sm:$0xff] %v6487_v35  ;;  %v1559_v45 = vshrl.u32 %v9341_v10, %v6474_v12  ;;  %v1542_v11 = vand.u32 8388607, %v9293_v19  ;;  %v1552_v49 = vshll.u32 %v9351_v44, %v1549_v52  ;;  %v1555_v24 = vshll.u32 %v9357_v43, %v1549_v52 }
 0x1df   : > { %v1562_v22 = vshrl.u32 %v9339_v54, %v6474_v12  ;;  %v1467_v58 = vsel %vm1463_vm14, %v1447_v50, %v1450_v13  ;;  %v6507_v62 = vshrl.u32 %v1547_v41, 5  ;;  %v1558_v57 = vshll.u32 %v9349_v29, %v1549_v52 }
 0x1e0   : > { %v1561_v31 = vshll.u32 %v9341_v10, %v1549_v52  ;;  %v1469_v1 = vsel %vm1465_vm15, %v1453_v46, %v1468_v18  ;;  %v1554_v59 = vor.u32 %v1553_v32, %v1552_v49  ;;  %v1557_v14 = vor.u32 %v1556_v56, %v1555_v24  ;;  %v9416_v49 = vld [vmem:[#allocation8_spill] sm:$0xff] }
 0x1e1   : > { %v1643_v42 = vshrl.u32 %v1642_v39, 23  ;;  %v1560_v19 = vor.u32 %v1559_v45, %v1558_v57  ;;  %v1564_v7 = vshll.u32 %v9339_v54, %v1549_v52  ;;  %v1565_v0 = vshrl.u32 %v9342_v30, %v6474_v12 }
 0x1e2   : > { %v1563_v63 = vor.u32 %v1562_v22, %v1561_v31  ;;  %vm902_vm2 = vcmp.lt.s32.totalorder %v6341_v26, 2  ;;  %vm1006_vm3 = vcmp.lt.s32.totalorder %v6357_v53, 2  ;;  %v1203_v13 = vxor.u32 2147483648, %v6471_v4 }
 0x1e3   : > { %vm4377_vm13 = vcmp.lt.s32.totalorder %v6476_v40, 0  ;;  %v4379_v46 = vmin.u32 %v1393_v3, %v6465_v2  ;;  %v1543_v41 = vor.u32 8388608, %v1542_v11  ;;  %v6521_v50 = vpop.eup %4855  ;;  %v9413_v32 = vand.u32 2147483647, %v9408_v9 }
 0x1e4   : > { %v1470_v39 = vsel %vm1464_vm1, %v1467_v58, %v1469_v1  ;;  %v1489_v18 = vadd.s32 1, %v6482_v21  ;;  %v1566_v56 = vor.u32 %v1565_v0, %v1564_v7  ;;  %vm1567_vm5 = vcmp.lt.s32.totalorder %v6507_v62, 1  ;;  %v6533_v45 = vpop.eup %4857 }
 0x1e5   : > { %vm6525_vm4 = vcmp.le.f32.partialorder %v9413_v32, 0.7853982  ;;  %vm1488_vm6 = vc.u32 %v6487_v35, %v6481_v36  ;;  %vm1570_vm7 = vcmp.lt.s32.totalorder %v6507_v62, 4  ;;  %v1575_v3 = vsel %vm1567_vm5, %v1554_v59, %v1557_v14 }
 0x1e6   : > { %v4390_v11 = vadd.s32 4294967169, %v1643_v42  ;;  %vm795_vm8 = vweird.f32 %v9416_v49  ;;  %vm899_vm9 = vweird.f32 %v9417_v61  ;;  %vm1569_vm10 = vcmp.lt.s32.totalorder %v6507_v62, 3 }
 0x1e7   : > { %v1576_v7 = vsel %vm1570_vm7, %v1563_v63, 920167782  ;;  %v1579_v0 = vsel %vm1567_vm5, %v1557_v14, %v1560_v19  ;;  %v1580_v24 = vsel %vm1570_vm7, %v1566_v56, 1326507024  ;;  %vm1568_vm12 = vcmp.lt.s32.totalorder %v6507_v62, 2 }
 0x1e8   : > { %v1577_v22 = vsel %vm1569_vm10, %v1560_v19, %v1576_v7  ;;  %v1581_v58 = vsel %vm1569_vm10, %v1563_v63, %v1580_v24  ;;  %v1583_v57 = vshll.u32 %v1543_v41, 8  ;;  %vm1003_vm14 = vweird.f32 %v5414_v15 }
 0x1e9   : > { %v1490_v31 = vsel %vm1488_vm6, %v1489_v18, %v6482_v21  ;;  %v1572_v1 = vsel %vm1570_vm7, %v1560_v19, 2102212464  ;;  %v1578_v42 = vsel %vm1568_vm12, %v1575_v3, %v1577_v22  ;;  %v1582_v32 = vsel %vm1568_vm12, %v1579_v0, %v1581_v58 }
 0x1ea   : > { %v1395_v56 = vclz %v4379_v46  ;;  %v1486_v55 = vmul.u32 %v6469_v6, %v1470_v39  ;;  %v1551_v7 = vshrl.u32 %v9351_v44, %v6474_v12  ;;  %v1649_v36 = vadd.s32 1, %v4390_v11 }
 0x1eb   : > { %v6559_v63 = vmul.u32.u64.low %v1583_v57, %v1582_v32  ;;  %v6560_v41 = vmul.u32.u64.high %v1583_v57, %v1582_v32, %v6559_v63  ;;  %v6562_v24 = vmul.u32.u64.low %v1583_v57, %v1578_v42  ;;  %v6563_v35 = vmul.u32.u64.high %v1583_v57, %v1578_v42, %v6562_v24 }
 0x1ec   : > { %v6566_v19 = vadd.s32 %v1490_v31, %v1486_v55  ;;  %v1571_v21 = vsel %vm1567_vm5, %v1551_v7, %v1554_v59  ;;  %v1573_v46 = vsel %vm1569_vm10, %v1557_v14, %v1572_v1  ;;  %vm1650_vm15 = vcmp.gt.s32.totalorder %v1649_v36, 0 }
 0x1ed   : > { %v909_v6 = vsel %vm902_vm2, %v6383_v20, %v6385_v25  ;;  %v1013_v12 = vsel %vm1006_vm3, %v6454_v23, %v6398_v47  ;;  %v6581_v55 = vand.u32 3, %v6388_v37  ;;  %v1651_v39 = vsel %vm1650_vm15, %v1649_v36, 0 }
 0x1ee   : > { %v1115_v59 = vxor.u32 2147483648, %v6521_v50  ;;  %v1204_v14 = vsel %vm1121_vm11, %v1203_v13, %v6471_v4  ;;  %v1208_v26 = vsel %vm6525_vm4, 0, %v6460_v27  ;;  %v6593_v20 = vsel %vm4377_vm13, 0, %v6476_v40 }
 0x1ef   : > { %v4380_v53 = vadd.s32 4294967294, %v1395_v56  ;;  %v1574_v25 = vsel %vm1568_vm12, %v1571_v21, %v1573_v46  ;;  %vm1592_vm0 = vc.u32 %v6560_v41, %v6562_v24  ;;  %v1593_v37 = vadd.s32 1, %v6563_v35 }
 0x1f0   : > { %v6603_v47 = vsel %vm795_vm8, nan, %v6377_v17  ;;  %v6607_v23 = vsel %vm899_vm9, nan, %v909_v6  ;;  %v1492_v27 = vadd.s32 536870912, %v6566_v19  ;;  %v1653_v4 = vand.u32 31, %v1651_v39 }
 0x1f1   : > { %9418 = vst [vmem:[#allocation25_spill] sm:$0xff] %v6607_v23  ;;  %vm1114_vm11 = vcmp.eq.s32.totalorder %v6581_v55, 2  ;;  %v1207_v40 = vsel %vm6525_vm4, %v9408_v9, %v1204_v14  ;;  %v1299_v36 = vsub.s32 4294967266, %v6593_v20  ;;  %v1594_v62 = vsel %vm1592_vm0, %v1593_v37, %v6563_v35  ;;  %v9420_v35 = vld [vmem:[#allocation17_spill] sm:$0xff] }
 0x1f2   : > { %v6618_v17 = vsel %vm1003_vm14, nan, %v1013_v12  ;;  %v6620_v13 = vadd.s32 3, %v1208_v26  ;;  %v1590_v18 = vmul.u32 %v1583_v57, %v1574_v25  ;;  %v6622_v3 = vsub.s32 32, %v1653_v4 }
 0x1f3   : > { %9419 = vst [vmem:[#allocation8_spill] sm:$0xff] %v6618_v17  ;;  %v1112_v11 = vxor.u32 2147483648, %v6533_v45  ;;  %v1116_v49 = vsel %vm1114_vm11, %v1115_v59, %v6533_v45  ;;  %v1279_v52 = vadd.s32 %v6178_v16, %v6175_v34  ;;  %vm4381_vm1 = vcmp.lt.s32.totalorder %v4380_v53, 0 }
 0x1f4   : > { %vm1111_vm2 = vcmp.eq.s32.totalorder %v6581_v55, 0  ;;  %4859 = vcosq.f32 %v1207_v40  ;;  %vm1225_vm3 = vcmp.lt.s32.totalorder %v9420_v35, 0  ;;  %v1309_v15 = vsub.s32 4, %v6337_v33 }
 0x1f5   : > { %v6631_v61 = vshrl.u32 %v1492_v27, 30  ;;  %v6633_v0 = vadd.s32 %v1594_v62, %v1590_v18  ;;  %v1295_v22 = vsub.s32 32, %v6593_v20  ;;  %v1300_v58 = vadd.s32 127, %v1299_v36 }
 0x1f6   : > { %v9303_v45 = vand.u32 2147483647, %v9412_v28  ;;  %v1666_v34 = vshrl.u32 %v9339_v54, %v6622_v3  ;;  %v6639_v16 = vsel %vm4381_vm1, 0, %v4380_v53  ;;  %v6641_v57 = vshrl.u32 %v1651_v39, 5 }
 0x1f7   : > { %v1657_v31 = vshrl.u32 %v9357_v43, %v6622_v3  ;;  %v1665_v1 = vshll.u32 %v9341_v10, %v1653_v4  ;;  %v1660_v42 = vshrl.u32 %v9349_v29, %v6622_v3  ;;  %v1663_v32 = vshrl.u32 %v9341_v10, %v6622_v3 }
 0x1f8   : > { %v1668_v56 = vshll.u32 %v9339_v54, %v1653_v4  ;;  %v1669_v7 = vshrl.u32 %v9342_v30, %v6622_v3  ;;  %vm1110_vm13 = vcmp.lt.s32.totalorder %v6581_v55, 2  ;;  %4861 = vsinq.f32 %v1207_v40 }
 0x1f9   : > { %v1494_v63 = vshll.u32 %v6631_v61, 30  ;;  %v1596_v21 = vadd.s32 536870912, %v6633_v0  ;;  %v1667_v46 = vor.u32 %v1666_v34, %v1665_v1  ;;  %v9421_v6 = vand.u32 2147483647, %v9420_v35 }
 0x1fa   : > { %v1656_v39 = vshll.u32 %v9351_v44, %v1653_v4  ;;  %v1659_v59 = vshll.u32 %v9357_v43, %v1653_v4  ;;  %v1662_v14 = vshll.u32 %v9349_v29, %v1653_v4  ;;  %v1670_v26 = vor.u32 %v1669_v7, %v1668_v56 }
 0x1fb   : > { %vm6658_vm4 = vcmp.le.f32.partialorder %v9421_v6, 0.7853982  ;;  %v1297_v53 = vshrl.u32 %v1279_v52, %v1295_v22  ;;  %v1301_v25 = vshll.u32 %v1300_v58, 23  ;;  %v1403_v37 = vsub.s32 4294967266, %v6639_v16 }
 0x1fc   : > { %v1646_v27 = vand.u32 8388607, %v9303_v45  ;;  %v6668_v40 = vor.u32 %v1657_v31, %v1656_v39  ;;  %v6670_v36 = vor.u32 %v1660_v42, %v1659_v59  ;;  %v1664_v62 = vor.u32 %v1663_v32, %v1662_v14 }
 0x1fd   : > { %vm1674_vm5 = vcmp.lt.s32.totalorder %v6641_v57, 4  ;;  %v1296_v18 = vshll.u32 %v6393_v60, %v6593_v20  ;;  %v6676_v4 = vsub.s32 %v6566_v19, %v1494_v63  ;;  %v6678_v52 = vshrl.u32 %v1596_v21, 30  ;;  %v9424_v60 = vld [vmem:[#allocation32_spill] sm:$0xff] }
 0x1fe   : > { %v1680_v22 = vsel %vm1674_vm5, %v1667_v46, 920167782  ;;  %v1113_v58 = vsel %vm1111_vm2, %v6521_v50, %v1112_v11  ;;  %v1310_v34 = vsel %vm1225_vm3, %v1309_v15, %v6337_v33  ;;  %v1684_v31 = vsel %vm1674_vm5, %v1670_v26, 1326507024  ;;  %v4860_v19 = vpop.eup %4859 }
 0x1ff   : > { %v1746_v20 = vand.u32 2139095040, %v9424_v60  ;;  %v1298_v1 = vor.u32 %v1297_v53, %v1296_v18  ;;  %v1302_v42 = vor.u32 4788187, %v1301_v25  ;;  %vm1671_vm6 = vcmp.lt.s32.totalorder %v6641_v57, 1 }
 0x200   : > { %vm1673_vm7 = vcmp.lt.s32.totalorder %v6641_v57, 3  ;;  %v1404_v32 = vadd.s32 127, %v1403_v37  ;;  %v1647_v56 = vor.u32 8388608, %v1646_v27  ;;  %v1679_v50 = vsel %vm1671_vm6, %v6668_v40, %v6670_v36 }
 0x201   : > { %v1681_v33 = vsel %vm1673_vm7, %v1664_v62, %v1680_v22  ;;  %vm1107_vm8 = vweird.f32 %v5452_v48  ;;  %v1497_v11 = vsub.s32 0, %v6676_v4  ;;  %v1598_v15 = vshll.u32 %v6678_v52, 30 }
 0x202   : > { %v1683_v7 = vsel %vm1671_vm6, %v6670_v36, %v1664_v62  ;;  %v1685_v63 = vsel %vm1673_vm7, %v1667_v46, %v1684_v31  ;;  %v1117_v21 = vsel %vm1110_vm13, %v1113_v58, %v1116_v49  ;;  %v1213_v6 = vand.u32 3, %v6620_v13  ;;  %v4862_v59 = vpop.eup %4861 }
 0x203   : > { %vm1672_vm9 = vcmp.lt.s32.totalorder %v6641_v57, 2  ;;  %v1747_v39 = vshrl.u32 %v1746_v20, 23  ;;  %v1303_v14 = vand.u32 2147483647, %v1302_v42  ;;  %v1312_v26 = vsel %vm6658_vm4, 0, %v1310_v34 }
 0x204   : > { %v1399_v53 = vsub.s32 32, %v6639_v16  ;;  %v1682_v25 = vsel %vm1672_vm9, %v1679_v50, %v1681_v33  ;;  %vm1329_vm10 = vcmp.lt.s32.totalorder %v9391_v5, 0  ;;  %v1383_v55 = vadd.s32 %v6281_v51, %v6289_v38 }
 0x205   : > { %v1686_v13 = vsel %vm1672_vm9, %v1683_v7, %v1685_v63  ;;  %v6721_v49 = vshll.u32 %v1647_v56, 8  ;;  %v4394_v46 = vadd.s32 4294967169, %v1747_v39  ;;  %v1305_v37 = vcvt.s32.f32 %v1298_v1 }
 0x206   : > { %v1405_v27 = vshll.u32 %v1404_v32, 23  ;;  %v4383_v18 = vmin.u32 %v1497_v11, %v6676_v4  ;;  %v6725_v22 = vsub.s32 %v6633_v0, %v1598_v15  ;;  %v1216_v58 = vxor.u32 2147483648, %v4862_v59 }
 0x207   : > { %v1219_v34 = vxor.u32 2147483648, %v4860_v19  ;;  %v6728_v31 = vmul.u32.u64.low %v6721_v49, %v1682_v25  ;;  %v6729_v20 = vmul.u32.u64.high %v6721_v49, %v1682_v25, %v6728_v31  ;;  %vm1214_vm12 = vcmp.lt.s32.totalorder %v1213_v6, 2 }
 0x208   : > { %v1306_v51 = vmul.f32 %v1305_v37, %v1303_v14  ;;  %v9425_v38 = vand.u32 2147483647, %v9391_v5  ;;  %v1401_v1 = vshrl.u32 %v1383_v55, %v1399_v53  ;;  %v1400_v56 = vshll.u32 %v6465_v2, %v6639_v16 }
 0x209   : > { %v6739_v32 = vmul.u32.u64.low %v6721_v49, %v1686_v13  ;;  %v6740_v0 = vmul.u32.u64.high %v6721_v49, %v1686_v13, %v6739_v32  ;;  %v1413_v50 = vsub.s32 4, %v6424_v8  ;;  %v1676_v33 = vsel %vm1674_vm5, %v1664_v62, 2102212464 }
 0x20a   : > { %vm6734_vm14 = vcmp.le.f32.partialorder %v9425_v38, 0.7853982  ;;  %v1753_v11 = vadd.s32 1, %v4394_v46  ;;  %v1406_v15 = vor.u32 4788187, %v1405_v27  ;;  %v1499_v7 = vclz %v4383_v18  ;;  %v9429_v18 = vld [vmem:[#allocation5_spill] sm:$0xff] }
 0x20b   : > { %v1601_v63 = vsub.s32 0, %v6725_v22  ;;  %v1655_v39 = vshrl.u32 %v9351_v44, %v6622_v3  ;;  %v6752_v14 = vsel %vm1107_vm8, nan, %v1117_v21  ;;  %vm1215_vm15 = vcmp.eq.s32.totalorder %v1213_v6, 0 }
 0x20c   : > { %9428 = vst [vmem:[#allocation9_spill] sm:$0xff] %v6752_v14  ;;  %vm1218_vm0 = vcmp.eq.s32.totalorder %v1213_v6, 2  ;;  %vm1754_vm11 = vcmp.gt.s32.totalorder %v1753_v11, 0  ;;  %v1316_v2 = vadd.s32 3, %v1312_v26  ;;  %v1402_v16 = vor.u32 %v1401_v1, %v1400_v56 }
 0x20d   : > { %v1675_v62 = vsel %vm1671_vm6, %v1655_v39, %v6668_v40  ;;  %v1677_v53 = vsel %vm1673_vm7, %v6670_v36, %v1676_v33  ;;  %v1217_v25 = vsel %vm1215_vm15, %v4860_v19, %v1216_v58  ;;  %v1220_v55 = vsel %vm1218_vm0, %v1219_v34, %v4862_v59 }
 0x20e   : > { %v1307_v3 = vxor.u32 2147483648, %v1306_v51  ;;  %v1755_v13 = vsel %vm1754_vm11, %v1753_v11, 0  ;;  %v1407_v48 = vand.u32 2147483647, %v1406_v15  ;;  %v1414_v21 = vsel %vm1329_vm10, %v1413_v50, %v6424_v8 }
 0x20f   : > { %v4384_v46 = vadd.s32 4294967294, %v1499_v7  ;;  %v4387_v26 = vmin.u32 %v1601_v63, %v6725_v22  ;;  %v1678_v37 = vsel %vm1672_vm9, %v1675_v62, %v1677_v53  ;;  %v1697_v40 = vadd.s32 1, %v6729_v20 }
 0x210   : > { %v9302_v27 = vand.u32 2147483647, %v9424_v60  ;;  %v1757_v36 = vand.u32 31, %v1755_v13  ;;  %v6768_v19 = vand.u32 3, %v1316_v2  ;;  %v1409_v59 = vcvt.s32.f32 %v1402_v16 }
 0x211   : > { %vm1696_vm1 = vc.u32 %v6740_v0, %v6728_v31  ;;  %v1850_v58 = vand.u32 2139095040, %v9429_v18  ;;  %v6774_v8 = vsel %vm1214_vm12, %v1217_v25, %v1220_v55  ;;  %v1308_v57 = vsel %vm1225_vm3, %v1307_v3, %v1306_v51 }
 0x212   : > { %v1416_v34 = vsel %vm6734_vm14, 0, %v1414_v21  ;;  %v6780_v38 = vsub.s32 32, %v1757_v36  ;;  %v1410_v1 = vmul.f32 %v1409_v59, %v1407_v48  ;;  %vm4385_vm2 = vcmp.lt.s32.totalorder %v4384_v46, 0 }
 0x213   : > { %v1603_v32 = vclz %v4387_v26  ;;  %v1694_v56 = vmul.u32 %v6721_v49, %v1678_v37  ;;  %v1698_v50 = vsel %vm1696_vm1, %v1697_v40, %v6729_v20  ;;  %v1750_v6 = vand.u32 8388607, %v9302_v27 }
 0x214   : > { %v1761_v33 = vshrl.u32 %v9357_v43, %v6780_v38  ;;  %v1764_v51 = vshrl.u32 %v9349_v29, %v6780_v38  ;;  %v1760_v11 = vshll.u32 %v9351_v44, %v1757_v36  ;;  %v1763_v15 = vshll.u32 %v9357_v43, %v1757_v36 }
 0x215   : > { %v1767_v7 = vshrl.u32 %v9341_v10, %v6780_v38  ;;  %v1851_v63 = vshrl.u32 %v1850_v58, 23  ;;  %v6794_v49 = vshrl.u32 %v1755_v13, 5  ;;  %v1766_v20 = vshll.u32 %v9349_v29, %v1757_v36 }
 0x216   : > { %v1769_v39 = vshll.u32 %v9341_v10, %v1757_v36  ;;  %v1770_v2 = vshrl.u32 %v9339_v54, %v6780_v38  ;;  %v6800_v16 = vsel %vm4385_vm2, 0, %v4384_v46  ;;  %v6802_v62 = vadd.s32 %v1698_v50, %v1694_v56 }
 0x217   : > { %v1762_v53 = vor.u32 %v1761_v33, %v1760_v11  ;;  %v1765_v25 = vor.u32 %v1764_v51, %v1763_v15  ;;  %v1768_v55 = vor.u32 %v1767_v7, %v1766_v20  ;;  %v1772_v48 = vshll.u32 %v9339_v54, %v1757_v36 }
 0x218   : > { %v1771_v3 = vor.u32 %v1770_v2, %v1769_v39  ;;  %v1773_v13 = vshrl.u32 %v9342_v30, %v6780_v38  ;;  %v1311_v21 = vsel %vm6658_vm4, %v9420_v35, %v1308_v57  ;;  %v1411_v26 = vxor.u32 2147483648, %v1410_v1 }
 0x219   : > { %v1420_v37 = vadd.s32 3, %v1416_v34  ;;  %v4398_v40 = vadd.s32 4294967169, %v1851_v63  ;;  %v4388_v46 = vadd.s32 4294967294, %v1603_v32  ;;  %v1751_v59 = vor.u32 8388608, %v1750_v6 }
 0x21a   : > { %v1774_v58 = vor.u32 %v1773_v13, %v1772_v48  ;;  %vm1775_vm3 = vcmp.lt.s32.totalorder %v6794_v49, 1  ;;  %v1507_v56 = vsub.s32 4294967266, %v6800_v16  ;;  %v1700_v50 = vadd.s32 536870912, %v6802_v62 }
 0x21b   : > { %vm1778_vm13 = vcmp.lt.s32.totalorder %v6794_v49, 4  ;;  %v1783_v36 = vsel %vm1775_vm3, %v1762_v53, %v1765_v25  ;;  %vm1777_vm5 = vcmp.lt.s32.totalorder %v6794_v49, 3  ;;  %v1787_v57 = vsel %vm1775_vm3, %v1765_v25, %v1768_v55 }
 0x21c   : > { %v1784_v12 = vsel %vm1778_vm13, %v1771_v3, 920167782  ;;  %v1788_v34 = vsel %vm1778_vm13, %v1774_v58, 1326507024  ;;  %vm1211_vm4 = vweird.f32 %v9408_v9  ;;  %vm1776_vm6 = vcmp.lt.s32.totalorder %v6794_v49, 2  ;;  %v9431_v58 = vld [vmem:[#allocation15_spill] sm:$0xff] }
 0x21d   : > { %v1785_v32 = vsel %vm1777_vm5, %v1768_v55, %v1784_v12  ;;  %v1789_v6 = vsel %vm1777_vm5, %v1771_v3, %v1788_v34  ;;  %v1857_v33 = vadd.s32 1, %v4398_v40  ;;  %vm4389_vm7 = vcmp.lt.s32.totalorder %v4388_v46, 0  ;;  %v9430_v40 = vld [vmem:[#allocation20_spill] sm:$0xff] }
 0x21e   : > { %v1786_v51 = vsel %vm1776_vm6, %v1783_v36, %v1785_v32  ;;  %v1790_v11 = vsel %vm1776_vm6, %v1787_v57, %v1789_v6  ;;  %v1791_v15 = vshll.u32 %v1751_v59, 8  ;;  %v1412_v7 = vsel %vm1329_vm10, %v1411_v26, %v1410_v1 }
 0x21f   : > { %v1503_v63 = vsub.s32 32, %v6800_v16  ;;  %v1508_v20 = vadd.s32 127, %v1507_v56  ;;  %v6836_v39 = vshrl.u32 %v1700_v50, 30  ;;  %4863 = vcosq.f32 %v1311_v21 }
 0x220   : > { %v6838_v2 = vmul.u32.u64.low %v1791_v15, %v1790_v11  ;;  %v6839_v48 = vmul.u32.u64.high %v1791_v15, %v1790_v11, %v6838_v2  ;;  %v6841_v3 = vmul.u32.u64.low %v1791_v15, %v1786_v51  ;;  %v6842_v13 = vmul.u32.u64.high %v1791_v15, %v1786_v51, %v6841_v3 }
 0x221   : > { %v1487_v36 = vadd.s32 %v9431_v58, %v9430_v40  ;;  %v6847_v59 = vsel %vm4389_vm7, 0, %v4388_v46  ;;  %vm1858_vm8 = vcmp.gt.s32.totalorder %v1857_v33, 0  ;;  %4865 = vsinq.f32 %v1311_v21 }
 0x222   : > { %v1415_v1 = vsel %vm6734_vm14, %v9391_v5, %v1412_v7  ;;  %v1780_v26 = vsel %vm1778_vm13, %v1768_v55, 2102212464  ;;  %v1859_v56 = vsel %vm1858_vm8, %v1857_v33, 0  ;;  %v1509_v12 = vshll.u32 %v1508_v20, 23 }
 0x223   : > { %v1505_v50 = vshrl.u32 %v1487_v36, %v1503_v63  ;;  %v1759_v57 = vshrl.u32 %v9351_v44, %v6780_v38  ;;  %v1861_v34 = vand.u32 31, %v1859_v56  ;;  %v1504_v46 = vshll.u32 %v6676_v4, %v6800_v16 }
 0x224   : > { %v1611_v32 = vsub.s32 4294967266, %v6847_v59  ;;  %v1702_v21 = vshll.u32 %v6836_v39, 30  ;;  %v9301_v42 = vand.u32 2147483647, %v9429_v18  ;;  %v1781_v55 = vsel %vm1777_vm5, %v1765_v25, %v1780_v26 }
 0x225   : > { %v1779_v6 = vsel %vm1775_vm3, %v1759_v57, %v1762_v53  ;;  %v1801_v33 = vadd.s32 1, %v6842_v13  ;;  %v6866_v51 = vsub.s32 32, %v1861_v34  ;;  %v6871_v4 = vsel %vm1211_vm4, nan, %v6774_v8 }
 0x226   : > { %9432 = vst [vmem:[#allocation17_spill] sm:$0xff] %v6871_v4  ;;  %4867 = vcosq.f32 %v1415_v1  ;;  %v6873_v38 = vand.u32 3, %v1420_v37  ;;  %vm1800_vm9 = vc.u32 %v6839_v48, %v6841_v3  ;;  %v6877_v16 = vor.u32 %v1505_v50, %v1504_v46 }
 0x227   : > { %4869 = vsinq.f32 %v1415_v1  ;;  %v6879_v53 = vor.u32 4788187, %v1509_v12  ;;  %v1517_v25 = vsub.s32 4, %v6631_v61  ;;  %v1782_v11 = vsel %vm1776_vm6, %v1779_v6, %v1781_v55 }
 0x228   : > { %v1854_v9 = vand.u32 8388607, %v9301_v42  ;;  %v1865_v8 = vshrl.u32 %v9357_v43, %v6866_v51  ;;  %v1868_v37 = vshrl.u32 %v9349_v29, %v6866_v51  ;;  %v1607_v7 = vsub.s32 32, %v6847_v59 }
 0x229   : > { %v1612_v63 = vadd.s32 127, %v1611_v32  ;;  %v6892_v20 = vsub.s32 %v6802_v62, %v1702_v21  ;;  %v1802_v2 = vsel %vm1800_vm9, %v1801_v33, %v6842_v13  ;;  %v1864_v49 = vshll.u32 %v9351_v44, %v1861_v34  ;;  %v6901_v1 = vpop.eup %4863  ;;  %v9433_v33 = vld [vmem:[#allocation26_spill] sm:$0xff] }
 0x22a   : > { %v1867_v40 = vshll.u32 %v9357_v43, %v1861_v34  ;;  %v1871_v58 = vshrl.u32 %v9341_v10, %v6866_v51  ;;  %v1874_v36 = vshrl.u32 %v9339_v54, %v6866_v51  ;;  %v1798_v26 = vmul.u32 %v1791_v15, %v1782_v11 }
 0x22b   : > { %v6903_v50 = vshrl.u32 %v1859_v56, 5  ;;  %v1870_v62 = vshll.u32 %v9349_v29, %v1861_v34  ;;  %v1873_v12 = vshll.u32 %v9341_v10, %v1861_v34  ;;  %v6907_v13 = vpop.eup %4865  ;;  %v6909_v57 = vor.u32 %v1865_v8, %v1864_v49 }
 0x22c   : > { %v6911_v46 = vor.u32 %v1868_v37, %v1867_v40  ;;  %v1876_v32 = vshll.u32 %v9339_v54, %v1861_v34  ;;  %v1877_v21 = vshrl.u32 %v9342_v30, %v6866_v51  ;;  %v1591_v15 = vadd.s32 %v6562_v24, %v6560_v41 }
 0x22d   : > { %v6918_v56 = vadd.s32 %v1802_v2, %v1798_v26  ;;  %v1855_v6 = vor.u32 8388608, %v1854_v9  ;;  %v1875_v55 = vor.u32 %v1874_v36, %v1873_v12  ;;  %vm1433_vm10 = vcmp.lt.s32.totalorder %v9433_v33, 0 }
 0x22e   : > { %v1511_v11 = vand.u32 2147483647, %v6879_v53  ;;  %v1513_v8 = vcvt.s32.f32 %v6877_v16  ;;  %v1872_v37 = vor.u32 %v1871_v58, %v1870_v62  ;;  %v1878_v49 = vor.u32 %v1877_v21, %v1876_v32  ;;  %v9434_v53 = vld [vmem:[#allocation30_spill] sm:$0xff] }
 0x22f   : > { %v1608_v34 = vshll.u32 %v6725_v22, %v6847_v59  ;;  %v1613_v40 = vshll.u32 %v1612_v63, 23  ;;  %v1705_v42 = vsub.s32 0, %v6892_v20  ;;  %vm1879_vm12 = vcmp.lt.s32.totalorder %v6903_v50, 1 }
 0x230   : > { %v4868_v41 = vpop.eup %4867  ;;  %vm1319_vm14 = vcmp.eq.s32.totalorder %v6768_v19, 0  ;;  %vm1322_vm15 = vcmp.eq.s32.totalorder %v6768_v19, 2  ;;  %v1609_v24 = vshrl.u32 %v1591_v15, %v1607_v7  ;;  %vm1882_vm0 = vcmp.lt.s32.totalorder %v6903_v50, 4 }
 0x231   : > { %v1887_v16 = vsel %vm1879_vm12, %v6909_v57, %v6911_v46  ;;  %v1954_v22 = vand.u32 2139095040, %v9434_v53  ;;  %v4870_v59 = vpop.eup %4869  ;;  %v1804_v9 = vadd.s32 536870912, %v6918_v56  ;;  %vm1881_vm11 = vcmp.lt.s32.totalorder %v6903_v50, 3 }
 0x232   : > { %v1888_v63 = vsel %vm1882_vm0, %v1875_v55, 920167782  ;;  %v6939_v2 = vshll.u32 %v1855_v6, 8  ;;  %vm1426_vm1 = vcmp.eq.s32.totalorder %v6873_v38, 2  ;;  %v9435_v7 = vand.u32 2147483647, %v9433_v33 }
 0x233   : > { %vm1880_vm3 = vcmp.lt.s32.totalorder %v6903_v50, 2  ;;  %v1889_v36 = vsel %vm1881_vm11, %v1872_v37, %v1888_v63  ;;  %v1891_v26 = vsel %vm1879_vm12, %v6911_v46, %v1872_v37  ;;  %v1892_v62 = vsel %vm1882_vm0, %v1878_v49, 1326507024 }
 0x234   : > { %vm6944_vm2 = vcmp.le.f32.partialorder %v9435_v7, 0.7853982  ;;  %vm1423_vm13 = vcmp.eq.s32.totalorder %v6873_v38, 0  ;;  %v1614_v12 = vor.u32 4788187, %v1613_v40  ;;  %v4391_v32 = vmin.u32 %v1705_v42, %v6892_v20 }
 0x235   : > { %v1890_v21 = vsel %vm1880_vm3, %v1887_v16, %v1889_v36  ;;  %v1893_v15 = vsel %vm1881_vm11, %v1875_v55, %v1892_v62  ;;  %v1955_v49 = vshrl.u32 %v1954_v22, 23  ;;  %vm1318_vm5 = vcmp.lt.s32.totalorder %v6768_v19, 2 }
 0x236   : > { %v1894_v6 = vsel %vm1880_vm3, %v1891_v26, %v1893_v15  ;;  %v6965_v63 = vmul.u32.u64.low %v6939_v2, %v1890_v21  ;;  %v6966_v7 = vmul.u32.u64.high %v6939_v2, %v1890_v21, %v6965_v63  ;;  %v1320_v40 = vxor.u32 2147483648, %v6907_v13 }
 0x237   : > { %v1323_v42 = vxor.u32 2147483648, %v6901_v1  ;;  %v1514_v27 = vmul.f32 %v1513_v8, %v1511_v11  ;;  %v1610_v16 = vor.u32 %v1609_v24, %v1608_v34  ;;  %vm1422_vm4 = vcmp.lt.s32.totalorder %v6873_v38, 2  ;;  %v9438_v34 = vld [vmem:[#allocation21_spill] sm:$0xff] }
 0x238   : > { %v6973_v55 = vshrl.u32 %v1804_v9, 30  ;;  %v6976_v36 = vmul.u32.u64.low %v6939_v2, %v1894_v6  ;;  %v6977_v26 = vmul.u32.u64.high %v6939_v2, %v1894_v6, %v6976_v36  ;;  %v4402_v62 = vadd.s32 4294967169, %v1955_v49 }
 0x239   : > { %v1427_v21 = vxor.u32 2147483648, %v4868_v41  ;;  %v1518_v22 = vsel %vm1433_vm10, %v1517_v25, %v6631_v61  ;;  %v1707_v15 = vclz %v4391_v32  ;;  %v1884_v11 = vsel %vm1882_vm0, %v1872_v37, 2102212464  ;;  %v9439_v37 = vld [vmem:[#allocation4_spill] sm:$0xff] }
 0x23a   : > { %vm1315_vm6 = vweird.f32 %v9420_v35  ;;  %v1424_v8 = vxor.u32 2147483648, %v4870_v59  ;;  %vm1537_vm7 = vcmp.lt.s32.totalorder %v9438_v34, 0  ;;  %v1615_v24 = vand.u32 2147483647, %v1614_v12 }
 0x23b   : > { %v1863_v9 = vshrl.u32 %v9351_v44, %v6866_v51  ;;  %v1961_v6 = vadd.s32 1, %v4402_v62  ;;  %v1321_v49 = vsel %vm1319_vm14, %v6901_v1, %v1320_v40  ;;  %v1324_v61 = vsel %vm1322_vm15, %v1323_v42, %v6907_v13 }
 0x23c   : > { %v1515_v25 = vxor.u32 2147483648, %v1514_v27  ;;  %v2058_v32 = vand.u32 2139095040, %v9439_v37  ;;  %vm1419_vm8 = vweird.f32 %v9391_v5  ;;  %v1617_v36 = vcvt.s32.f32 %v1610_v16 }
 0x23d   : > { %v1806_v12 = vshll.u32 %v6973_v55, 30  ;;  %v1883_v51 = vsel %vm1879_vm12, %v1863_v9, %v6909_v57  ;;  %v1885_v1 = vsel %vm1881_vm11, %v6911_v46, %v1884_v11  ;;  %v1428_v40 = vsel %vm1426_vm1, %v1427_v21, %v4870_v59 }
 0x23e   : > { %v1520_v13 = vsel %vm6944_vm2, 0, %v1518_v22  ;;  %v4392_v42 = vadd.s32 4294967294, %v1707_v15  ;;  %v1905_v62 = vadd.s32 1, %v6966_v7  ;;  %v1425_v16 = vsel %vm1423_vm13, %v4868_v41, %v1424_v8 }
 0x23f   : > { %v1618_v45 = vmul.f32 %v1617_v36, %v1615_v24  ;;  %vm1904_vm9 = vc.u32 %v6977_v26, %v6965_v63  ;;  %vm1962_vm12 = vcmp.gt.s32.totalorder %v1961_v6, 0  ;;  %v1516_v57 = vsel %vm1433_vm10, %v1515_v25, %v1514_v27 }
 0x240   : > { %v1621_v46 = vsub.s32 4, %v6678_v52  ;;  %v1886_v59 = vsel %vm1880_vm3, %v1883_v51, %v1885_v1  ;;  %v2059_v21 = vshrl.u32 %v2058_v32, 23  ;;  %v1325_v22 = vsel %vm1318_vm5, %v1321_v49, %v1324_v61 }
 0x241   : > { %v1524_v15 = vadd.s32 3, %v1520_v13  ;;  %v7022_v41 = vsub.s32 %v6918_v56, %v1806_v12  ;;  %v1963_v11 = vsel %vm1962_vm12, %v1961_v6, 0  ;;  %v1429_v8 = vsel %vm1422_vm4, %v1425_v16, %v1428_v40 }
 0x242   : > { %vm4393_vm14 = vcmp.lt.s32.totalorder %v4392_v42, 0  ;;  %v1906_v27 = vsel %vm1904_vm9, %v1905_v62, %v6966_v7  ;;  %v9304_v24 = vand.u32 2147483647, %v9434_v53  ;;  %v1519_v50 = vsel %vm6944_vm2, %v9433_v33, %v1516_v57 }
 0x243   : > { %v1619_v9 = vxor.u32 2147483648, %v1618_v45  ;;  %v1902_v19 = vmul.u32 %v6939_v2, %v1886_v59  ;;  %v1965_v49 = vand.u32 31, %v1963_v11  ;;  %v7034_v56 = vsel %vm1315_vm6, nan, %v1325_v22 }
 0x244   : > { %9440 = vst [vmem:[#allocation32_spill] sm:$0xff] %v7034_v56  ;;  %v9441_v38 = vand.u32 2147483647, %v9438_v34  ;;  %v1622_v7 = vsel %vm1537_vm7, %v1621_v46, %v6678_v52  ;;  %v4406_v58 = vadd.s32 4294967169, %v2059_v21  ;;  %v7045_v61 = vsel %vm4393_vm14, 0, %v4392_v42 }
 0x245   : > { %v1809_v2 = vsub.s32 0, %v7022_v41  ;;  %v7048_v25 = vadd.s32 %v1906_v27, %v1902_v19  ;;  %v1966_v35 = vsub.s32 32, %v1965_v49  ;;  %v7052_v32 = vsel %vm1419_vm8, nan, %v1429_v8 }
 0x246   : > { %vm7038_vm10 = vcmp.le.f32.partialorder %v9441_v38, 0.7853982  ;;  %9444 = vst [vmem:[#allocation5_spill] sm:$0xff] %v7052_v32  ;;  %4871 = vcosq.f32 %v1519_v50  ;;  %v7054_v36 = vand.u32 3, %v1524_v15  ;;  %v1958_v12 = vand.u32 8388607, %v9304_v24 }
 0x247   : > { %v1620_v52 = vsel %vm1537_vm7, %v1619_v9, %v1618_v45  ;;  %v1624_v51 = vsel %vm7038_vm10, 0, %v1622_v7  ;;  %v1969_v1 = vshrl.u32 %v9357_v43, %v1966_v35  ;;  %v1972_v40 = vshrl.u32 %v9349_v29, %v1966_v35 }
 0x248   : > { %v1715_v5 = vsub.s32 4294967266, %v7045_v61  ;;  %v1975_v13 = vshrl.u32 %v9341_v10, %v1966_v35  ;;  %v1978_v42 = vshrl.u32 %v9339_v54, %v1966_v35  ;;  %v2065_v62 = vadd.s32 1, %v4406_v58 }
 0x249   : > { %v4395_v16 = vmin.u32 %v1809_v2, %v7022_v41  ;;  %v1908_v57 = vadd.s32 536870912, %v7048_v25  ;;  %v1968_v45 = vshll.u32 %v9351_v44, %v1965_v49  ;;  %v1971_v46 = vshll.u32 %v9357_v43, %v1965_v49 }
 0x24a   : > { %v1959_v59 = vor.u32 8388608, %v1958_v12  ;;  %v1964_v21 = vshrl.u32 %v1963_v11, 5  ;;  %v1974_v22 = vshll.u32 %v9349_v29, %v1965_v49  ;;  %v1977_v15 = vshll.u32 %v9341_v10, %v1965_v49 }
 0x24b   : > { %v1970_v8 = vor.u32 %v1969_v1, %v1968_v45  ;;  %v1973_v27 = vor.u32 %v1972_v40, %v1971_v46  ;;  %v1980_v9 = vshll.u32 %v9339_v54, %v1965_v49  ;;  %v1981_v19 = vshrl.u32 %v9342_v30, %v1966_v35 }
 0x24c   : > { %4873 = vsinq.f32 %v1519_v50  ;;  %v1976_v38 = vor.u32 %v1975_v13, %v1974_v22  ;;  %v1979_v7 = vor.u32 %v1978_v42, %v1977_v15  ;;  %vm2066_vm15 = vcmp.gt.s32.totalorder %v2065_v62, 0 }
 0x24d   : > { %v1623_v58 = vsel %vm7038_vm10, %v9438_v34, %v1620_v52  ;;  %v1628_v2 = vadd.s32 3, %v1624_v51  ;;  %v7078_v11 = vshrl.u32 %v1908_v57, 30  ;;  %v1982_v12 = vor.u32 %v1981_v19, %v1980_v9 }
 0x24e   : > { %v1716_v24 = vadd.s32 127, %v1715_v5  ;;  %v1811_v32 = vclz %v4395_v16  ;;  %vm1983_vm0 = vcmp.lt.s32.totalorder %v1964_v21, 1  ;;  %v1999_v1 = vshll.u32 %v1959_v59, 8 }
 0x24f   : > { %v1967_v49 = vshrl.u32 %v9351_v44, %v1966_v35  ;;  %vm1986_vm11 = vcmp.lt.s32.totalorder %v1964_v21, 4  ;;  %v1991_v50 = vsel %vm1983_vm0, %v1970_v8, %v1973_v27  ;;  %v2067_v40 = vsel %vm2066_vm15, %v2065_v62, 0 }
 0x250   : > { %v7082_v13 = vpop.eup %4871  ;;  %vm1985_vm1 = vcmp.lt.s32.totalorder %v1964_v21, 3  ;;  %v1988_v42 = vsel %vm1986_vm11, %v1976_v38, 2102212464  ;;  %v1992_v6 = vsel %vm1986_vm11, %v1979_v7, 920167782  ;;  %v1995_v52 = vsel %vm1983_vm0, %v1973_v27, %v1976_v38 }
 0x251   : > { %v1910_v51 = vshll.u32 %v7078_v11, 30  ;;  %vm1984_vm2 = vcmp.lt.s32.totalorder %v1964_v21, 2  ;;  %v1993_v5 = vsel %vm1985_vm1, %v1976_v38, %v1992_v6  ;;  %v1996_v16 = vsel %vm1986_vm11, %v1982_v12, 1326507024 }
 0x252   : > { %v4396_v57 = vadd.s32 4294967294, %v1811_v32  ;;  %v1987_v45 = vsel %vm1983_vm0, %v1967_v49, %v1970_v8  ;;  %v1994_v35 = vsel %vm1984_vm2, %v1991_v50, %v1993_v5  ;;  %v1997_v46 = vsel %vm1985_vm1, %v1979_v7, %v1996_v16 }
 0x253   : > { %v1989_v59 = vsel %vm1985_vm1, %v1973_v27, %v1988_v42  ;;  %v1998_v62 = vsel %vm1984_vm2, %v1995_v52, %v1997_v46  ;;  %v7089_v22 = vmul.u32.u64.low %v1999_v1, %v1994_v35  ;;  %v7090_v15 = vmul.u32.u64.high %v1999_v1, %v1994_v35, %v7089_v22 }
 0x254   : > { %v1711_v9 = vsub.s32 32, %v7045_v61  ;;  %v1717_v19 = vshll.u32 %v1716_v24, 23  ;;  %v9307_v56 = vand.u32 2147483647, %v9439_v37  ;;  %v2069_v38 = vand.u32 31, %v2067_v40 }
 0x255   : > { %v7095_v12 = vand.u32 3, %v1628_v2  ;;  %v7098_v32 = vsub.s32 %v7048_v25, %v1910_v51  ;;  %v7100_v8 = vmul.u32.u64.low %v1999_v1, %v1998_v62  ;;  %v7101_v7 = vmul.u32.u64.high %v1999_v1, %v1998_v62, %v7100_v8 }
 0x256   : > { %v7103_v27 = vpop.eup %4873  ;;  %4875 = vcosq.f32 %v1623_v58  ;;  %v1695_v49 = vadd.s32 %v6728_v31, %v6740_v0  ;;  %v1990_v50 = vsel %vm1984_vm2, %v1987_v45, %v1989_v59  ;;  %v2070_v24 = vsub.s32 32, %v2069_v38 }
 0x257   : > { %4877 = vsinq.f32 %v1623_v58  ;;  %v1712_v2 = vshll.u32 %v6892_v20, %v7045_v61  ;;  %vm4397_vm3 = vcmp.lt.s32.totalorder %v4396_v57, 0  ;;  %v2009_v25 = vadd.s32 1, %v7090_v15 }
 0x258   : > { %v1713_v42 = vshrl.u32 %v1695_v49, %v1711_v9  ;;  %v1718_v6 = vor.u32 4788187, %v1717_v19  ;;  %v2062_v52 = vand.u32 8388607, %v9307_v56  ;;  %v2073_v51 = vshrl.u32 %v9357_v43, %v2070_v24 }
 0x259   : > { %v1913_v5 = vsub.s32 0, %v7098_v32  ;;  %v2006_v31 = vmul.u32 %v1999_v1, %v1990_v50  ;;  %vm2008_vm13 = vc.u32 %v7101_v7, %v7089_v22  ;;  %v2076_v0 = vshrl.u32 %v9349_v29, %v2070_v24 }
 0x25a   : > { %v7118_v21 = vsel %vm4397_vm3, 0, %v4396_v57  ;;  %v2010_v20 = vsel %vm2008_vm13, %v2009_v25, %v7090_v15  ;;  %v2072_v61 = vshll.u32 %v9351_v44, %v2069_v38  ;;  %v2075_v58 = vshll.u32 %v9357_v43, %v2069_v38 }
 0x25b   : > { %v7123_v16 = vadd.s32 %v2010_v20, %v2006_v31  ;;  %v2068_v45 = vshrl.u32 %v2067_v40, 5  ;;  %v2078_v35 = vshll.u32 %v9349_v29, %v2069_v38  ;;  %v2081_v1 = vshll.u32 %v9341_v10, %v2069_v38 }
 0x25c   : > { %v2074_v46 = vor.u32 %v2073_v51, %v2072_v61  ;;  %v2077_v59 = vor.u32 %v2076_v0, %v2075_v58  ;;  %v2079_v62 = vshrl.u32 %v9341_v10, %v2070_v24  ;;  %v2082_v57 = vshrl.u32 %v9339_v54, %v2070_v24 }
 0x25d   : > { %v1531_v9 = vxor.u32 2147483648, %v7082_v13  ;;  %v1714_v15 = vor.u32 %v1713_v42, %v1712_v2  ;;  %v4399_v19 = vmin.u32 %v1913_v5, %v7098_v32  ;;  %v2085_v8 = vshrl.u32 %v9342_v30, %v2070_v24 }
 0x25e   : > { %vm1530_vm5 = vcmp.eq.s32.totalorder %v7054_v36, 2  ;;  %vm1641_vm4 = vcmp.lt.s32.totalorder %v9412_v28, 0  ;;  %v2012_v40 = vadd.s32 536870912, %v7123_v16  ;;  %v2080_v49 = vor.u32 %v2079_v62, %v2078_v35 }
 0x25f   : > { %v2083_v50 = vor.u32 %v2082_v57, %v2081_v1  ;;  %v2084_v25 = vshll.u32 %v9339_v54, %v2069_v38  ;;  %v1528_v51 = vxor.u32 2147483648, %v7103_v27  ;;  %v1719_v31 = vand.u32 2147483647, %v1718_v6 }
 0x260   : > { %v1819_v0 = vsub.s32 4294967266, %v7118_v21  ;;  %vm2087_vm6 = vcmp.lt.s32.totalorder %v2068_v45, 1  ;;  %v7138_v2 = vpop.eup %4875  ;;  %v2063_v42 = vor.u32 8388608, %v2062_v52  ;;  %vm2090_vm7 = vcmp.lt.s32.totalorder %v2068_v45, 4 }
 0x261   : > { %v2086_v5 = vor.u32 %v2085_v8, %v2084_v25  ;;  %v2095_v20 = vsel %vm2087_vm6, %v2074_v46, %v2077_v59  ;;  %v4878_v61 = vpop.eup %4877  ;;  %v1721_v58 = vcvt.s32.f32 %v1714_v15  ;;  %v1915_v56 = vclz %v4399_v19 }
 0x262   : > { %vm2089_vm8 = vcmp.lt.s32.totalorder %v2068_v45, 3  ;;  %v2096_v35 = vsel %vm2090_vm7, %v2083_v50, 920167782  ;;  %vm1527_vm9 = vcmp.eq.s32.totalorder %v7054_v36, 0  ;;  %v9445_v38 = vand.u32 2147483647, %v9412_v28 }
 0x263   : > { %v7149_v1 = vshrl.u32 %v2012_v40, 30  ;;  %vm2088_vm14 = vcmp.lt.s32.totalorder %v2068_v45, 2  ;;  %v2092_v52 = vsel %vm2090_vm7, %v2080_v49, 2102212464  ;;  %v2097_v62 = vsel %vm2089_vm8, %v2080_v49, %v2096_v35 }
 0x264   : > { %vm7145_vm12 = vcmp.le.f32.partialorder %v9445_v38, 0.7853982  ;;  %v1725_v57 = vsub.s32 4, %v6836_v39  ;;  %v2071_v15 = vshrl.u32 %v9351_v44, %v2070_v24  ;;  %v2098_v19 = vsel %vm2088_vm14, %v2095_v20, %v2097_v62 }
 0x265   : > { %v2099_v8 = vsel %vm2087_vm6, %v2077_v59, %v2080_v49  ;;  %vm1631_vm10 = vcmp.eq.s32.totalorder %v7095_v12, 0  ;;  %vm1634_vm15 = vcmp.eq.s32.totalorder %v7095_v12, 2  ;;  %v1722_v25 = vmul.f32 %v1721_v58, %v1719_v31 }
 0x266   : > { %v1820_v40 = vadd.s32 127, %v1819_v0  ;;  %v2100_v38 = vsel %vm2090_vm7, %v2086_v5, 1326507024  ;;  %v2103_v4 = vshll.u32 %v2063_v42, 8  ;;  %v4400_v14 = vadd.s32 4294967294, %v1915_v56  ;;  %v9448_v5 = vld [vmem:[#allocation13_spill] sm:$0xff] }
 0x267   : > { %v2091_v35 = vsel %vm2087_vm6, %v2071_v15, %v2074_v46  ;;  %v2093_v17 = vsel %vm2089_vm8, %v2077_v59, %v2092_v52  ;;  %v2101_v24 = vsel %vm2089_vm8, %v2083_v50, %v2100_v38  ;;  %vm1526_vm0 = vcmp.lt.s32.totalorder %v7054_v36, 2 }
 0x268   : > { %v2014_v49 = vshll.u32 %v7149_v1, 30  ;;  %v2102_v20 = vsel %vm2088_vm14, %v2099_v8, %v2101_v24  ;;  %v7166_v62 = vmul.u32.u64.low %v2103_v4, %v2098_v19  ;;  %v7167_v23 = vmul.u32.u64.high %v2103_v4, %v2098_v19, %v7166_v62 }
 0x269   : > { %v1532_v56 = vsel %vm1530_vm5, %v1531_v9, %v7103_v27  ;;  %v1726_v46 = vsel %vm1641_vm4, %v1725_v57, %v6836_v39  ;;  %v7176_v59 = vmul.u32.u64.low %v2103_v4, %v2102_v20  ;;  %v7177_v50 = vmul.u32.u64.high %v2103_v4, %v2102_v20, %v7176_v59 }
 0x26a   : > { %v1723_v31 = vxor.u32 2147483648, %v1722_v25  ;;  %v1815_v0 = vsub.s32 32, %v7118_v21  ;;  %v2094_v42 = vsel %vm2088_vm14, %v2091_v35, %v2093_v17  ;;  %v2162_v58 = vand.u32 2139095040, %v9448_v5 }
 0x26b   : > { %v1632_v52 = vxor.u32 2147483648, %v4878_v61  ;;  %v1635_v15 = vxor.u32 2147483648, %v7138_v2  ;;  %v1799_v27 = vadd.s32 %v6841_v3, %v6839_v48  ;;  %v1821_v9 = vshll.u32 %v1820_v40, 23 }
 0x26c   : > { %vm1523_vm11 = vweird.f32 %v9433_v33  ;;  %vm1745_vm1 = vcmp.lt.s32.totalorder %v9424_v60, 0  ;;  %vm4401_vm2 = vcmp.lt.s32.totalorder %v4400_v14, 0  ;;  %v7188_v39 = vsub.s32 %v7123_v16, %v2014_v49 }
 0x26d   : > { %v2113_v45 = vadd.s32 1, %v7167_v23  ;;  %v2163_v17 = vshrl.u32 %v2162_v58, 23  ;;  %v1529_v57 = vsel %vm1527_vm9, %v7082_v13, %v1528_v51  ;;  %v1728_v19 = vsel %vm7145_vm12, 0, %v1726_v46 }
 0x26e   : > { %v2110_v48 = vmul.u32 %v2103_v4, %v2094_v42  ;;  %vm2112_vm3 = vc.u32 %v7177_v50, %v7166_v62  ;;  %vm1627_vm13 = vweird.f32 %v9438_v34  ;;  %v1724_v3 = vsel %vm1641_vm4, %v1723_v31, %v1722_v25 }
 0x26f   : > { %v1817_v16 = vshrl.u32 %v1799_v27, %v1815_v0  ;;  %v2114_v8 = vsel %vm2112_vm3, %v2113_v45, %v7167_v23  ;;  %v4410_v40 = vadd.s32 4294967169, %v2163_v17  ;;  %v1633_v13 = vsel %vm1631_vm10, %v7138_v2, %v1632_v52 }
 0x270   : > { %v1636_v51 = vsel %vm1634_vm15, %v1635_v15, %v4878_v61  ;;  %v7207_v4 = vsel %vm4401_vm2, 0, %v4400_v14  ;;  %v2115_v38 = vadd.s32 %v2114_v8, %v2110_v48  ;;  %v1816_v35 = vshll.u32 %v7022_v41, %v7118_v21 }
 0x271   : > { %v1822_v24 = vor.u32 4788187, %v1821_v9  ;;  %v2017_v25 = vsub.s32 0, %v7188_v39  ;;  %v2169_v49 = vadd.s32 1, %v4410_v40  ;;  %v1533_v23 = vsel %vm1526_vm0, %v1529_v57, %v1532_v56 }
 0x272   : > { %vm1630_vm5 = vcmp.lt.s32.totalorder %v7095_v12, 2  ;;  %v1727_v2 = vsel %vm7145_vm12, %v9412_v28, %v1724_v3  ;;  %v1829_v14 = vsub.s32 4, %v6973_v55  ;;  %v1818_v61 = vor.u32 %v1817_v16, %v1816_v35 }
 0x273   : > { %v1923_v20 = vsub.s32 4294967266, %v7207_v4  ;;  %v2116_v46 = vadd.s32 536870912, %v2115_v38  ;;  %vm2170_vm4 = vcmp.gt.s32.totalorder %v2169_v49, 0  ;;  %v1637_v41 = vsel %vm1630_vm5, %v1633_v13, %v1636_v51 }
 0x274   : > { %v1732_v21 = vadd.s32 3, %v1728_v19  ;;  %v9449_v59 = vand.u32 2147483647, %v9424_v60  ;;  %v2171_v12 = vsel %vm2170_vm4, %v2169_v49, 0  ;;  %v1823_v56 = vand.u32 2147483647, %v1822_v24 }
 0x275   : > { %v4403_v6 = vmin.u32 %v2017_v25, %v7188_v39  ;;  %v7227_v31 = vshrl.u32 %v2116_v46, 30  ;;  %v2173_v0 = vand.u32 31, %v2171_v12  ;;  %v7231_v42 = vsel %vm1523_vm11, nan, %v1533_v23 }
 0x276   : > { %vm7222_vm6 = vcmp.le.f32.partialorder %v9449_v59, 0.7853982  ;;  %4879 = vcosq.f32 %v1727_v2  ;;  %v1830_v58 = vsel %vm1745_vm1, %v1829_v14, %v6973_v55  ;;  %v1919_v52 = vsub.s32 32, %v7207_v4 }
 0x277   : > { %v1825_v15 = vcvt.s32.f32 %v1818_v61  ;;  %v1924_v27 = vadd.s32 127, %v1923_v20  ;;  %v9313_v9 = vand.u32 2147483647, %v9448_v5  ;;  %v2174_v45 = vsub.s32 32, %v2173_v0 }
 0x278   : > { %v7240_v17 = vsel %vm1627_vm13, nan, %v1637_v41  ;;  %4881 = vsinq.f32 %v1727_v2  ;;  %v7242_v33 = vand.u32 3, %v1732_v21  ;;  %v1903_v57 = vadd.s32 %v6965_v63, %v6977_v26  ;;  %v9452_v26 = vld [vmem:[#allocation16_spill] sm:$0xff] }
 0x279   : > { %v1826_v19 = vmul.f32 %v1825_v15, %v1823_v56  ;;  %v1832_v55 = vsel %vm7222_vm6, 0, %v1830_v58  ;;  %v2019_v48 = vclz %v4403_v6  ;;  %v2118_v3 = vshll.u32 %v7227_v31, 30 }
 0x27a   : > { %v1920_v16 = vshll.u32 %v7098_v32, %v7207_v4  ;;  %v1921_v8 = vshrl.u32 %v1903_v57, %v1919_v52  ;;  %v2177_v34 = vshrl.u32 %v9357_v43, %v2174_v45  ;;  %v2180_v40 = vshrl.u32 %v9349_v29, %v2174_v45 }
 0x27b   : > { %v1925_v13 = vshll.u32 %v1924_v27, 23  ;;  %v2166_v51 = vand.u32 8388607, %v9313_v9  ;;  %v2183_v63 = vshrl.u32 %v9341_v10, %v2174_v45  ;;  %v2266_v35 = vand.u32 2139095040, %v9452_v26 }
 0x27c   : > { %v2176_v24 = vshll.u32 %v9351_v44, %v2173_v0  ;;  %v2179_v25 = vshll.u32 %v9357_v43, %v2173_v0  ;;  %v2185_v49 = vshll.u32 %v9341_v10, %v2173_v0  ;;  %v2186_v32 = vshrl.u32 %v9339_v54, %v2174_v45 }
 0x27d   : > { %v4404_v4 = vadd.s32 4294967294, %v2019_v48  ;;  %v7261_v23 = vsub.s32 %v2115_v38, %v2118_v3  ;;  %v2172_v2 = vshrl.u32 %v2171_v12, 5  ;;  %v2182_v14 = vshll.u32 %v9349_v29, %v2173_v0 }
 0x27e   : > { %v2178_v61 = vor.u32 %v2177_v34, %v2176_v24  ;;  %v2181_v20 = vor.u32 %v2180_v40, %v2179_v25  ;;  %v2187_v46 = vor.u32 %v2186_v32, %v2185_v49  ;;  %v2189_v41 = vshrl.u32 %v9342_v30, %v2174_v45 }
 0x27f   : > { %v1827_v21 = vxor.u32 2147483648, %v1826_v19  ;;  %v1836_v59 = vadd.s32 3, %v1832_v55  ;;  %v2184_v56 = vor.u32 %v2183_v63, %v2182_v14  ;;  %v2188_v6 = vshll.u32 %v9339_v54, %v2173_v0 }
 0x280   : > { %v7266_v58 = vpop.eup %4879  ;;  %v1922_v52 = vor.u32 %v1921_v8, %v1920_v16  ;;  %v1926_v15 = vor.u32 4788187, %v1925_v13  ;;  %v2167_v27 = vor.u32 8388608, %v2166_v51  ;;  %v2267_v38 = vshrl.u32 %v2266_v35, 23 }
 0x281   : > { %v2121_v12 = vsub.s32 0, %v7261_v23  ;;  %v2190_v57 = vor.u32 %v2189_v41, %v2188_v6  ;;  %vm2191_vm7 = vcmp.lt.s32.totalorder %v2172_v2, 1  ;;  %vm2194_vm8 = vcmp.lt.s32.totalorder %v2172_v2, 4 }
 0x282   : > { %v4882_v48 = vpop.eup %4881  ;;  %vm1738_vm9 = vcmp.eq.s32.totalorder %v7242_v33, 2  ;;  %vm4405_vm12 = vcmp.lt.s32.totalorder %v4404_v4, 0  ;;  %vm2193_vm14 = vcmp.lt.s32.totalorder %v2172_v2, 3  ;;  %v2199_v55 = vsel %vm2191_vm7, %v2178_v61, %v2181_v20 }
 0x283   : > { %v2200_v0 = vsel %vm2194_vm8, %v2187_v46, 920167782  ;;  %v2175_v3 = vshrl.u32 %v9351_v44, %v2174_v45  ;;  %vm2192_vm10 = vcmp.lt.s32.totalorder %v2172_v2, 2  ;;  %v2196_v16 = vsel %vm2194_vm8, %v2184_v56, 2102212464 }
 0x284   : > { %v2201_v8 = vsel %vm2193_vm14, %v2184_v56, %v2200_v0  ;;  %v2203_v40 = vsel %vm2191_vm7, %v2181_v20, %v2184_v56  ;;  %v2207_v13 = vshll.u32 %v2167_v27, 8  ;;  %v4414_v51 = vadd.s32 4294967169, %v2267_v38 }
 0x285   : > { %v2202_v34 = vsel %vm2192_vm10, %v2199_v55, %v2201_v8  ;;  %v7277_v63 = vsel %vm4405_vm12, 0, %v4404_v4  ;;  %v4407_v35 = vmin.u32 %v2121_v12, %v7261_v23  ;;  %v2195_v24 = vsel %vm2191_vm7, %v2175_v3, %v2178_v61 }
 0x286   : > { %v2204_v25 = vsel %vm2194_vm8, %v2190_v57, 1326507024  ;;  %vm1735_vm15 = vcmp.eq.s32.totalorder %v7242_v33, 0  ;;  %vm1849_vm0 = vcmp.lt.s32.totalorder %v9429_v18, 0  ;;  %v2197_v45 = vsel %vm2193_vm14, %v2181_v20, %v2196_v16 }
 0x287   : > { %v2205_v49 = vsel %vm2193_vm14, %v2187_v46, %v2204_v25  ;;  %v7286_v32 = vmul.u32.u64.low %v2207_v13, %v2202_v34  ;;  %v7287_v14 = vmul.u32.u64.high %v2207_v13, %v2202_v34, %v7286_v32  ;;  %v1739_v4 = vxor.u32 2147483648, %v7266_v58 }
 0x288   : > { %v1828_v41 = vsel %vm1745_vm1, %v1827_v21, %v1826_v19  ;;  %v7293_v61 = vand.u32 3, %v1836_v59  ;;  %v2206_v56 = vsel %vm2192_vm10, %v2203_v40, %v2205_v49  ;;  %v1927_v6 = vand.u32 2147483647, %v1926_v15 }
 0x289   : > { %v7296_v27 = vmul.u32.u64.low %v2207_v13, %v2206_v56  ;;  %v7297_v38 = vmul.u32.u64.high %v2207_v13, %v2206_v56, %v7296_v27  ;;  %v2273_v20 = vadd.s32 1, %v4414_v51  ;;  %v1736_v12 = vxor.u32 2147483648, %v4882_v48 }
 0x28a   : > { %v2027_v46 = vsub.s32 4294967266, %v7277_v63  ;;  %v2123_v57 = vclz %v4407_v35  ;;  %v2198_v55 = vsel %vm2192_vm10, %v2195_v24, %v2197_v45  ;;  %v1929_v0 = vcvt.s32.f32 %v1922_v52 }
 0x28b   : > { %v2217_v3 = vadd.s32 1, %v7287_v14  ;;  %v9312_v19 = vand.u32 2147483647, %v9452_v26  ;;  %vm2274_vm11 = vcmp.gt.s32.totalorder %v2273_v20, 0  ;;  %v7305_v21 = vsel %vm1738_vm9, %v1739_v4, %v4882_v48 }
 0x28c   : > { %v1831_v59 = vsel %vm7222_vm6, %v9424_v60, %v1828_v41  ;;  %v1933_v15 = vsub.s32 4, %v7078_v11  ;;  %v2275_v16 = vsel %vm2274_vm11, %v2273_v20, 0  ;;  %v1930_v8 = vmul.f32 %v1929_v0, %v1927_v6 }
 0x28d   : > { %v2214_v2 = vmul.u32 %v2207_v13, %v2198_v55  ;;  %vm2216_vm1 = vc.u32 %v7297_v38, %v7286_v32  ;;  %v2277_v52 = vand.u32 31, %v2275_v16  ;;  %v9453_v34 = vand.u32 2147483647, %v9429_v18 }
 0x28e   : > { %v2023_v48 = vsub.s32 32, %v7277_v63  ;;  %v2028_v51 = vadd.s32 127, %v2027_v46  ;;  %v4408_v36 = vadd.s32 4294967294, %v2123_v57  ;;  %v2218_v35 = vsel %vm2216_vm1, %v2217_v3, %v7287_v14 }
 0x28f   : > { %vm7315_vm2 = vcmp.le.f32.partialorder %v9453_v34, 0.7853982  ;;  %4883 = vcosq.f32 %v1831_v59  ;;  %v2219_v24 = vadd.s32 %v2218_v35, %v2214_v2  ;;  %v2270_v13 = vand.u32 8388607, %v9312_v19 }
 0x290   : > { %v2278_v25 = vsub.s32 32, %v2277_v52  ;;  %v7326_v45 = vsel %vm1735_vm15, %v7266_v58, %v1736_v12  ;;  %4885 = vsinq.f32 %v1831_v59  ;;  %v1934_v49 = vsel %vm1849_vm0, %v1933_v15, %v7078_v11 }
 0x291   : > { %v2007_v4 = vadd.s32 %v7089_v22, %v7101_v7  ;;  %v1931_v14 = vxor.u32 2147483648, %v1930_v8  ;;  %v2024_v41 = vshll.u32 %v7188_v39, %v7277_v63  ;;  %v2220_v56 = vadd.s32 536870912, %v2219_v24  ;;  %v9456_v63 = vld [vmem:[#allocation12_spill] sm:$0xff] }
 0x292   : > { %v2281_v6 = vshrl.u32 %v9357_v43, %v2278_v25  ;;  %v2029_v20 = vshll.u32 %v2028_v51, 23  ;;  %vm4409_vm3 = vcmp.lt.s32.totalorder %v4408_v36, 0  ;;  %v2284_v58 = vshrl.u32 %v9349_v29, %v2278_v25 }
 0x293   : > { %v2025_v27 = vshrl.u32 %v2007_v4, %v2023_v48  ;;  %v7337_v12 = vshrl.u32 %v2220_v56, 30  ;;  %v2271_v46 = vor.u32 8388608, %v2270_v13  ;;  %v2280_v11 = vshll.u32 %v9351_v44, %v2277_v52 }
 0x294   : > { %v2287_v57 = vshrl.u32 %v9341_v10, %v2278_v25  ;;  %v2283_v22 = vshll.u32 %v9357_v43, %v2277_v52  ;;  %v2289_v7 = vshll.u32 %v9341_v10, %v2277_v52  ;;  %v2290_v39 = vshrl.u32 %v9339_v54, %v2278_v25 }
 0x295   : > { %v2370_v55 = vand.u32 2139095040, %v9456_v63  ;;  %v2222_v0 = vshll.u32 %v7337_v12, 30  ;;  %v2276_v3 = vshrl.u32 %v2275_v16, 5  ;;  %v2282_v59 = vor.u32 %v2281_v6, %v2280_v11 }
 0x296   : > { %v2286_v15 = vshll.u32 %v9349_v29, %v2277_v52  ;;  %v2285_v2 = vor.u32 %v2284_v58, %v2283_v22  ;;  %v2291_v34 = vor.u32 %v2290_v39, %v2289_v7  ;;  %v2292_v48 = vshll.u32 %v9339_v54, %v2277_v52 }
 0x297   : > { %v2293_v51 = vshrl.u32 %v9342_v30, %v2278_v25  ;;  %v1932_v35 = vsel %vm1849_vm0, %v1931_v14, %v1930_v8  ;;  %v1936_v13 = vsel %vm7315_vm2, 0, %v1934_v49  ;;  %v7353_v4 = vsub.s32 %v2219_v24, %v2222_v0 }
 0x298   : > { %v2288_v56 = vor.u32 %v2287_v57, %v2286_v15  ;;  %v2026_v19 = vor.u32 %v2025_v27, %v2024_v41  ;;  %v2030_v16 = vor.u32 4788187, %v2029_v20  ;;  %v2371_v11 = vshrl.u32 %v2370_v55, 23 }
 0x299   : > { %v2294_v6 = vor.u32 %v2293_v51, %v2292_v48  ;;  %v4884_v9 = vpop.eup %4883  ;;  %v7356_v58 = vsel %vm4409_vm3, 0, %v4408_v36  ;;  %v2225_v52 = vsub.s32 0, %v7353_v4  ;;  %vm2295_vm13 = vcmp.lt.s32.totalorder %v2276_v3, 1 }
 0x29a   : > { %vm2298_vm5 = vcmp.lt.s32.totalorder %v2276_v3, 4  ;;  %v4886_v22 = vpop.eup %4885  ;;  %vm1734_vm4 = vcmp.lt.s32.totalorder %v7242_v33, 2  ;;  %vm2297_vm6 = vcmp.lt.s32.totalorder %v2276_v3, 3  ;;  %v2303_v8 = vsel %vm2295_vm13, %v2282_v59, %v2285_v2 }
 0x29b   : > { %v2304_v24 = vsel %vm2298_vm5, %v2291_v34, 920167782  ;;  %v2311_v49 = vshll.u32 %v2271_v46, 8  ;;  %v2279_v14 = vshrl.u32 %v9351_v44, %v2278_v25  ;;  %vm2296_vm7 = vcmp.lt.s32.totalorder %v2276_v3, 2 }
 0x29c   : > { %v2300_v41 = vsel %vm2298_vm5, %v2288_v56, 2102212464  ;;  %v2305_v27 = vsel %vm2297_vm6, %v2288_v56, %v2304_v24  ;;  %v2307_v20 = vsel %vm2295_vm13, %v2285_v2, %v2288_v56  ;;  %v2308_v57 = vsel %vm2298_vm5, %v2294_v6, 1326507024 }
 0x29d   : > { %v2306_v36 = vsel %vm2296_vm7, %v2303_v8, %v2305_v27  ;;  %v4418_v7 = vadd.s32 4294967169, %v2371_v11  ;;  %v1935_v39 = vsel %vm7315_vm2, %v9429_v18, %v1932_v35  ;;  %v2131_v55 = vsub.s32 4294967266, %v7356_v58 }
 0x29e   : > { %v4411_v46 = vmin.u32 %v2225_v52, %v7353_v4  ;;  %v2299_v25 = vsel %vm2295_vm13, %v2279_v14, %v2282_v59  ;;  %v2301_v0 = vsel %vm2297_vm6, %v2285_v2, %v2300_v41  ;;  %v2309_v15 = vsel %vm2297_vm6, %v2291_v34, %v2308_v57 }
 0x29f   : > { %v7373_v48 = vmul.u32.u64.low %v2311_v49, %v2306_v36  ;;  %v7374_v51 = vmul.u32.u64.high %v2311_v49, %v2306_v36, %v7373_v48  ;;  %v1940_v56 = vadd.s32 3, %v1936_v13  ;;  %v2031_v6 = vand.u32 2147483647, %v2030_v16 }
 0x2a0   : > { %v2310_v11 = vsel %vm2296_vm7, %v2307_v20, %v2309_v15  ;;  %v2377_v40 = vadd.s32 1, %v4418_v7  ;;  %4887 = vcosq.f32 %v1935_v39  ;;  %v2033_v35 = vcvt.s32.f32 %v2026_v19 }
 0x2a1   : > { %v7378_v8 = vmul.u32.u64.low %v2311_v49, %v2310_v11  ;;  %v7379_v24 = vmul.u32.u64.high %v2311_v49, %v2310_v11, %v7378_v8  ;;  %v2132_v52 = vadd.s32 127, %v2131_v55  ;;  %v2227_v59 = vclz %v4411_v46 }
 0x2a2   : > { %v2302_v2 = vsel %vm2296_vm7, %v2299_v25, %v2301_v0  ;;  %vm2378_vm8 = vcmp.gt.s32.totalorder %v2377_v40, 0  ;;  %vm1839_vm9 = vcmp.eq.s32.totalorder %v7293_v61, 0  ;;  %vm1842_vm12 = vcmp.eq.s32.totalorder %v7293_v61, 2 }
 0x2a3   : > { %v1843_v34 = vxor.u32 2147483648, %v4884_v9  ;;  %v2321_v13 = vadd.s32 1, %v7374_v51  ;;  %v7389_v19 = vsel %vm1734_vm4, %v7326_v45, %v7305_v21  ;;  %v1840_v16 = vxor.u32 2147483648, %v4886_v22 }
 0x2a4   : > { %v2034_v14 = vmul.f32 %v2033_v35, %v2031_v6  ;;  %v2379_v41 = vsel %vm2378_vm8, %v2377_v40, 0  ;;  %v7391_v27 = vand.u32 3, %v1940_v56  ;;  %v2127_v3 = vsub.s32 32, %v7356_v58 }
 0x2a5   : > { %v2318_v36 = vmul.u32 %v2311_v49, %v2302_v2  ;;  %vm2320_vm14 = vc.u32 %v7379_v24, %v7373_v48  ;;  %vm1953_vm10 = vcmp.lt.s32.totalorder %v9434_v53, 0  ;;  %v2133_v20 = vshll.u32 %v2132_v52, 23 }
 0x2a6   : > { %v4412_v57 = vadd.s32 4294967294, %v2227_v59  ;;  %v2322_v7 = vsel %vm2320_vm14, %v2321_v13, %v7374_v51  ;;  %v9315_v33 = vand.u32 2147483647, %v9456_v63  ;;  %v7401_v21 = vsel %vm1842_vm12, %v1843_v34, %v4886_v22 }
 0x2a7   : > { %v2111_v45 = vadd.s32 %v7166_v62, %v7177_v50  ;;  %v2323_v55 = vadd.s32 %v2322_v7, %v2318_v36  ;;  %v2381_v49 = vand.u32 31, %v2379_v41  ;;  %v7407_v46 = vsel %vm1839_vm9, %v4884_v9, %v1840_v16 }
 0x2a8   : > { %4889 = vsinq.f32 %v1935_v39  ;;  %v2035_v25 = vxor.u32 2147483648, %v2034_v14  ;;  %v2037_v0 = vsub.s32 4, %v7149_v1  ;;  %v9457_v15 = vand.u32 2147483647, %v9434_v53 }
 0x2a9   : > { %v2128_v22 = vshll.u32 %v7261_v23, %v7356_v58  ;;  %v2129_v62 = vshrl.u32 %v2111_v45, %v2127_v3  ;;  %v2324_v50 = vadd.s32 536870912, %v2323_v55  ;;  %v2382_v56 = vsub.s32 32, %v2381_v49 }
 0x2aa   : > { %vm7412_vm15 = vcmp.le.f32.partialorder %v9457_v15, 0.7853982  ;;  %v7418_v6 = vor.u32 4788187, %v2133_v20  ;;  %vm4413_vm0 = vcmp.lt.s32.totalorder %v4412_v57, 0  ;;  %v2384_v39 = vshll.u32 %v9351_v44, %v2381_v49  ;;  %v7423_v11 = vpop.eup %4887 }
 0x2ab   : > { %v2374_v9 = vand.u32 8388607, %v9315_v33  ;;  %v7425_v40 = vshrl.u32 %v2324_v50, 30  ;;  %v2385_v35 = vshrl.u32 %v9357_v43, %v2382_v56  ;;  %v2387_v8 = vshll.u32 %v9357_v43, %v2381_v49 }
 0x2ac   : > { %v2388_v23 = vshrl.u32 %v9349_v29, %v2382_v56  ;;  %v7430_v58 = vshrl.u32 %v2379_v41, 5  ;;  %v2391_v52 = vshrl.u32 %v9341_v10, %v2382_v56  ;;  %v2393_v59 = vshll.u32 %v9341_v10, %v2381_v49 }
 0x2ad   : > { %v2394_v2 = vshrl.u32 %v9339_v54, %v2382_v56  ;;  %v2326_v34 = vshll.u32 %v7425_v40, 30  ;;  %v2386_v13 = vor.u32 %v2385_v35, %v2384_v39  ;;  %v2390_v3 = vshll.u32 %v9349_v29, %v2381_v49 }
 0x2ae   : > { %v2389_v16 = vor.u32 %v2388_v23, %v2387_v8  ;;  %v7438_v36 = vsel %vm4413_vm0, 0, %v4412_v57  ;;  %v2396_v7 = vshll.u32 %v9339_v54, %v2381_v49  ;;  %v2397_v41 = vshrl.u32 %v9342_v30, %v2382_v56 }
 0x2af   : > { %v2395_v20 = vor.u32 %v2394_v2, %v2393_v59  ;;  %v1947_v45 = vxor.u32 2147483648, %v7423_v11  ;;  %v2036_v15 = vsel %vm1953_vm10, %v2035_v25, %v2034_v14  ;;  %v7448_v50 = vsel %vm1953_vm10, %v2037_v0, %v7149_v1 }
 0x2b0   : > { %v2392_v39 = vor.u32 %v2391_v52, %v2390_v3  ;;  %v2130_v35 = vor.u32 %v2129_v62, %v2128_v22  ;;  %v2375_v8 = vor.u32 8388608, %v2374_v9  ;;  %v2398_v57 = vor.u32 %v2397_v41, %v2396_v7 }
 0x2b1   : > { %vm2399_vm11 = vcmp.lt.s32.totalorder %v7430_v58, 1  ;;  %vm1838_vm1 = vcmp.lt.s32.totalorder %v7293_v61, 2  ;;  %v2235_v49 = vsub.s32 4294967266, %v7438_v36  ;;  %v7453_v23 = vsub.s32 %v2323_v55, %v2326_v34 }
 0x2b2   : > { %vm2402_vm2 = vcmp.lt.s32.totalorder %v7430_v58, 4  ;;  %v2407_v14 = vsel %vm2399_vm11, %v2386_v13, %v2389_v16  ;;  %v4890_v25 = vpop.eup %4889  ;;  %vm1946_vm3 = vcmp.eq.s32.totalorder %v7391_v27, 2  ;;  %v7462_v1 = vsel %vm7412_vm15, %v9434_v53, %v2036_v15 }
 0x2b3   : > { %v2135_v0 = vand.u32 2147483647, %v7418_v6  ;;  %vm2401_vm13 = vcmp.lt.s32.totalorder %v7430_v58, 3  ;;  %v2408_v22 = vsel %vm2402_vm2, %v2395_v20, 920167782  ;;  %vm1943_vm5 = vcmp.eq.s32.totalorder %v7391_v27, 0 }
 0x2b4   : > { %v2383_v55 = vshrl.u32 %v9351_v44, %v2382_v56  ;;  %vm2400_vm4 = vcmp.lt.s32.totalorder %v7430_v58, 2  ;;  %v2404_v62 = vsel %vm2402_vm2, %v2392_v39, 2102212464  ;;  %v2409_v9 = vsel %vm2401_vm13, %v2392_v39, %v2408_v22 }
 0x2b5   : > { %v2410_v52 = vsel %vm2400_vm4, %v2407_v14, %v2409_v9  ;;  %v2411_v59 = vsel %vm2399_vm11, %v2389_v16, %v2392_v39  ;;  %v2412_v6 = vsel %vm2402_vm2, %v2398_v57, 1326507024  ;;  %v2415_v2 = vshll.u32 %v2375_v8, 8  ;;  %v9460_v8 = vld [vmem:[#allocation14_spill] sm:$0xff] }
 0x2b6   : > { %vm2057_vm6 = vcmp.lt.s32.totalorder %v9439_v37, 0  ;;  %v2137_v34 = vcvt.s32.f32 %v2130_v35  ;;  %v2236_v3 = vadd.s32 127, %v2235_v49  ;;  %v2329_v56 = vsub.s32 0, %v7453_v23 }
 0x2b7   : > { %v2403_v7 = vsel %vm2399_vm11, %v2383_v55, %v2386_v13  ;;  %v2405_v41 = vsel %vm2401_vm13, %v2389_v16, %v2404_v62  ;;  %v2413_v15 = vsel %vm2401_vm13, %v2395_v20, %v2412_v6  ;;  %vm1731_vm7 = vweird.f32 %v9412_v28 }
 0x2b8   : > { %v7483_v14 = vmul.u32.u64.low %v2415_v2, %v2410_v52  ;;  %v7484_v22 = vmul.u32.u64.high %v2415_v2, %v2410_v52, %v7483_v14  ;;  %vm1942_vm8 = vcmp.lt.s32.totalorder %v7391_v27, 2  ;;  %v1944_v39 = vxor.u32 2147483648, %v4890_v25 }
 0x2b9   : > { %v2231_v35 = vsub.s32 32, %v7438_v36  ;;  %v2414_v13 = vsel %vm2400_vm4, %v2411_v59, %v2413_v15  ;;  %v2474_v57 = vand.u32 2139095040, %v9460_v8  ;;  %vm1835_vm9 = vweird.f32 %v9424_v60 }
 0x2ba   : > { %4891 = vcosq.f32 %v7462_v1  ;;  %v9461_v16 = vand.u32 2147483647, %v9439_v37  ;;  %v2138_v49 = vmul.f32 %v2137_v34, %v2135_v0  ;;  %v2215_v9 = vadd.s32 %v7286_v32, %v7297_v38 }
 0x2bb   : > { %v7501_v55 = vmul.u32.u64.low %v2415_v2, %v2414_v13  ;;  %v7502_v62 = vmul.u32.u64.high %v2415_v2, %v2414_v13, %v7501_v55  ;;  %v2237_v52 = vshll.u32 %v2236_v3, 23  ;;  %v2406_v59 = vsel %vm2400_vm4, %v2403_v7, %v2405_v41 }
 0x2bc   : > { %vm7497_vm12 = vcmp.le.f32.partialorder %v9461_v16, 0.7853982  ;;  %v2475_v6 = vshrl.u32 %v2474_v57, 23  ;;  %v1845_v15 = vsel %vm1838_vm1, %v7407_v46, %v7401_v21  ;;  %vm1939_vm14 = vweird.f32 %v9429_v18 }
 0x2bd   : > { %v2141_v0 = vsub.s32 4, %v7227_v31  ;;  %v4415_v34 = vmin.u32 %v2329_v56, %v7453_v23  ;;  %v2425_v13 = vadd.s32 1, %v7484_v22  ;;  %v1948_v32 = vsel %vm1946_vm3, %v1947_v45, %v4890_v25 }
 0x2be   : > { %v2040_v38 = vsel %vm7412_vm15, 0, %v7448_v50  ;;  %v2233_v58 = vshrl.u32 %v2215_v9, %v2231_v35  ;;  %v4422_v3 = vadd.s32 4294967169, %v2475_v6  ;;  %v1945_v61 = vsel %vm1943_vm5, %v7423_v11, %v1944_v39  ;;  %v9464_v35 = vld [vmem:[#allocation19_spill] sm:$0xff] }
 0x2bf   : > { %v2139_v21 = vxor.u32 2147483648, %v2138_v49  ;;  %v2422_v46 = vmul.u32 %v2415_v2, %v2406_v59  ;;  %vm2424_vm10 = vc.u32 %v7502_v62, %v7483_v14  ;;  %v2232_v56 = vshll.u32 %v7353_v4, %v7438_v36 }
 0x2c0   : > { %v2238_v7 = vor.u32 4788187, %v2237_v52  ;;  %v2426_v45 = vsel %vm2424_vm10, %v2425_v13, %v7484_v22  ;;  %v2481_v25 = vadd.s32 1, %v4422_v3  ;;  %v2142_v51 = vsel %vm2057_vm6, %v2141_v0, %v7227_v31 }
 0x2c1   : > { %v2331_v50 = vclz %v4415_v34  ;;  %v2427_v41 = vadd.s32 %v2426_v45, %v2422_v46  ;;  %v9314_v11 = vand.u32 2147483647, %v9460_v8  ;;  %v2044_v39 = vadd.s32 3, %v2040_v38 }
 0x2c2   : > { %v2234_v2 = vor.u32 %v2233_v58, %v2232_v56  ;;  %vm2482_vm15 = vcmp.gt.s32.totalorder %v2481_v25, 0  ;;  %v2578_v57 = vand.u32 2139095040, %v9464_v35  ;;  %v7537_v4 = vsel %vm1731_vm7, nan, %v7389_v19 }
 0x2c3   : > { %v1949_v36 = vsel %vm1942_vm8, %v1945_v61, %v1948_v32  ;;  %v2428_v22 = vadd.s32 536870912, %v2427_v41  ;;  %v2483_v16 = vsel %vm2482_vm15, %v2481_v25, 0  ;;  %v7543_v31 = vsel %vm1835_vm9, nan, %v1845_v15 }
 0x2c4   : > { %v2140_v55 = vsel %vm2057_vm6, %v2139_v21, %v2138_v49  ;;  %v2144_v9 = vsel %vm7497_vm12, 0, %v2142_v51  ;;  %v2239_v52 = vand.u32 2147483647, %v2238_v7  ;;  %v7549_v59 = vpop.eup %4891  ;;  %v4416_v28 = vadd.s32 4294967294, %v2331_v50 }
 0x2c5   : > { %v7551_v19 = vshrl.u32 %v2428_v22, 30  ;;  %v2478_v27 = vand.u32 8388607, %v9314_v11  ;;  %v2485_v6 = vand.u32 31, %v2483_v16  ;;  %v7557_v60 = vsel %vm1939_vm14, nan, %v1949_v36 }
 0x2c6   : > { %v7559_v15 = vand.u32 3, %v2044_v39  ;;  %v2241_v49 = vcvt.s32.f32 %v2234_v2  ;;  %v2579_v0 = vshrl.u32 %v2578_v57, 23  ;;  %4893 = vsinq.f32 %v7462_v1 }
 0x2c7   : > { %v2148_v34 = vadd.s32 3, %v2144_v9  ;;  %v2430_v13 = vshll.u32 %v7551_v19, 30  ;;  %v2486_v32 = vsub.s32 32, %v2485_v6  ;;  %v7567_v58 = vsel %vm7497_vm12, %v9439_v37, %v2140_v55 }
 0x2c8   : > { %v2242_v18 = vmul.f32 %v2241_v49, %v2239_v52  ;;  %v2245_v3 = vsub.s32 4, %v7337_v12  ;;  %vm4417_vm0 = vcmp.lt.s32.totalorder %v4416_v28, 0  ;;  %v2479_v21 = vor.u32 8388608, %v2478_v27 }
 0x2c9   : > { %v7570_v61 = vsub.s32 %v2427_v41, %v2430_v13  ;;  %v2489_v1 = vshrl.u32 %v9357_v43, %v2486_v32  ;;  %v2484_v46 = vshrl.u32 %v2483_v16, 5  ;;  %v2492_v56 = vshrl.u32 %v9349_v29, %v2486_v32 }
 0x2ca   : > { %v2495_v7 = vshrl.u32 %v9341_v10, %v2486_v32  ;;  %v4426_v45 = vadd.s32 4294967169, %v2579_v0  ;;  %v2488_v20 = vshll.u32 %v9351_v44, %v2485_v6  ;;  %v2491_v51 = vshll.u32 %v9357_v43, %v2485_v6 }
 0x2cb   : > { %v2433_v25 = vsub.s32 0, %v7570_v61  ;;  %v2494_v50 = vshll.u32 %v9349_v29, %v2485_v6  ;;  %4895 = vcosq.f32 %v7567_v58  ;;  %vm2161_vm11 = vcmp.lt.s32.totalorder %v9448_v5, 0 }
 0x2cc   : > { %v7581_v41 = vsel %vm4417_vm0, 0, %v4416_v28  ;;  %v2497_v39 = vshll.u32 %v9341_v10, %v2485_v6  ;;  %v2498_v2 = vshrl.u32 %v9339_v54, %v2486_v32  ;;  %v2490_v36 = vor.u32 %v2489_v1, %v2488_v20 }
 0x2cd   : > { %v4419_v57 = vmin.u32 %v2433_v25, %v7570_v61  ;;  %v2493_v22 = vor.u32 %v2492_v56, %v2491_v51  ;;  %v2496_v16 = vor.u32 %v2495_v7, %v2494_v50  ;;  %v2243_v55 = vxor.u32 2147483648, %v2242_v18 }
 0x2ce   : > { %v2499_v9 = vor.u32 %v2498_v2, %v2497_v39  ;;  %v2500_v52 = vshll.u32 %v9339_v54, %v2485_v6  ;;  %v2501_v27 = vshrl.u32 %v9342_v30, %v2486_v32  ;;  %vm2050_vm1 = vcmp.eq.s32.totalorder %v7559_v15, 2 }
 0x2cf   : > { %v2339_v28 = vsub.s32 4294967266, %v7581_v41  ;;  %vm2503_vm2 = vcmp.lt.s32.totalorder %v2484_v46, 1  ;;  %v2519_v49 = vshll.u32 %v2479_v21, 8  ;;  %v2585_v0 = vadd.s32 1, %v4426_v45 }
 0x2d0   : > { %v9465_v13 = vand.u32 2147483647, %v9448_v5  ;;  %v2487_v1 = vshrl.u32 %v9351_v44, %v2486_v32  ;;  %v2502_v56 = vor.u32 %v2501_v27, %v2500_v52  ;;  %vm2505_vm13 = vcmp.lt.s32.totalorder %v2484_v46, 3  ;;  %v4894_v6 = vpop.eup %4893 }
 0x2d1   : > { %vm2506_vm5 = vcmp.lt.s32.totalorder %v2484_v46, 4  ;;  %v2435_v7 = vclz %v4419_v57  ;;  %v2511_v51 = vsel %vm2503_vm2, %v2490_v36, %v2493_v22  ;;  %vm2047_vm4 = vcmp.eq.s32.totalorder %v7559_v15, 0 }
 0x2d2   : > { %vm7592_vm3 = vcmp.le.f32.partialorder %v9465_v13, 0.7853982  ;;  %v2508_v20 = vsel %vm2506_vm5, %v2496_v16, 2102212464  ;;  %v2512_v50 = vsel %vm2506_vm5, %v2499_v9, 920167782  ;;  %v2515_v45 = vsel %vm2503_vm2, %v2493_v22, %v2496_v16 }
 0x2d3   : > { %vm2504_vm6 = vcmp.lt.s32.totalorder %v2484_v46, 2  ;;  %v2513_v21 = vsel %vm2505_vm13, %v2496_v16, %v2512_v50  ;;  %v2516_v39 = vsel %vm2506_vm5, %v2502_v56, 1326507024  ;;  %v2340_v2 = vadd.s32 127, %v2339_v28 }
 0x2d4   : > { %v2507_v32 = vsel %vm2503_vm2, %v2487_v1, %v2490_v36  ;;  %v2514_v52 = vsel %vm2504_vm6, %v2511_v51, %v2513_v21  ;;  %v2517_v27 = vsel %vm2505_vm13, %v2499_v9, %v2516_v39  ;;  %v2509_v57 = vsel %vm2505_vm13, %v2493_v22, %v2508_v20 }
 0x2d5   : > { %v2518_v13 = vsel %vm2504_vm6, %v2515_v45, %v2517_v27  ;;  %v7606_v11 = vmul.u32.u64.low %v2519_v49, %v2514_v52  ;;  %v7607_v33 = vmul.u32.u64.high %v2519_v49, %v2514_v52, %v7606_v11  ;;  %v7610_v38 = vand.u32 3, %v2148_v34  ;;  %v7617_v1 = vpop.eup %4895 }
 0x2d6   : > { %v2244_v16 = vsel %vm2161_vm11, %v2243_v55, %v2242_v18  ;;  %v2246_v36 = vsel %vm2161_vm11, %v2245_v3, %v7337_v12  ;;  %v4420_v28 = vadd.s32 4294967294, %v2435_v7  ;;  %v2335_v22 = vsub.s32 32, %v7581_v41 }
 0x2d7   : > { %v7620_v9 = vmul.u32.u64.low %v2519_v49, %v2518_v13  ;;  %v7621_v56 = vmul.u32.u64.high %v2519_v49, %v2518_v13, %v7620_v9  ;;  %vm2586_vm7 = vcmp.gt.s32.totalorder %v2585_v0, 0  ;;  %v2048_v20 = vxor.u32 2147483648, %v4894_v6 }
 0x2d8   : > { %v2341_v51 = vshll.u32 %v2340_v2, 23  ;;  %v2510_v34 = vsel %vm2504_vm6, %v2507_v32, %v2509_v57  ;;  %v2587_v50 = vsel %vm2586_vm7, %v2585_v0, 0  ;;  %v9468_v18 = vxor.u32 2147483648, %v7549_v59 }
 0x2d9   : > { %v2319_v12 = vadd.s32 %v7373_v48, %v7379_v24  ;;  %v2529_v3 = vadd.s32 1, %v7607_v33  ;;  %v2589_v7 = vand.u32 31, %v2587_v50  ;;  %v2247_v21 = vsel %vm7592_vm3, %v9448_v5, %v2244_v16 }
 0x2da   : > { %v7628_v55 = vsel %vm2050_vm1, %v9468_v18, %v4894_v6  ;;  %v2248_v46 = vsel %vm7592_vm3, 0, %v2246_v36  ;;  %vm4421_vm8 = vcmp.lt.s32.totalorder %v4420_v28, 0  ;;  %v9316_v0 = vand.u32 2147483647, %v9464_v35 }
 0x2db   : > { %v2337_v45 = vshrl.u32 %v2319_v12, %v2335_v22  ;;  %v2526_v39 = vmul.u32 %v2519_v49, %v2510_v34  ;;  %vm2528_vm9 = vc.u32 %v7621_v56, %v7606_v11  ;;  %v2590_v6 = vsub.s32 32, %v2589_v7 }
 0x2dc   : > { %v7644_v48 = vsel %vm2047_vm4, %v7549_v59, %v2048_v20  ;;  %4897 = vsinq.f32 %v7567_v58  ;;  %v2342_v24 = vor.u32 4788187, %v2341_v51  ;;  %v2530_v25 = vsel %vm2528_vm9, %v2529_v3, %v7607_v33 }
 0x2dd   : > { %v7648_v2 = vadd.s32 3, %v2248_v46  ;;  %v2336_v32 = vshll.u32 %v7453_v23, %v7581_v41  ;;  %v7652_v49 = vsel %vm4421_vm8, 0, %v4420_v28  ;;  %v2531_v52 = vadd.s32 %v2530_v25, %v2526_v39 }
 0x2de   : > { %4899 = vcosq.f32 %v2247_v21  ;;  %v2349_v57 = vsub.s32 4, %v7425_v40  ;;  %v2582_v59 = vand.u32 8388607, %v9316_v0  ;;  %v2593_v33 = vshrl.u32 %v9357_v43, %v2590_v6 }
 0x2df   : > { %v2338_v58 = vor.u32 %v2337_v45, %v2336_v32  ;;  %v2532_v13 = vadd.s32 536870912, %v2531_v52  ;;  %v2596_v16 = vshrl.u32 %v9349_v29, %v2590_v6  ;;  %v2343_v36 = vand.u32 2147483647, %v2342_v24 }
 0x2e0   : > { %v2443_v23 = vsub.s32 4294967266, %v7652_v49  ;;  %v7661_v41 = vshrl.u32 %v2587_v50, 5  ;;  %v2599_v28 = vshrl.u32 %v9341_v10, %v2590_v6  ;;  %v2592_v9 = vshll.u32 %v9351_v44, %v2589_v7 }
 0x2e1   : > { %v7664_v22 = vshrl.u32 %v2532_v13, 30  ;;  %v2595_v20 = vshll.u32 %v9357_v43, %v2589_v7  ;;  %v2602_v51 = vshrl.u32 %v9339_v54, %v2590_v6  ;;  %v2598_v34 = vshll.u32 %v9349_v29, %v2589_v7 }
 0x2e2   : > { %v2601_v18 = vshll.u32 %v9341_v10, %v2589_v7  ;;  %v2604_v12 = vshll.u32 %v9339_v54, %v2589_v7  ;;  %v2605_v3 = vshrl.u32 %v9342_v30, %v2590_v6  ;;  %v2345_v50 = vcvt.s32.f32 %v2338_v58 }
 0x2e3   : > { %v2534_v46 = vshll.u32 %v7664_v22, 30  ;;  %v2594_v45 = vor.u32 %v2593_v33, %v2592_v9  ;;  %v2597_v39 = vor.u32 %v2596_v16, %v2595_v20  ;;  %vm2046_vm12 = vcmp.lt.s32.totalorder %v7559_v15, 2 }
 0x2e4   : > { %4901 = vsinq.f32 %v2247_v21  ;;  %v2600_v24 = vor.u32 %v2599_v28, %v2598_v34  ;;  %v2603_v25 = vor.u32 %v2602_v51, %v2601_v18  ;;  %v2606_v32 = vor.u32 %v2605_v3, %v2604_v12 }
 0x2e5   : > { %vm2265_vm14 = vcmp.lt.s32.totalorder %v9452_v26, 0  ;;  %v7676_v13 = vmul.f32 %v2345_v50, %v2343_v36  ;;  %v2423_v7 = vadd.s32 %v7483_v14, %v7502_v62  ;;  %v7680_v0 = vsub.s32 %v2531_v52, %v2534_v46  ;;  %v9472_v50 = vld [vmem:[#allocation23_spill] sm:$0xff] }
 0x2e6   : > { %v2583_v58 = vor.u32 8388608, %v2582_v59  ;;  %v4898_v27 = vpop.eup %4897  ;;  %v2439_v33 = vsub.s32 32, %v7652_v49  ;;  %v2444_v16 = vadd.s32 127, %v2443_v23  ;;  %v2591_v9 = vshrl.u32 %v9351_v44, %v2590_v6 }
 0x2e7   : > { %vm2607_vm10 = vcmp.lt.s32.totalorder %v7661_v41, 1  ;;  %vm2043_vm15 = vweird.f32 %v9434_v53  ;;  %vm2154_vm0 = vcmp.eq.s32.totalorder %v7610_v38, 2  ;;  %v2537_v21 = vsub.s32 0, %v7680_v0 }
 0x2e8   : > { %vm2609_vm11 = vcmp.lt.s32.totalorder %v7661_v41, 3  ;;  %vm2610_vm1 = vcmp.lt.s32.totalorder %v7661_v41, 4  ;;  %v2615_v14 = vsel %vm2607_vm10, %v2594_v45, %v2597_v39  ;;  %v7692_v62 = vpop.eup %4899  ;;  %vm2151_vm2 = vcmp.eq.s32.totalorder %v7610_v38, 0 }
 0x2e9   : > { %v9469_v6 = vand.u32 2147483647, %v9452_v26  ;;  %v2612_v59 = vsel %vm2610_vm1, %v2600_v24, 2102212464  ;;  %v2616_v36 = vsel %vm2610_vm1, %v2603_v25, 920167782  ;;  %v2619_v23 = vsel %vm2607_vm10, %v2597_v39, %v2600_v24 }
 0x2ea   : > { %v2620_v28 = vsel %vm2610_vm1, %v2606_v32, 1326507024  ;;  %v4423_v20 = vmin.u32 %v2537_v21, %v7680_v0  ;;  %vm2608_vm13 = vcmp.lt.s32.totalorder %v7661_v41, 2  ;;  %v2617_v51 = vsel %vm2609_vm11, %v2600_v24, %v2616_v36 }
 0x2eb   : > { %vm7697_vm3 = vcmp.le.f32.partialorder %v9469_v6, 0.7853982  ;;  %v2621_v34 = vsel %vm2609_vm11, %v2603_v25, %v2620_v28  ;;  %v2618_v18 = vsel %vm2608_vm13, %v2615_v14, %v2617_v51  ;;  %v2623_v3 = vshll.u32 %v2583_v58, 8 }
 0x2ec   : > { %v2622_v12 = vsel %vm2608_vm13, %v2619_v23, %v2621_v34  ;;  %v2682_v46 = vand.u32 2139095040, %v9472_v50  ;;  %vm2150_vm5 = vcmp.lt.s32.totalorder %v7610_v38, 2  ;;  %v2445_v32 = vshll.u32 %v2444_v16, 23 }
 0x2ed   : > { %v2539_v21 = vclz %v4423_v20  ;;  %v2611_v6 = vsel %vm2607_vm10, %v2591_v9, %v2594_v45  ;;  %v2613_v24 = vsel %vm2609_vm11, %v2597_v39, %v2612_v59  ;;  %v2053_v58 = vsel %vm2046_vm12, %v7644_v48, %v7628_v55 }
 0x2ee   : > { %v7719_v25 = vmul.u32.u64.low %v2623_v3, %v2622_v12  ;;  %v7720_v36 = vmul.u32.u64.high %v2623_v3, %v2622_v12, %v7719_v25  ;;  %v7722_v14 = vmul.u32.u64.low %v2623_v3, %v2618_v18  ;;  %v7723_v28 = vmul.u32.u64.high %v2623_v3, %v2618_v18, %v7722_v14  ;;  %v4902_v51 = vpop.eup %4901 }
 0x2ef   : > { %v2152_v16 = vxor.u32 2147483648, %v4898_v27  ;;  %v2441_v23 = vshrl.u32 %v2423_v7, %v2439_v33  ;;  %v2683_v20 = vshrl.u32 %v2682_v46, 23  ;;  %v7731_v45 = vand.u32 3, %v7648_v2 }
 0x2f0   : > { %v2350_v39 = vsel %vm2265_vm14, %v2349_v57, %v7425_v40  ;;  %vm2369_vm4 = vcmp.lt.s32.totalorder %v9456_v63, 0  ;;  %v4424_v9 = vadd.s32 4294967294, %v2539_v21  ;;  %v2614_v15 = vsel %vm2608_vm13, %v2611_v6, %v2613_v24 }
 0x2f1   : > { %vm2147_vm6 = vweird.f32 %v9439_v37  ;;  %v2347_v55 = vxor.u32 2147483648, %v7676_v13  ;;  %v2440_v48 = vshll.u32 %v7570_v61, %v7652_v49  ;;  %v2446_v2 = vor.u32 4788187, %v2445_v32 }
 0x2f2   : > { %v4430_v7 = vadd.s32 4294967169, %v2683_v20  ;;  %v7747_v33 = vsel %vm2043_vm15, nan, %v2053_v58  ;;  %v9473_v40 = vxor.u32 2147483648, %v7617_v1  ;;  %vm2632_vm7 = vc.u32 %v7720_v36, %v7722_v14 }
 0x2f3   : > { %v2633_v41 = vadd.s32 1, %v7723_v28  ;;  %v2153_v61 = vsel %vm2151_vm2, %v7617_v1, %v2152_v16  ;;  %v2352_v49 = vsel %vm7697_vm3, 0, %v2350_v39  ;;  %v9474_v53 = vand.u32 2147483647, %v9456_v63 }
 0x2f4   : > { %v2156_v57 = vsel %vm2154_vm0, %v9473_v40, %v4898_v27  ;;  %v2442_v34 = vor.u32 %v2441_v23, %v2440_v48  ;;  %v2630_v27 = vmul.u32 %v2623_v3, %v2614_v15  ;;  %vm2255_vm9 = vcmp.eq.s32.totalorder %v7731_v45, 0  ;;  %v9477_v3 = vld [vmem:[#allocation18_spill] sm:$0xff] }
 0x2f5   : > { %vm7763_vm8 = vcmp.le.f32.partialorder %v9474_v53, 0.7853982  ;;  %vm4425_vm12 = vcmp.lt.s32.totalorder %v4424_v9, 0  ;;  %v2634_v18 = vsel %vm2632_vm7, %v2633_v41, %v7723_v28  ;;  %v2689_v12 = vadd.s32 1, %v4430_v7 }
 0x2f6   : > { %v2348_v1 = vsel %vm2265_vm14, %v2347_v55, %v7676_v13  ;;  %v2447_v46 = vand.u32 2147483647, %v2446_v2  ;;  %v2453_v32 = vsub.s32 4, %v7551_v19  ;;  %v2635_v21 = vadd.s32 %v2634_v18, %v2630_v27 }
 0x2f7   : > { %v2157_v6 = vsel %vm2150_vm5, %v2153_v61, %v2156_v57  ;;  %v2356_v24 = vadd.s32 3, %v2352_v49  ;;  %vm2690_vm10 = vcmp.gt.s32.totalorder %v2689_v12, 0  ;;  %v2786_v25 = vand.u32 2139095040, %v9477_v3 }
 0x2f8   : > { %v2259_v58 = vxor.u32 2147483648, %v7692_v62  ;;  %v2449_v16 = vcvt.s32.f32 %v2442_v34  ;;  %v7777_v28 = vsel %vm4425_vm12, 0, %v4424_v9  ;;  %v2636_v23 = vadd.s32 536870912, %v2635_v21 }
 0x2f9   : > { %v2256_v20 = vxor.u32 2147483648, %v4902_v51  ;;  %vm2258_vm14 = vcmp.eq.s32.totalorder %v7731_v45, 2  ;;  %v2351_v13 = vsel %vm7697_vm3, %v9452_v26, %v2348_v1  ;;  %v2691_v39 = vsel %vm2690_vm10, %v2689_v12, 0 }
 0x2fa   : > { %v2450_v38 = vmul.f32 %v2449_v16, %v2447_v46  ;;  %v7786_v15 = vsel %vm2369_vm4, %v2453_v32, %v7551_v19  ;;  %v7788_v55 = vshrl.u32 %v2636_v23, 30  ;;  %v9317_v9 = vand.u32 2147483647, %v9472_v50 }
 0x2fb   : > { %v7793_v48 = vsel %vm2147_vm6, nan, %v2157_v6  ;;  %v2547_v2 = vsub.s32 4294967266, %v7777_v28  ;;  %v2693_v7 = vand.u32 31, %v2691_v39  ;;  %v2787_v52 = vshrl.u32 %v2786_v25, 23 }
 0x2fc   : > { %9478 = vst [vmem:[#allocation20_spill] sm:$0xff] %v7793_v48  ;;  %v7796_v40 = vsel %vm2258_vm14, %v2259_v58, %v4902_v51  ;;  %4903 = vcosq.f32 %v2351_v13  ;;  %v7798_v57 = vand.u32 3, %v2356_v24  ;;  %v2638_v19 = vshll.u32 %v7788_v55, 30 }
 0x2fd   : > { %v7804_v41 = vsel %vm2255_vm9, %v7692_v62, %v2256_v20  ;;  %4905 = vsinq.f32 %v2351_v13  ;;  %v2694_v61 = vsub.s32 32, %v2693_v7  ;;  %v2451_v49 = vxor.u32 2147483648, %v2450_v38 }
 0x2fe   : > { %v2527_v51 = vadd.s32 %v7606_v11, %v7621_v56  ;;  %v7811_v53 = vsub.s32 %v2635_v21, %v2638_v19  ;;  %v2686_v34 = vand.u32 8388607, %v9317_v9  ;;  %v2548_v27 = vadd.s32 127, %v2547_v2 }
 0x2ff   : > { %v2697_v18 = vshrl.u32 %v9357_v43, %v2694_v61  ;;  %v2700_v62 = vshrl.u32 %v9349_v29, %v2694_v61  ;;  %v4434_v12 = vadd.s32 4294967169, %v2787_v52  ;;  %v2696_v46 = vshll.u32 %v9351_v44, %v2693_v7 }
 0x300   : > { %v2641_v1 = vsub.s32 0, %v7811_v53  ;;  %v2699_v32 = vshll.u32 %v9357_v43, %v2693_v7  ;;  %v2703_v6 = vshrl.u32 %v9341_v10, %v2694_v61  ;;  %v2692_v11 = vshrl.u32 %v2691_v39, 5 }
 0x301   : > { %v2702_v56 = vshll.u32 %v9349_v29, %v2693_v7  ;;  %v2705_v21 = vshll.u32 %v9341_v10, %v2693_v7  ;;  %v2706_v24 = vshrl.u32 %v9339_v54, %v2694_v61  ;;  %v2452_v25 = vsel %vm2369_vm4, %v2451_v49, %v2450_v38 }
 0x302   : > { %v4427_v58 = vmin.u32 %v2641_v1, %v7811_v53  ;;  %v2698_v16 = vor.u32 %v2697_v18, %v2696_v46  ;;  %v2701_v23 = vor.u32 %v2700_v62, %v2699_v32  ;;  %v2708_v2 = vshll.u32 %v9339_v54, %v2693_v7 }
 0x303   : > { %v2704_v20 = vor.u32 %v2703_v6, %v2702_v56  ;;  %v2707_v13 = vor.u32 %v2706_v24, %v2705_v21  ;;  %v2709_v52 = vshrl.u32 %v9342_v30, %v2694_v61  ;;  %vm2254_vm15 = vcmp.lt.s32.totalorder %v7731_v45, 2 }
 0x304   : > { %v2543_v39 = vsub.s32 32, %v7777_v28  ;;  %v2549_v19 = vshll.u32 %v2548_v27, 23  ;;  %v2643_v9 = vclz %v4427_v58  ;;  %v2687_v37 = vor.u32 8388608, %v2686_v34 }
 0x305   : > { %v2695_v48 = vshrl.u32 %v9351_v44, %v2694_v61  ;;  %v2710_v38 = vor.u32 %v2709_v52, %v2708_v2  ;;  %vm2711_vm0 = vcmp.lt.s32.totalorder %v2692_v11, 1  ;;  %v2793_v49 = vadd.s32 1, %v4434_v12 }
 0x306   : > { %v7832_v18 = vpop.eup %4903  ;;  %v4428_v62 = vadd.s32 4294967294, %v2643_v9  ;;  %vm2713_vm11 = vcmp.lt.s32.totalorder %v2692_v11, 3  ;;  %vm2714_vm1 = vcmp.lt.s32.totalorder %v2692_v11, 4  ;;  %v2719_v7 = vsel %vm2711_vm0, %v2698_v16, %v2701_v23 }
 0x307   : > { %v7835_v1 = vpop.eup %4905  ;;  %v2716_v46 = vsel %vm2714_vm1, %v2704_v20, 2102212464  ;;  %v2720_v32 = vsel %vm2714_vm1, %v2707_v13, 920167782  ;;  %v2723_v27 = vsel %vm2711_vm0, %v2701_v23, %v2704_v20  ;;  %v2724_v6 = vsel %vm2714_vm1, %v2710_v38, 1326507024 }
 0x308   : > { %vm2251_vm2 = vweird.f32 %v9448_v5  ;;  %vm4429_vm3 = vcmp.lt.s32.totalorder %v4428_v62, 0  ;;  %vm2712_vm13 = vcmp.lt.s32.totalorder %v2692_v11, 2  ;;  %v2721_v61 = vsel %vm2713_vm11, %v2704_v20, %v2720_v32 }
 0x309   : > { %v2725_v34 = vsel %vm2713_vm11, %v2707_v13, %v2724_v6  ;;  %vm2362_vm5 = vcmp.eq.s32.totalorder %v7798_v57, 2  ;;  %vm2473_vm4 = vcmp.lt.s32.totalorder %v9460_v8, 0  ;;  %v7843_v9 = vsel %vm4429_vm3, 0, %v4428_v62 }
 0x30a   : > { %v2722_v12 = vsel %vm2712_vm13, %v2719_v7, %v2721_v61  ;;  %v2726_v56 = vsel %vm2712_vm13, %v2723_v27, %v2725_v34  ;;  %v2727_v21 = vshll.u32 %v2687_v37, 8  ;;  %v2545_v24 = vshrl.u32 %v2527_v51, %v2543_v39 }
 0x30b   : > { %v2715_v58 = vsel %vm2711_vm0, %v2695_v48, %v2698_v16  ;;  %v2717_v2 = vsel %vm2713_vm11, %v2701_v23, %v2716_v46  ;;  %v2783_v20 = vand.u32 2147483647, %v9477_v3  ;;  %v2544_v62 = vshll.u32 %v7680_v0, %v7777_v28 }
 0x30c   : > { %v7850_v52 = vmul.u32.u64.low %v2727_v21, %v2726_v56  ;;  %v7851_v13 = vmul.u32.u64.high %v2727_v21, %v2726_v56, %v7850_v52  ;;  %v7853_v38 = vmul.u32.u64.low %v2727_v21, %v2722_v12  ;;  %v7854_v32 = vmul.u32.u64.high %v2727_v21, %v2722_v12, %v7853_v38 }
 0x30d   : > { %v2550_v7 = vor.u32 4788187, %v2549_v19  ;;  %v2651_v37 = vsub.s32 4294967266, %v7843_v9  ;;  %vm2794_vm6 = vcmp.gt.s32.totalorder %v2793_v49, 0  ;;  %v2261_v48 = vsel %vm2254_vm15, %v7804_v41, %v7796_v40 }
 0x30e   : > { %v9479_v51 = vsel %vm7763_vm8, 0, %v7786_v15  ;;  %v2718_v23 = vsel %vm2712_vm13, %v2715_v58, %v2717_v2  ;;  %v2795_v39 = vsel %vm2794_vm6, %v2793_v49, 0  ;;  %v2363_v46 = vxor.u32 2147483648, %v7832_v18 }
 0x30f   : > { %v2460_v16 = vadd.s32 3, %v9479_v51  ;;  %v2546_v0 = vor.u32 %v2545_v24, %v2544_v62  ;;  %v2557_v28 = vsub.s32 4, %v7664_v22  ;;  %v2797_v19 = vand.u32 31, %v2795_v39 }
 0x310   : > { %v2455_v27 = vsel %vm7763_vm8, %v9456_v63, %v2452_v25  ;;  %vm2736_vm7 = vc.u32 %v7851_v13, %v7853_v38  ;;  %v2737_v45 = vadd.s32 1, %v7854_v32  ;;  %v2790_v15 = vand.u32 8388607, %v2783_v20 }
 0x311   : > { %v2551_v40 = vand.u32 2147483647, %v2550_v7  ;;  %v2652_v41 = vadd.s32 127, %v2651_v37  ;;  %v2734_v11 = vmul.u32 %v2727_v21, %v2718_v23  ;;  %v2798_v49 = vsub.s32 32, %v2797_v19 }
 0x312   : > { %v7881_v6 = vsel %vm2251_vm2, nan, %v2261_v48  ;;  %v2360_v61 = vxor.u32 2147483648, %v7835_v1  ;;  %v7884_v59 = vand.u32 3, %v2460_v16  ;;  %v2738_v25 = vsel %vm2736_vm7, %v2737_v45, %v7854_v32 }
 0x313   : > { %v7890_v34 = vsel %vm2362_vm5, %v2363_v46, %v7835_v1  ;;  %v2553_v12 = vcvt.s32.f32 %v2546_v0  ;;  %v7895_v56 = vsel %vm2473_vm4, %v2557_v28, %v7664_v22  ;;  %v2739_v5 = vadd.s32 %v2738_v25, %v2734_v11 }
 0x314   : > { %4907 = vcosq.f32 %v2455_v27  ;;  %v2791_v21 = vor.u32 8388608, %v2790_v15  ;;  %v2801_v24 = vshrl.u32 %v9357_v43, %v2798_v49  ;;  %v2804_v58 = vshrl.u32 %v9349_v29, %v2798_v49 }
 0x315   : > { %v2554_v2 = vmul.f32 %v2553_v12, %v2551_v40  ;;  %v2647_v52 = vsub.s32 32, %v7843_v9  ;;  %v2653_v32 = vshll.u32 %v2652_v41, 23  ;;  %v2740_v62 = vadd.s32 536870912, %v2739_v5 }
 0x316   : > { %v2800_v7 = vshll.u32 %v9351_v44, %v2797_v19  ;;  %v2803_v37 = vshll.u32 %v9357_v43, %v2797_v19  ;;  %v2807_v48 = vshrl.u32 %v9341_v10, %v2798_v49  ;;  %v2810_v22 = vshrl.u32 %v9339_v54, %v2798_v49 }
 0x317   : > { %v7904_v51 = vshrl.u32 %v2740_v62, 30  ;;  %v2796_v16 = vshrl.u32 %v2795_v39, 5  ;;  %v2806_v23 = vshll.u32 %v9349_v29, %v2797_v19  ;;  %v2809_v46 = vshll.u32 %v9341_v10, %v2797_v19 }
 0x318   : > { %v2802_v0 = vor.u32 %v2801_v24, %v2800_v7  ;;  %v2805_v28 = vor.u32 %v2804_v58, %v2803_v37  ;;  %v2812_v45 = vshll.u32 %v9339_v54, %v2797_v19  ;;  %v2813_v15 = vshrl.u32 %v9342_v30, %v2798_v49  ;;  %v9483_v37 = vld [vmem:[#allocation22_spill] sm:$0xff] }
 0x319   : > { %4909 = vsinq.f32 %v2455_v27  ;;  %v2631_v40 = vadd.s32 %v7722_v14, %v7720_v36  ;;  %v2742_v41 = vshll.u32 %v7904_v51, 30  ;;  %v2811_v11 = vor.u32 %v2810_v22, %v2809_v46 }
 0x31a   : > { %vm2359_vm8 = vcmp.eq.s32.totalorder %v7798_v57, 0  ;;  %v2555_v39 = vxor.u32 2147483648, %v2554_v2  ;;  %v2648_v25 = vshll.u32 %v7811_v53, %v7843_v9  ;;  %v2808_v12 = vor.u32 %v2807_v48, %v2806_v23 }
 0x31b   : > { %v2814_v24 = vor.u32 %v2813_v15, %v2812_v45  ;;  %v9480_v58 = vand.u32 2147483647, %v9460_v8  ;;  %v2649_v27 = vshrl.u32 %v2631_v40, %v2647_v52  ;;  %v7922_v62 = vsub.s32 %v2739_v5, %v2742_v41 }
 0x31c   : > { %vm2815_vm12 = vcmp.lt.s32.totalorder %v2796_v16, 1  ;;  %v7924_v36 = vshll.u32 %v2791_v21, 8  ;;  %v2654_v14 = vor.u32 4788187, %v2653_v32  ;;  %vm2818_vm10 = vcmp.lt.s32.totalorder %v2796_v16, 4 }
 0x31d   : > { %vm7918_vm9 = vcmp.le.f32.partialorder %v9480_v58, 0.7853982  ;;  %v2823_v7 = vsel %vm2815_vm12, %v2802_v0, %v2805_v28  ;;  %v2890_v53 = vand.u32 2139095040, %v9483_v37  ;;  %v2745_v9 = vsub.s32 0, %v7922_v62 }
 0x31e   : > { %vm2816_vm14 = vcmp.lt.s32.totalorder %v2796_v16, 2  ;;  %vm2817_vm15 = vcmp.lt.s32.totalorder %v2796_v16, 3  ;;  %v2824_v48 = vsel %vm2818_vm10, %v2811_v11, 920167782  ;;  %v4908_v22 = vpop.eup %4907  ;;  %vm2577_vm0 = vcmp.lt.s32.totalorder %v9464_v35, 0 }
 0x31f   : > { %v2820_v52 = vsel %vm2818_vm10, %v2808_v12, 2102212464  ;;  %v2825_v5 = vsel %vm2817_vm15, %v2808_v12, %v2824_v48  ;;  %v2827_v21 = vsel %vm2815_vm12, %v2805_v28, %v2808_v12  ;;  %v2828_v23 = vsel %vm2818_vm10, %v2814_v24, 1326507024 }
 0x320   : > { %v4431_v32 = vmin.u32 %v2745_v9, %v7922_v62  ;;  %v2799_v46 = vshrl.u32 %v9351_v44, %v2798_v49  ;;  %v2826_v45 = vsel %vm2816_vm14, %v2823_v7, %v2825_v5  ;;  %v2829_v15 = vsel %vm2817_vm15, %v2811_v11, %v2828_v23 }
 0x321   : > { %vm2358_vm11 = vcmp.lt.s32.totalorder %v7798_v57, 2  ;;  %vm2466_vm1 = vcmp.eq.s32.totalorder %v7884_v59, 2  ;;  %v2830_v40 = vsel %vm2816_vm14, %v2827_v21, %v2829_v15  ;;  %v2891_v12 = vshrl.u32 %v2890_v53, 23 }
 0x322   : > { %v7940_v41 = vmul.u32.u64.low %v7924_v36, %v2826_v45  ;;  %v7941_v58 = vmul.u32.u64.high %v7924_v36, %v2826_v45, %v7940_v41  ;;  %v9484_v24 = vand.u32 2147483647, %v9464_v35  ;;  %v2650_v7 = vor.u32 %v2649_v27, %v2648_v25 }
 0x323   : > { %v2747_v11 = vclz %v4431_v32  ;;  %v2819_v9 = vsel %vm2815_vm12, %v2799_v46, %v2802_v0  ;;  %v2821_v48 = vsel %vm2817_vm15, %v2805_v28, %v2820_v52  ;;  %v2556_v5 = vsel %vm2473_vm4, %v2555_v39, %v2554_v2  ;;  %v4910_v45 = vpop.eup %4909 }
 0x324   : > { %vm7946_vm2 = vcmp.le.f32.partialorder %v9484_v24, 0.7853982  ;;  %v7955_v21 = vmul.u32.u64.low %v7924_v36, %v2830_v40  ;;  %v7956_v23 = vmul.u32.u64.high %v7924_v36, %v2830_v40, %v7955_v21  ;;  %v4438_v53 = vadd.s32 4294967169, %v2891_v12 }
 0x325   : > { %vm2355_vm3 = vweird.f32 %v9452_v26  ;;  %v2361_v25 = vsel %vm2359_vm8, %v7832_v18, %v2360_v61  ;;  %v2655_v0 = vand.u32 2147483647, %v2654_v14  ;;  %v2661_v28 = vsub.s32 4, %v7788_v55 }
 0x326   : > { %v4432_v27 = vadd.s32 4294967294, %v2747_v11  ;;  %v2560_v2 = vsel %vm7918_vm9, 0, %v7895_v56  ;;  %v2822_v39 = vsel %vm2816_vm14, %v2819_v9, %v2821_v48  ;;  %v2841_v52 = vadd.s32 1, %v7941_v58 }
 0x327   : > { %v2897_v32 = vadd.s32 1, %v4438_v53  ;;  %v2467_v46 = vxor.u32 2147483648, %v4908_v22  ;;  %v2559_v1 = vsel %vm7918_vm9, %v9460_v8, %v2556_v5  ;;  %v2657_v15 = vcvt.s32.f32 %v2650_v7  ;;  %v9487_v5 = vld [vmem:[#allocation27_spill] sm:$0xff] }
 0x328   : > { %vm4433_vm13 = vcmp.lt.s32.totalorder %v4432_v27, 0  ;;  %v2464_v18 = vxor.u32 2147483648, %v4910_v45  ;;  %vm2840_vm5 = vc.u32 %v7956_v23, %v7940_v41  ;;  %v9319_v56 = vand.u32 2147483647, %v9483_v37 }
 0x329   : > { %v7973_v61 = vsel %vm4433_vm13, 0, %v4432_v27  ;;  %v2658_v16 = vmul.f32 %v2657_v15, %v2655_v0  ;;  %v2662_v14 = vsel %vm2577_vm0, %v2661_v28, %v7788_v55  ;;  %v2838_v19 = vmul.u32 %v7924_v36, %v2822_v39 }
 0x32a   : > { %v2755_v40 = vsub.s32 4294967266, %v7973_v61  ;;  %4911 = vcosq.f32 %v2559_v1  ;;  %v2564_v12 = vadd.s32 3, %v2560_v2  ;;  %v2842_v24 = vsel %vm2840_vm5, %v2841_v52, %v7941_v58 }
 0x32b   : > { %vm2898_vm4 = vcmp.gt.s32.totalorder %v2897_v32, 0  ;;  %v2365_v7 = vsel %vm2358_vm11, %v2361_v25, %v7890_v34  ;;  %vm2463_vm6 = vcmp.eq.s32.totalorder %v7884_v59, 0  ;;  %v2468_v11 = vsel %vm2466_vm1, %v2467_v46, %v4910_v45 }
 0x32c   : > { %v2843_v9 = vadd.s32 %v2842_v24, %v2838_v19  ;;  %v2465_v55 = vsel %vm2463_vm6, %v4908_v22, %v2464_v18  ;;  %v2664_v48 = vsel %vm7946_vm2, 0, %v2662_v14  ;;  %v2899_v36 = vsel %vm2898_vm4, %v2897_v32, 0 }
 0x32d   : > { %v2994_v21 = vand.u32 2139095040, %v9487_v5  ;;  %v2659_v53 = vxor.u32 2147483648, %v2658_v16  ;;  %v2756_v58 = vadd.s32 127, %v2755_v40  ;;  %v2894_v57 = vand.u32 8388607, %v9319_v56 }
 0x32e   : > { %v2844_v0 = vadd.s32 536870912, %v2843_v9  ;;  %v7997_v34 = vsel %vm2355_vm3, nan, %v2365_v7  ;;  %vm2462_vm7 = vcmp.lt.s32.totalorder %v7884_v59, 2  ;;  %v8000_v45 = vand.u32 3, %v2564_v12 }
 0x32f   : > { %v2901_v22 = vand.u32 31, %v2899_v36  ;;  %v8002_v25 = vsel %vm2462_vm7, %v2465_v55, %v2468_v11  ;;  %v8004_v28 = vadd.s32 3, %v2664_v48  ;;  %v2751_v27 = vsub.s32 32, %v7973_v61 }
 0x330   : > { %v8007_v2 = vshrl.u32 %v2844_v0, 30  ;;  %4913 = vsinq.f32 %v2559_v1  ;;  %v2735_v39 = vadd.s32 %v7853_v38, %v7851_v13  ;;  %v2995_v52 = vshrl.u32 %v2994_v21, 23 }
 0x331   : > { %v2902_v26 = vsub.s32 32, %v2901_v22  ;;  %v2660_v59 = vsel %vm2577_vm0, %v2659_v53, %v2658_v16  ;;  %v2757_v32 = vshll.u32 %v2756_v58, 23  ;;  %v2895_v15 = vor.u32 8388608, %v2894_v57 }
 0x332   : > { %v2846_v46 = vshll.u32 %v8007_v2, 30  ;;  %v2752_v18 = vshll.u32 %v7922_v62, %v7973_v61  ;;  %v2753_v19 = vshrl.u32 %v2735_v39, %v2751_v27  ;;  %v2904_v38 = vshll.u32 %v9351_v44, %v2901_v22 }
 0x333   : > { %v2905_v14 = vshrl.u32 %v9357_v43, %v2902_v26  ;;  %v2908_v40 = vshrl.u32 %v9349_v29, %v2902_v26  ;;  %v2911_v1 = vshrl.u32 %v9341_v10, %v2902_v26  ;;  %v2914_v16 = vshrl.u32 %v9339_v54, %v2902_v26 }
 0x334   : > { %v8019_v13 = vsub.s32 %v2843_v9, %v2846_v46  ;;  %v8023_v12 = vpop.eup %4911  ;;  %v2900_v24 = vshrl.u32 %v2899_v36, 5  ;;  %v2907_v7 = vshll.u32 %v9357_v43, %v2901_v22  ;;  %v2910_v62 = vshll.u32 %v9349_v29, %v2901_v22 }
 0x335   : > { %v4442_v61 = vadd.s32 4294967169, %v2995_v52  ;;  %v2758_v11 = vor.u32 4788187, %v2757_v32  ;;  %v2906_v48 = vor.u32 %v2905_v14, %v2904_v38  ;;  %v2913_v21 = vshll.u32 %v9341_v10, %v2901_v22 }
 0x336   : > { %v2849_v55 = vsub.s32 0, %v8019_v13  ;;  %v2909_v9 = vor.u32 %v2908_v40, %v2907_v7  ;;  %v2912_v53 = vor.u32 %v2911_v1, %v2910_v62  ;;  %v2916_v58 = vshll.u32 %v9339_v54, %v2901_v22 }
 0x337   : > { %v2917_v0 = vshrl.u32 %v9342_v30, %v2902_v26  ;;  %v2571_v57 = vxor.u32 2147483648, %v8023_v12  ;;  %v2663_v36 = vsel %vm7946_vm2, %v9464_v35, %v2660_v59  ;;  %v2915_v39 = vor.u32 %v2914_v16, %v2913_v21 }
 0x338   : > { %v4435_v27 = vmin.u32 %v2849_v55, %v8019_v13  ;;  %v2754_v52 = vor.u32 %v2753_v19, %v2752_v18  ;;  %v2935_v46 = vshll.u32 %v2895_v15, 8  ;;  %v3001_v14 = vadd.s32 1, %v4442_v61 }
 0x339   : > { %v2918_v32 = vor.u32 %v2917_v0, %v2916_v58  ;;  %v2759_v38 = vand.u32 2147483647, %v2758_v11  ;;  %vm2919_vm8 = vcmp.lt.s32.totalorder %v2900_v24, 1  ;;  %vm2922_vm9 = vcmp.lt.s32.totalorder %v2900_v24, 4 }
 0x33a   : > { %v2851_v40 = vclz %v4435_v27  ;;  %v4914_v22 = vpop.eup %4913  ;;  %vm2459_vm12 = vweird.f32 %v9456_v63  ;;  %v2903_v1 = vshrl.u32 %v9351_v44, %v2902_v26  ;;  %vm2920_vm10 = vcmp.lt.s32.totalorder %v2900_v24, 2 }
 0x33b   : > { %v2924_v7 = vsel %vm2922_vm9, %v2912_v53, 2102212464  ;;  %v2927_v49 = vsel %vm2919_vm8, %v2906_v48, %v2909_v9  ;;  %vm2681_vm14 = vcmp.lt.s32.totalorder %v9472_v50, 0  ;;  %vm2921_vm15 = vcmp.lt.s32.totalorder %v2900_v24, 3 }
 0x33c   : > { %v4436_v59 = vadd.s32 4294967294, %v2851_v40  ;;  %v2928_v18 = vsel %vm2922_vm9, %v2915_v39, 920167782  ;;  %v2931_v19 = vsel %vm2919_vm8, %v2909_v9, %v2912_v53  ;;  %v2923_v15 = vsel %vm2919_vm8, %v2903_v1, %v2906_v48 }
 0x33d   : > { %v2929_v16 = vsel %vm2921_vm15, %v2912_v53, %v2928_v18  ;;  %v2932_v62 = vsel %vm2922_vm9, %v2918_v32, 1326507024  ;;  %vm3002_vm0 = vcmp.gt.s32.totalorder %v3001_v14, 0  ;;  %v2925_v61 = vsel %vm2921_vm15, %v2909_v9, %v2924_v7 }
 0x33e   : > { %vm4437_vm11 = vcmp.lt.s32.totalorder %v4436_v59, 0  ;;  %v2930_v11 = vsel %vm2920_vm10, %v2927_v49, %v2929_v16  ;;  %v2933_v55 = vsel %vm2921_vm15, %v2915_v39, %v2932_v62  ;;  %v2568_v27 = vxor.u32 2147483648, %v4914_v22 }
 0x33f   : > { %v8040_v21 = vsel %vm4437_vm11, 0, %v4436_v59  ;;  %v2934_v26 = vsel %vm2920_vm10, %v2931_v19, %v2933_v55  ;;  %v8043_v58 = vmul.u32.u64.low %v2935_v46, %v2930_v11  ;;  %v8044_v0 = vmul.u32.u64.high %v2935_v46, %v2930_v11, %v8043_v58 }
 0x340   : > { %v9488_v40 = vand.u32 2147483647, %v9472_v50  ;;  %v2761_v53 = vcvt.s32.f32 %v2754_v52  ;;  %v2765_v9 = vsub.s32 4, %v7904_v51  ;;  %v3003_v32 = vsel %vm3002_vm0, %v3001_v14, 0 }
 0x341   : > { %4915 = vcosq.f32 %v2663_v36  ;;  %v8054_v39 = vmul.u32.u64.low %v2935_v46, %v2934_v26  ;;  %v8055_v1 = vmul.u32.u64.high %v2935_v46, %v2934_v26, %v8054_v39  ;;  %v3005_v7 = vand.u32 31, %v3003_v32 }
 0x342   : > { %vm8049_vm1 = vcmp.le.f32.partialorder %v9488_v40, 0.7853982  ;;  %v2762_v49 = vmul.f32 %v2761_v53, %v2759_v38  ;;  %v2859_v59 = vsub.s32 4294967266, %v8040_v21  ;;  %v2926_v18 = vsel %vm2920_vm10, %v2923_v15, %v2925_v61 }
 0x343   : > { %v9318_v19 = vand.u32 2147483647, %v9487_v5  ;;  %vm2567_vm2 = vcmp.eq.s32.totalorder %v8000_v45, 0  ;;  %vm2570_vm3 = vcmp.eq.s32.totalorder %v8000_v45, 2  ;;  %v2945_v52 = vadd.s32 1, %v8044_v0 }
 0x344   : > { %v8063_v16 = vsub.s32 32, %v3005_v7  ;;  %v8068_v14 = vsel %vm2459_vm12, nan, %v8002_v25  ;;  %v8071_v38 = vsel %vm2567_vm2, %v8023_v12, %v2568_v27  ;;  %v8073_v24 = vsel %vm2570_vm3, %v2571_v57, %v4914_v22 }
 0x345   : > { %9491 = vst [vmem:[#allocation15_spill] sm:$0xff] %v8068_v14  ;;  %v8076_v15 = vand.u32 3, %v8004_v28  ;;  %4917 = vsinq.f32 %v2663_v36  ;;  %v8081_v62 = vsel %vm2681_vm14, %v2765_v9, %v7904_v51  ;;  %v2942_v61 = vmul.u32 %v2935_v46, %v2926_v18 }
 0x346   : > { %vm2944_vm13 = vc.u32 %v8055_v1, %v8043_v58  ;;  %v2763_v63 = vxor.u32 2147483648, %v2762_v49  ;;  %v2860_v25 = vadd.s32 127, %v2859_v59  ;;  %v2998_v57 = vand.u32 8388607, %v9318_v19 }
 0x347   : > { %v2946_v12 = vsel %vm2944_vm13, %v2945_v52, %v8044_v0  ;;  %v3008_v28 = vshll.u32 %v9351_v44, %v3005_v7  ;;  %v3009_v36 = vshrl.u32 %v9357_v43, %v8063_v16  ;;  %v3012_v51 = vshrl.u32 %v9349_v29, %v8063_v16 }
 0x348   : > { %v2947_v22 = vadd.s32 %v2946_v12, %v2942_v61  ;;  %v3011_v46 = vshll.u32 %v9357_v43, %v3005_v7  ;;  %v3015_v11 = vshrl.u32 %v9341_v10, %v8063_v16  ;;  %v3017_v55 = vshll.u32 %v9341_v10, %v3005_v7 }
 0x349   : > { %v3018_v26 = vshrl.u32 %v9339_v54, %v8063_v16  ;;  %v2855_v27 = vsub.s32 32, %v8040_v21  ;;  %v8103_v53 = vshrl.u32 %v3003_v32, 5  ;;  %v3010_v9 = vor.u32 %v3009_v36, %v3008_v28 }
 0x34a   : > { %v2948_v40 = vadd.s32 536870912, %v2947_v22  ;;  %v3013_v39 = vor.u32 %v3012_v51, %v3011_v46  ;;  %v3014_v59 = vshll.u32 %v9349_v29, %v3005_v7  ;;  %v2839_v61 = vadd.s32 %v7940_v41, %v7956_v23 }
 0x34b   : > { %v3019_v18 = vor.u32 %v3018_v26, %v3017_v55  ;;  %v8106_v52 = vpop.eup %4915  ;;  %v2999_v19 = vor.u32 8388608, %v2998_v57  ;;  %v3021_v56 = vshrl.u32 %v9342_v30, %v8063_v16  ;;  %v2764_v32 = vsel %vm2681_vm14, %v2763_v63, %v2762_v49 }
 0x34c   : > { %v8110_v12 = vshrl.u32 %v2948_v40, 30  ;;  %v2861_v0 = vshll.u32 %v2860_v25, 23  ;;  %v3016_v28 = vor.u32 %v3015_v11, %v3014_v59  ;;  %v3020_v36 = vshll.u32 %v9339_v54, %v3005_v7 }
 0x34d   : > { %v2857_v51 = vshrl.u32 %v2839_v61, %v2855_v27  ;;  %vm3023_vm5 = vcmp.lt.s32.totalorder %v8103_v53, 1  ;;  %vm3026_vm4 = vcmp.lt.s32.totalorder %v8103_v53, 4  ;;  %vm2566_vm6 = vcmp.lt.s32.totalorder %v8000_v45, 2 }
 0x34e   : > { %v2950_v46 = vshll.u32 %v8110_v12, 30  ;;  %v2675_v41 = vxor.u32 2147483648, %v8106_v52  ;;  %v3022_v23 = vor.u32 %v3021_v56, %v3020_v36  ;;  %v3031_v57 = vsel %vm3023_vm5, %v3010_v9, %v3013_v39 }
 0x34f   : > { %v3032_v49 = vsel %vm3026_vm4, %v3019_v18, 920167782  ;;  %v4918_v63 = vpop.eup %4917  ;;  %v2856_v7 = vshll.u32 %v8019_v13, %v8040_v21  ;;  %vm3025_vm7 = vcmp.lt.s32.totalorder %v8103_v53, 3  ;;  %v3039_v11 = vshll.u32 %v2999_v19, 8 }
 0x350   : > { %v8128_v25 = vsub.s32 %v2947_v22, %v2950_v46  ;;  %vm2671_vm8 = vcmp.eq.s32.totalorder %v8076_v15, 0  ;;  %v2767_v56 = vsel %vm8049_vm1, %v9472_v50, %v2764_v32  ;;  %v2862_v55 = vor.u32 4788187, %v2861_v0 }
 0x351   : > { %vm3024_vm9 = vcmp.lt.s32.totalorder %v8103_v53, 2  ;;  %v3033_v26 = vsel %vm3025_vm7, %v3016_v28, %v3032_v49  ;;  %vm2785_vm12 = vcmp.lt.s32.totalorder %v9477_v3, 0  ;;  %v2858_v13 = vor.u32 %v2857_v51, %v2856_v7 }
 0x352   : > { %v2953_v21 = vsub.s32 0, %v8128_v25  ;;  %v3028_v19 = vsel %vm3026_vm4, %v3016_v28, 2102212464  ;;  %v3034_v22 = vsel %vm3024_vm9, %v3031_v57, %v3033_v26  ;;  %v3035_v27 = vsel %vm3023_vm5, %v3013_v39, %v3016_v28 }
 0x353   : > { %v3036_v0 = vsel %vm3026_vm4, %v3022_v23, 1326507024  ;;  %v8148_v40 = vmul.u32.u64.low %v3039_v11, %v3034_v22  ;;  %v8149_v59 = vmul.u32.u64.high %v3039_v11, %v3034_v22, %v8148_v40  ;;  %v2672_v61 = vxor.u32 2147483648, %v4918_v63  ;;  %v9492_v23 = vld [vmem:[#allocation31_spill] sm:$0xff] }
 0x354   : > { %v4439_v32 = vmin.u32 %v2953_v21, %v8128_v25  ;;  %v3007_v36 = vshrl.u32 %v9351_v44, %v8063_v16  ;;  %v3037_v51 = vsel %vm3025_vm7, %v3019_v18, %v3036_v0  ;;  %v2863_v46 = vand.u32 2147483647, %v2862_v55 }
 0x355   : > { %v2869_v57 = vsub.s32 4, %v8007_v2  ;;  %v3038_v28 = vsel %vm3024_vm9, %v3035_v27, %v3037_v51  ;;  %v3098_v49 = vand.u32 2139095040, %v9492_v23  ;;  %vm2563_vm10 = vweird.f32 %v9460_v8 }
 0x356   : > { %4919 = vcosq.f32 %v2767_v56  ;;  %v2955_v7 = vclz %v4439_v32  ;;  %v3027_v26 = vsel %vm3023_vm5, %v3007_v36, %v3010_v9  ;;  %v3029_v16 = vsel %vm3025_vm7, %v3013_v39, %v3028_v19 }
 0x357   : > { %vm8168_vm14 = vcmp.le.f32.partialorder %v2783_v20, 0.7853982  ;;  %v2865_v55 = vcvt.s32.f32 %v2858_v13  ;;  %v8172_v21 = vmul.u32.u64.low %v3039_v11, %v3038_v28  ;;  %v8173_v22 = vmul.u32.u64.high %v3039_v11, %v3038_v28, %v8172_v21 }
 0x358   : > { %v3099_v27 = vshrl.u32 %v3098_v49, 23  ;;  %v2573_v0 = vsel %vm2566_vm6, %v8071_v38, %v8073_v24  ;;  %vm2674_vm15 = vcmp.eq.s32.totalorder %v8076_v15, 2  ;;  %v9495_v9 = vsel %vm8049_vm1, 0, %v8081_v62 }
 0x359   : > { %v2772_v20 = vadd.s32 3, %v9495_v9  ;;  %v4440_v39 = vadd.s32 4294967294, %v2955_v7  ;;  %vm2667_vm0 = vweird.f32 %v9464_v35  ;;  %v2866_v13 = vmul.f32 %v2865_v55, %v2863_v46 }
 0x35a   : > { %v3030_v19 = vsel %vm3024_vm9, %v3027_v26, %v3029_v16  ;;  %v3049_v32 = vadd.s32 1, %v8149_v59  ;;  %v4446_v36 = vadd.s32 4294967169, %v3099_v27  ;;  %v2673_v45 = vsel %vm2671_vm8, %v8106_v52, %v2672_v61 }
 0x35b   : > { %v2676_v38 = vsel %vm2674_vm15, %v2675_v41, %v4918_v63  ;;  %vm4441_vm11 = vcmp.lt.s32.totalorder %v4440_v39, 0  ;;  %v9320_v48 = vand.u32 2147483647, %v9492_v23  ;;  %v2870_v24 = vsel %vm2785_vm12, %v2869_v57, %v8007_v2 }
 0x35c   : > { %v2958_v62 = vsel %vm4441_vm11, 0, %v4440_v39  ;;  %vm3048_vm1 = vc.u32 %v8173_v22, %v8148_v40  ;;  %v3105_v53 = vadd.s32 1, %v4446_v36  ;;  %v2943_v51 = vadd.s32 %v8043_v58, %v8055_v1  ;;  %v9497_v58 = vld [vmem:[#allocation28_spill] sm:$0xff] }
 0x35d   : > { %v2959_v46 = vsub.s32 32, %v2958_v62  ;;  %v2963_v28 = vsub.s32 4294967266, %v2958_v62  ;;  %v3046_v49 = vmul.u32 %v3039_v11, %v3030_v19  ;;  %4921 = vsinq.f32 %v2767_v56 }
 0x35e   : > { %v2867_v52 = vxor.u32 2147483648, %v2866_v13  ;;  %v3050_v41 = vsel %vm3048_vm1, %v3049_v32, %v8149_v59  ;;  %vm3106_vm2 = vcmp.gt.s32.totalorder %v3105_v53, 0  ;;  %vm2670_vm3 = vcmp.lt.s32.totalorder %v8076_v15, 2 }
 0x35f   : > { %v2961_v63 = vshrl.u32 %v2943_v51, %v2959_v46  ;;  %v2964_v2 = vadd.s32 127, %v2963_v28  ;;  %v3051_v61 = vadd.s32 %v3050_v41, %v3046_v49  ;;  %v8203_v57 = vsel %vm2563_vm10, nan, %v2573_v0 }
 0x360   : > { %9496 = vst [vmem:[#allocation26_spill] sm:$0xff] %v8203_v57  ;;  %v2677_v7 = vsel %vm2670_vm3, %v2673_v45, %v2676_v38  ;;  %v3107_v26 = vsel %vm3106_vm2, %v3105_v53, 0  ;;  %v3202_v1 = vand.u32 2139095040, %v9497_v58  ;;  %v8206_v16 = vpop.eup %4919  ;;  %v2872_v11 = vsel %vm8168_vm14, 0, %v2870_v24 }
 0x361   : > { %v2960_v56 = vshll.u32 %v8128_v25, %v2958_v62  ;;  %v2965_v59 = vshll.u32 %v2964_v2, 23  ;;  %v3052_v15 = vadd.s32 536870912, %v3051_v61  ;;  %v8211_v55 = vand.u32 3, %v2772_v20 }
 0x362   : > { %v2868_v8 = vsel %vm2785_vm12, %v2867_v52, %v2866_v13  ;;  %vm2889_vm13 = vcmp.lt.s32.totalorder %v9483_v37, 0  ;;  %v3102_v21 = vand.u32 8388607, %v9320_v48  ;;  %v3109_v27 = vand.u32 31, %v3107_v26 }
 0x363   : > { %v8220_v0 = vsel %vm2667_vm0, nan, %v2677_v7  ;;  %v2962_v9 = vor.u32 %v2961_v63, %v2960_v56  ;;  %v2966_v39 = vor.u32 4788187, %v2965_v59  ;;  %v8222_v25 = vshrl.u32 %v3052_v15, 30 }
 0x364   : > { %9498 = vst [vmem:[#allocation30_spill] sm:$0xff] %v8220_v0  ;;  %v8225_v19 = vadd.s32 3, %v2872_v11  ;;  %v3110_v32 = vsub.s32 32, %v3109_v27  ;;  %v3203_v13 = vshrl.u32 %v3202_v1, 23  ;;  %v8230_v36 = vsel %vm8168_vm14, %v9477_v3, %v2868_v8 }
 0x365   : > { %v2967_v45 = vand.u32 2147483647, %v2966_v39  ;;  %v2973_v35 = vsub.s32 4, %v8110_v12  ;;  %v3054_v38 = vshll.u32 %v8222_v25, 30  ;;  %v3103_v24 = vor.u32 8388608, %v3102_v21 }
 0x366   : > { %v3113_v62 = vshrl.u32 %v9357_v43, %v3110_v32  ;;  %v3116_v53 = vshrl.u32 %v9349_v29, %v3110_v32  ;;  %v3119_v51 = vshrl.u32 %v9341_v10, %v3110_v32  ;;  %v2969_v46 = vcvt.s32.f32 %v2962_v9 }
 0x367   : > { %v8237_v28 = vsub.s32 %v3051_v61, %v3054_v38  ;;  %v3112_v49 = vshll.u32 %v9351_v44, %v3109_v27  ;;  %v3122_v18 = vshrl.u32 %v9339_v54, %v3110_v32  ;;  %v8241_v52 = vpop.eup %4921  ;;  %v3108_v41 = vshrl.u32 %v3107_v26, 5 }
 0x368   : > { %v3115_v63 = vshll.u32 %v9357_v43, %v3109_v27  ;;  %v3118_v2 = vshll.u32 %v9349_v29, %v3109_v27  ;;  %v4450_v7 = vadd.s32 4294967169, %v3203_v13  ;;  %v2970_v1 = vmul.f32 %v2969_v46, %v2967_v45 }
 0x369   : > { %v3057_v11 = vsub.s32 0, %v8237_v28  ;;  %v3114_v56 = vor.u32 %v3113_v62, %v3112_v49  ;;  %v3121_v59 = vshll.u32 %v9341_v10, %v3109_v27  ;;  %v9499_v61 = vand.u32 2147483647, %v9483_v37 }
 0x36a   : > { %v3117_v8 = vor.u32 %v3116_v53, %v3115_v63  ;;  %v3120_v21 = vor.u32 %v3119_v51, %v3118_v2  ;;  %v3124_v26 = vshll.u32 %v9339_v54, %v3109_v27  ;;  %v3125_v9 = vshrl.u32 %v9342_v30, %v3110_v32 }
 0x36b   : > { %vm8249_vm5 = vcmp.le.f32.partialorder %v9499_v61, 0.7853982  ;;  %v2776_v39 = vxor.u32 2147483648, %v8241_v52  ;;  %v2974_v13 = vsel %vm2889_vm13, %v2973_v35, %v8110_v12  ;;  %v4443_v45 = vmin.u32 %v3057_v11, %v8237_v28 }
 0x36c   : > { %v3123_v38 = vor.u32 %v3122_v18, %v3121_v59  ;;  %4923 = vcosq.f32 %v8230_v36  ;;  %v3126_v62 = vor.u32 %v3125_v9, %v3124_v26  ;;  %v3143_v46 = vshll.u32 %v3103_v24, 8 }
 0x36d   : > { %v3209_v49 = vadd.s32 1, %v4450_v7  ;;  %v3059_v53 = vclz %v4443_v45  ;;  %v3111_v51 = vshrl.u32 %v9351_v44, %v3110_v32  ;;  %vm3127_vm4 = vcmp.lt.s32.totalorder %v3108_v41, 1 }
 0x36e   : > { %vm3130_vm6 = vcmp.lt.s32.totalorder %v3108_v41, 4  ;;  %vm2775_vm7 = vcmp.eq.s32.totalorder %v8211_v55, 0  ;;  %vm2778_vm8 = vcmp.eq.s32.totalorder %v8211_v55, 2  ;;  %v2971_v27 = vxor.u32 2147483648, %v2970_v1 }
 0x36f   : > { %vm3128_vm9 = vcmp.lt.s32.totalorder %v3108_v41, 2  ;;  %v3132_v12 = vsel %vm3130_vm6, %v3120_v21, 2102212464  ;;  %v3135_v35 = vsel %vm3127_vm4, %v3114_v56, %v3117_v8  ;;  %v4444_v63 = vadd.s32 4294967294, %v3059_v53 }
 0x370   : > { %vm3129_vm12 = vcmp.lt.s32.totalorder %v3108_v41, 3  ;;  %v3136_v18 = vsel %vm3130_vm6, %v3123_v38, 920167782  ;;  %v3139_v2 = vsel %vm3127_vm4, %v3117_v8, %v3120_v21  ;;  %v3131_v11 = vsel %vm3127_vm4, %v3111_v51, %v3114_v56 }
 0x371   : > { %v3137_v24 = vsel %vm3129_vm12, %v3120_v21, %v3136_v18  ;;  %v3140_v7 = vsel %vm3130_vm6, %v3126_v62, 1326507024  ;;  %vm3210_vm10 = vcmp.gt.s32.totalorder %v3209_v49, 0  ;;  %vm4445_vm14 = vcmp.lt.s32.totalorder %v4444_v63, 0 }
 0x372   : > { %v3133_v32 = vsel %vm3129_vm12, %v3117_v8, %v3132_v12  ;;  %v3138_v59 = vsel %vm3128_vm9, %v3135_v35, %v3137_v24  ;;  %v3141_v61 = vsel %vm3129_vm12, %v3123_v38, %v3140_v7  ;;  %v3062_v26 = vsel %vm4445_vm14, 0, %v4444_v63 }
 0x373   : > { %v3142_v9 = vsel %vm3128_vm9, %v3139_v2, %v3141_v61  ;;  %v8266_v45 = vmul.u32.u64.low %v3143_v46, %v3138_v59  ;;  %v8267_v48 = vmul.u32.u64.high %v3143_v46, %v3138_v59, %v8266_v45  ;;  %v2976_v53 = vsel %vm8249_vm5, 0, %v2974_v13 }
 0x374   : > { %v3067_v20 = vsub.s32 4294967266, %v3062_v26  ;;  %v9322_v56 = vand.u32 2147483647, %v9497_v58  ;;  %v3211_v21 = vsel %vm3210_vm10, %v3209_v49, 0  ;;  %v3063_v62 = vsub.s32 32, %v3062_v26 }
 0x375   : > { %v8273_v51 = vmul.u32.u64.low %v3143_v46, %v3142_v9  ;;  %v8274_v8 = vmul.u32.u64.high %v3143_v46, %v3142_v9, %v8273_v51  ;;  %v3213_v12 = vand.u32 31, %v3211_v21  ;;  %vm2774_vm15 = vcmp.lt.s32.totalorder %v8211_v55, 2 }
 0x376   : > { %4925 = vsinq.f32 %v8230_v36  ;;  %v8279_v38 = vand.u32 3, %v8225_v19  ;;  %v3068_v35 = vadd.s32 127, %v3067_v20  ;;  %v3134_v63 = vsel %vm3128_vm9, %v3131_v11, %v3133_v32  ;;  %v8282_v13 = vpop.eup %4923 }
 0x377   : > { %v2972_v49 = vsel %vm2889_vm13, %v2971_v27, %v2970_v1  ;;  %v3047_v18 = vadd.s32 %v8148_v40, %v8173_v22  ;;  %v3153_v2 = vadd.s32 1, %v8267_v48  ;;  %v8289_v24 = vsub.s32 32, %v3213_v12 }
 0x378   : > { %v2777_v19 = vsel %vm2775_vm7, %v8206_v16, %v2776_v39  ;;  %v9502_v20 = vxor.u32 2147483648, %v8206_v16  ;;  %v2980_v41 = vadd.s32 3, %v2976_v53  ;;  %v3069_v11 = vshll.u32 %v3068_v35, 23 }
 0x379   : > { %v3065_v1 = vshrl.u32 %v3047_v18, %v3063_v62  ;;  %v3150_v27 = vmul.u32 %v3143_v46, %v3134_v63  ;;  %vm3152_vm0 = vc.u32 %v8274_v8, %v8266_v45  ;;  %v3206_v40 = vand.u32 8388607, %v9322_v56 }
 0x37a   : > { %v2780_v36 = vsel %vm2778_vm8, %v9502_v20, %v8241_v52  ;;  %v2975_v22 = vsel %vm8249_vm5, %v9483_v37, %v2972_v49  ;;  %v3064_v39 = vshll.u32 %v8237_v28, %v3062_v26  ;;  %v3154_v16 = vsel %vm3152_vm0, %v3153_v2, %v8267_v48 }
 0x37b   : > { %v3216_v52 = vshll.u32 %v9351_v44, %v3213_v12  ;;  %v3070_v7 = vor.u32 4788187, %v3069_v11  ;;  %v3155_v32 = vadd.s32 %v3154_v16, %v3150_v27  ;;  %v3217_v46 = vshrl.u32 %v9357_v43, %v8289_v24 }
 0x37c   : > { %v3220_v59 = vshrl.u32 %v9349_v29, %v8289_v24  ;;  %v3219_v61 = vshll.u32 %v9357_v43, %v3213_v12  ;;  %v3223_v15 = vshrl.u32 %v9341_v10, %v8289_v24  ;;  %v3225_v9 = vshll.u32 %v9341_v10, %v3213_v12 }
 0x37d   : > { %v3226_v48 = vshrl.u32 %v9339_v54, %v8289_v24  ;;  %4927 = vcosq.f32 %v2975_v22  ;;  %v3066_v28 = vor.u32 %v3065_v1, %v3064_v39  ;;  %v3156_v26 = vadd.s32 536870912, %v3155_v32 }
 0x37e   : > { %v8319_v53 = vshrl.u32 %v3211_v21, 5  ;;  %v3218_v62 = vor.u32 %v3217_v46, %v3216_v52  ;;  %v3221_v51 = vor.u32 %v3220_v59, %v3219_v61  ;;  %v3222_v35 = vshll.u32 %v9349_v29, %v3213_v12 }
 0x37f   : > { %v3227_v63 = vor.u32 %v3226_v48, %v3225_v9  ;;  %v8324_v49 = vsel %vm2774_vm15, %v2777_v19, %v2780_v36  ;;  %v3071_v18 = vand.u32 2147483647, %v3070_v7  ;;  %v8326_v2 = vshrl.u32 %v3156_v26, 30 }
 0x380   : > { %v3229_v20 = vshrl.u32 %v9342_v30, %v8289_v24  ;;  %v4926_v11 = vpop.eup %4925  ;;  %vm2882_vm11 = vcmp.eq.s32.totalorder %v8279_v38, 2  ;;  %4929 = vsinq.f32 %v2975_v22  ;;  %v3207_v21 = vor.u32 8388608, %v3206_v40 }
 0x381   : > { %v3224_v1 = vor.u32 %v3223_v15, %v3222_v35  ;;  %v3228_v27 = vshll.u32 %v9339_v54, %v3213_v12  ;;  %vm2993_vm1 = vcmp.lt.s32.totalorder %v9487_v5, 0  ;;  %v3073_v39 = vcvt.s32.f32 %v3066_v28 }
 0x382   : > { %v3158_v55 = vshll.u32 %v8326_v2, 30  ;;  %vm3231_vm2 = vcmp.lt.s32.totalorder %v8319_v53, 1  ;;  %vm3234_vm3 = vcmp.lt.s32.totalorder %v8319_v53, 4  ;;  %vm2879_vm13 = vcmp.eq.s32.totalorder %v8279_v38, 0 }
 0x383   : > { %v8337_v19 = vand.u32 3, %v2980_v41  ;;  %v3230_v36 = vor.u32 %v3229_v20, %v3228_v27  ;;  %v3239_v40 = vsel %vm3231_vm2, %v3218_v62, %v3221_v51  ;;  %v3240_v12 = vsel %vm3234_vm3, %v3227_v63, 920167782 }
 0x384   : > { %v2883_v22 = vxor.u32 2147483648, %v8282_v13  ;;  %v3074_v16 = vmul.f32 %v3073_v39, %v3071_v18  ;;  %vm3097_vm5 = vcmp.lt.s32.totalorder %v9492_v23, 0  ;;  %v8345_v52 = vsub.s32 %v3155_v32, %v3158_v55 }
 0x385   : > { %vm3233_vm4 = vcmp.lt.s32.totalorder %v8319_v53, 3  ;;  %v2880_v7 = vxor.u32 2147483648, %v4926_v11  ;;  %v9503_v41 = vand.u32 2147483647, %v9487_v5  ;;  %vm3232_vm7 = vcmp.lt.s32.totalorder %v8319_v53, 2 }
 0x386   : > { %v3241_v59 = vsel %vm3233_vm4, %v3224_v1, %v3240_v12  ;;  %v3247_v61 = vshll.u32 %v3207_v21, 8  ;;  %v3077_v15 = vsub.s32 4, %v8222_v25  ;;  %v3161_v32 = vsub.s32 0, %v8345_v52 }
 0x387   : > { %vm8350_vm6 = vcmp.le.f32.partialorder %v9503_v41, 0.7853982  ;;  %v3236_v9 = vsel %vm3234_vm3, %v3224_v1, 2102212464  ;;  %v3242_v48 = vsel %vm3232_vm7, %v3239_v40, %v3241_v59  ;;  %vm2878_vm8 = vcmp.lt.s32.totalorder %v8279_v38, 2  ;;  %v4928_v27 = vpop.eup %4927  ;;  %v9509_v41 = vld [vmem:[#allocation29_spill] sm:$0xff] }
 0x388   : > { %v9506_v28 = vand.u32 2147483647, %v9492_v23  ;;  %v3243_v35 = vsel %vm3231_vm2, %v3221_v51, %v3224_v1  ;;  %v3244_v18 = vsel %vm3234_vm3, %v3230_v36, 1326507024  ;;  %v3075_v39 = vxor.u32 2147483648, %v3074_v16 }
 0x389   : > { %v8374_v20 = vmul.u32.u64.low %v3247_v61, %v3242_v48  ;;  %v8375_v21 = vmul.u32.u64.high %v3247_v61, %v3242_v48, %v8374_v20  ;;  %v4447_v55 = vmin.u32 %v3161_v32, %v8345_v52  ;;  %v3215_v40 = vshrl.u32 %v9351_v44, %v8289_v24 }
 0x38a   : > { %vm8366_vm9 = vcmp.le.f32.partialorder %v9506_v28, 0.7853982  ;;  %v3245_v12 = vsel %vm3233_vm4, %v3227_v63, %v3244_v18  ;;  %vm2986_vm12 = vcmp.eq.s32.totalorder %v8337_v19, 2  ;;  %v3181_v1 = vsub.s32 4, %v8326_v2  ;;  %v4930_v28 = vpop.eup %4929 }
 0x38b   : > { %v3246_v36 = vsel %vm3232_vm7, %v3243_v35, %v3245_v12  ;;  %v3306_v59 = vand.u32 2139095040, %v9509_v41  ;;  %v2884_v48 = vsel %vm2882_vm11, %v2883_v22, %v4926_v11  ;;  %vm2983_vm10 = vcmp.eq.s32.totalorder %v8337_v19, 0 }
 0x38c   : > { %v3163_v32 = vclz %v4447_v55  ;;  %v3235_v24 = vsel %vm3231_vm2, %v3215_v40, %v3218_v62  ;;  %v3237_v63 = vsel %vm3233_vm4, %v3221_v51, %v3236_v9  ;;  %vm2771_vm14 = vweird.f32 %v9472_v50 }
 0x38d   : > { %v3078_v35 = vsel %vm2993_vm1, %v3077_v15, %v8222_v25  ;;  %v8399_v18 = vmul.u32.u64.low %v3247_v61, %v3246_v36  ;;  %v8400_v12 = vmul.u32.u64.high %v3247_v61, %v3246_v36, %v8399_v18  ;;  %v3307_v11 = vshrl.u32 %v3306_v59, 23 }
 0x38e   : > { %vm2875_vm15 = vweird.f32 %v9477_v3  ;;  %v2881_v62 = vsel %vm2879_vm13, %v8282_v13, %v2880_v7  ;;  %v2987_v22 = vxor.u32 2147483648, %v4928_v27  ;;  %v3076_v51 = vsel %vm2993_vm1, %v3075_v39, %v3074_v16 }
 0x38f   : > { %v4448_v9 = vadd.s32 4294967294, %v3163_v32  ;;  %v3182_v55 = vsel %vm3097_vm5, %v3181_v1, %v8326_v2  ;;  %v3238_v25 = vsel %vm3232_vm7, %v3235_v24, %v3237_v63  ;;  %v3257_v15 = vadd.s32 1, %v8375_v21 }
 0x390   : > { %v4454_v40 = vadd.s32 4294967169, %v3307_v11  ;;  %v2984_v36 = vxor.u32 2147483648, %v4930_v28  ;;  %v3080_v59 = vsel %vm8350_vm6, 0, %v3078_v35  ;;  %v9321_v13 = vand.u32 2147483647, %v9509_v41  ;;  %v9510_v11 = vld [vmem:[#allocation7_spill] sm:$0xff] }
 0x391   : > { %vm4449_vm0 = vcmp.lt.s32.totalorder %v4448_v9, 0  ;;  %v3079_v16 = vsel %vm8350_vm6, %v9487_v5, %v3076_v51  ;;  %vm3256_vm11 = vc.u32 %v8400_v12, %v8374_v20  ;;  %v2885_v2 = vsel %vm2878_vm8, %v2881_v62, %v2884_v48 }
 0x392   : > { %v3166_v7 = vsel %vm4449_vm0, 0, %v4448_v9  ;;  %v3313_v53 = vadd.s32 1, %v4454_v40  ;;  %v3184_v1 = vsel %vm8366_vm9, 0, %v3182_v55  ;;  %v3254_v32 = vmul.u32 %v3247_v61, %v3238_v25 }
 0x393   : > { %v3171_v39 = vsub.s32 4294967266, %v3166_v7  ;;  %v2988_v24 = vsel %vm2986_vm12, %v2987_v22, %v4930_v28  ;;  %v3084_v63 = vadd.s32 3, %v3080_v59  ;;  %v3258_v46 = vsel %vm3256_vm11, %v3257_v15, %v8375_v21 }
 0x394   : > { %vm3314_vm1 = vcmp.gt.s32.totalorder %v3313_v53, 0  ;;  %4931 = vcosq.f32 %v3079_v16  ;;  %v3259_v18 = vadd.s32 %v3258_v46, %v3254_v32  ;;  %v3410_v51 = vand.u32 2139095040, %v9510_v11 }
 0x395   : > { %v3172_v35 = vadd.s32 127, %v3171_v39  ;;  %v2985_v38 = vsel %vm2983_vm10, %v4928_v27, %v2984_v36  ;;  %v3167_v48 = vsub.s32 32, %v3166_v7  ;;  %v3188_v62 = vadd.s32 3, %v3184_v1 }
 0x396   : > { %v3315_v9 = vsel %vm3314_vm1, %v3313_v53, 0  ;;  %v8435_v61 = vsel %vm2771_vm14, nan, %v8324_v49  ;;  %v3260_v22 = vadd.s32 536870912, %v3259_v18  ;;  %v3310_v21 = vand.u32 8388607, %v9321_v13 }
 0x397   : > { %9511 = vst [vmem:[#allocation21_spill] sm:$0xff] %v8435_v61  ;;  %v3173_v28 = vshll.u32 %v3172_v35, 23  ;;  %v8441_v55 = vsel %vm2875_vm15, nan, %v2885_v2  ;;  %vm2982_vm2 = vcmp.lt.s32.totalorder %v8337_v19, 2  ;;  %v3151_v27 = vadd.s32 %v8266_v45, %v8274_v8 }
 0x398   : > { %9512 = vst [vmem:[#allocation4_spill] sm:$0xff] %v8441_v55  ;;  %v3317_v25 = vand.u32 31, %v3315_v9  ;;  %v8446_v15 = vsel %vm2982_vm2, %v2985_v38, %v2988_v24  ;;  %v8448_v50 = vand.u32 3, %v3084_v63  ;;  %v8450_v49 = vshrl.u32 %v3260_v22, 30 }
 0x399   : > { %v3411_v40 = vshrl.u32 %v3410_v51, 23  ;;  %4933 = vsinq.f32 %v3079_v16  ;;  %v3169_v36 = vshrl.u32 %v3151_v27, %v3167_v48  ;;  %v8452_v59 = vand.u32 3, %v3188_v62 }
 0x39a   : > { %v3318_v3 = vsub.s32 32, %v3317_v25  ;;  %v3174_v53 = vor.u32 4788187, %v3173_v28  ;;  %v3262_v2 = vshll.u32 %v8450_v49, 30  ;;  %v3311_v19 = vor.u32 8388608, %v3310_v21 }
 0x39b   : > { %v3168_v45 = vshll.u32 %v8345_v52, %v3166_v7  ;;  %v3320_v16 = vshll.u32 %v9351_v44, %v3317_v25  ;;  %v4458_v46 = vadd.s32 4294967169, %v3411_v40  ;;  %v3316_v51 = vshrl.u32 %v3315_v9, 5 }
 0x39c   : > { %v3321_v8 = vshrl.u32 %v9357_v43, %v3318_v3  ;;  %v3324_v1 = vshrl.u32 %v9349_v29, %v3318_v3  ;;  %v3327_v32 = vshrl.u32 %v9341_v10, %v3318_v3  ;;  %v8460_v24 = vsub.s32 %v3259_v18, %v3262_v2 }
 0x39d   : > { %v3330_v63 = vshrl.u32 %v9339_v54, %v3318_v3  ;;  %v3170_v35 = vor.u32 %v3169_v36, %v3168_v45  ;;  %v3323_v38 = vshll.u32 %v9357_v43, %v3317_v25  ;;  %v3326_v48 = vshll.u32 %v9349_v29, %v3317_v25 }
 0x39e   : > { %v8466_v52 = vpop.eup %4931  ;;  %v3175_v7 = vand.u32 2147483647, %v3174_v53  ;;  %v3265_v62 = vsub.s32 0, %v8460_v24  ;;  %v3322_v28 = vor.u32 %v3321_v8, %v3320_v16  ;;  %v3329_v18 = vshll.u32 %v9341_v10, %v3317_v25 }
 0x39f   : > { %v3325_v22 = vor.u32 %v3324_v1, %v3323_v38  ;;  %v3328_v21 = vor.u32 %v3327_v32, %v3326_v48  ;;  %v3332_v27 = vshll.u32 %v9339_v54, %v3317_v25  ;;  %v3333_v40 = vshrl.u32 %v9342_v30, %v3318_v3 }
 0x3a0   : > { %v3255_v9 = vadd.s32 %v8374_v20, %v8400_v12  ;;  %v4451_v36 = vmin.u32 %v3265_v62, %v8460_v24  ;;  %v3331_v2 = vor.u32 %v3330_v63, %v3329_v18  ;;  %v8475_v45 = vshll.u32 %v3311_v19, 8 }
 0x3a1   : > { %v3091_v53 = vxor.u32 2147483648, %v8466_v52  ;;  %v3177_v13 = vcvt.s32.f32 %v3170_v35  ;;  %v3334_v8 = vor.u32 %v3333_v40, %v3332_v27  ;;  %v3417_v16 = vadd.s32 1, %v4458_v46 }
 0x3a2   : > { %v3267_v56 = vclz %v4451_v36  ;;  %v3319_v1 = vshrl.u32 %v9351_v44, %v3318_v3  ;;  %vm3335_vm3 = vcmp.lt.s32.totalorder %v3316_v51, 1  ;;  %vm3338_vm13 = vcmp.lt.s32.totalorder %v3316_v51, 4 }
 0x3a3   : > { %v4934_v25 = vpop.eup %4933  ;;  %vm3087_vm4 = vcmp.eq.s32.totalorder %v8448_v50, 0  ;;  %vm3090_vm6 = vcmp.eq.s32.totalorder %v8448_v50, 2  ;;  %v3178_v20 = vmul.f32 %v3177_v13, %v3175_v7  ;;  %vm3336_vm7 = vcmp.lt.s32.totalorder %v3316_v51, 2 }
 0x3a4   : > { %v3340_v12 = vsel %vm3338_vm13, %v3328_v21, 2102212464  ;;  %v3343_v19 = vsel %vm3335_vm3, %v3322_v28, %v3325_v22  ;;  %v4452_v32 = vadd.s32 4294967294, %v3267_v56  ;;  %vm3337_vm8 = vcmp.lt.s32.totalorder %v3316_v51, 3 }
 0x3a5   : > { %v3344_v63 = vsel %vm3338_vm13, %v3331_v2, 920167782  ;;  %v3347_v35 = vsel %vm3335_vm3, %v3325_v22, %v3328_v21  ;;  %v3339_v38 = vsel %vm3335_vm3, %v3319_v1, %v3322_v28  ;;  %v3348_v48 = vsel %vm3338_vm13, %v3334_v8, 1326507024 }
 0x3a6   : > { %v3345_v46 = vsel %vm3337_vm8, %v3328_v21, %v3344_v63  ;;  %vm3418_vm12 = vcmp.gt.s32.totalorder %v3417_v16, 0  ;;  %vm4453_vm10 = vcmp.lt.s32.totalorder %v4452_v32, 0  ;;  %v3341_v3 = vsel %vm3337_vm8, %v3325_v22, %v3340_v12 }
 0x3a7   : > { %v3346_v62 = vsel %vm3336_vm7, %v3343_v19, %v3345_v46  ;;  %v3349_v18 = vsel %vm3337_vm8, %v3331_v2, %v3348_v48  ;;  %v3270_v27 = vsel %vm4453_vm10, 0, %v4452_v32  ;;  %v3088_v56 = vxor.u32 2147483648, %v4934_v25  ;;  %v9514_v48 = vld [vmem:[#allocation10_spill] sm:$0xff] }
 0x3a8   : > { %v3350_v40 = vsel %vm3336_vm7, %v3347_v35, %v3349_v18  ;;  %v8484_v13 = vmul.u32.u64.low %v8475_v45, %v3346_v62  ;;  %v8485_v7 = vmul.u32.u64.high %v8475_v45, %v3346_v62, %v8484_v13  ;;  %v3271_v36 = vsub.s32 32, %v3270_v27 }
 0x3a9   : > { %v3275_v39 = vsub.s32 4294967266, %v3270_v27  ;;  %v3419_v28 = vsel %vm3418_vm12, %v3417_v16, 0  ;;  %v3179_v21 = vxor.u32 2147483648, %v3178_v20  ;;  %vm3201_vm14 = vcmp.lt.s32.totalorder %v9497_v58, 0 }
 0x3aa   : > { %v8489_v8 = vmul.u32.u64.low %v8475_v45, %v3350_v40  ;;  %v8490_v1 = vmul.u32.u64.high %v8475_v45, %v3350_v40, %v8489_v8  ;;  %v3421_v22 = vand.u32 31, %v3419_v28  ;;  %v3272_v2 = vshll.u32 %v8460_v24, %v3270_v27 }
 0x3ab   : > { %v3273_v12 = vshrl.u32 %v3255_v9, %v3271_v36  ;;  %v3276_v19 = vadd.s32 127, %v3275_v39  ;;  %v3342_v32 = vsel %vm3336_vm7, %v3339_v38, %v3341_v3  ;;  %v3361_v63 = vadd.s32 1, %v8485_v7 }
 0x3ac   : > { %v9513_v35 = vand.u32 2147483647, %v9510_v11  ;;  %v8498_v16 = vsub.s32 32, %v3421_v22  ;;  %v8504_v18 = vsel %vm3087_vm4, %v8466_v52, %v3088_v56  ;;  %v8508_v24 = vsel %vm3090_vm6, %v3091_v53, %v4934_v25 }
 0x3ad   : > { %v3274_v39 = vor.u32 %v3273_v12, %v3272_v2  ;;  %v3277_v51 = vshll.u32 %v3276_v19, 23  ;;  %v3180_v9 = vsel %vm3097_vm5, %v3179_v21, %v3178_v20  ;;  %v3285_v38 = vsub.s32 4, %v8450_v49 }
 0x3ae   : > { %v3414_v46 = vand.u32 8388607, %v9513_v35  ;;  %v3358_v3 = vmul.u32 %v8475_v45, %v3342_v32  ;;  %vm3360_vm15 = vc.u32 %v8490_v1, %v8484_v13  ;;  %v9515_v27 = vand.u32 2147483647, %v9497_v58 }
 0x3af   : > { %v3278_v53 = vor.u32 4788187, %v3277_v51  ;;  %v3362_v25 = vsel %vm3360_vm15, %v3361_v63, %v8485_v7  ;;  %v3424_v40 = vshll.u32 %v9351_v44, %v3421_v22  ;;  %v3427_v20 = vshll.u32 %v9357_v43, %v3421_v22 }
 0x3b0   : > { %vm8518_vm0 = vcmp.le.f32.partialorder %v9515_v27, 0.7853982  ;;  %v3363_v56 = vadd.s32 %v3362_v25, %v3358_v3  ;;  %v3425_v45 = vshrl.u32 %v9357_v43, %v8498_v16  ;;  %v3428_v36 = vshrl.u32 %v9349_v29, %v8498_v16 }
 0x3b1   : > { %v3433_v21 = vshll.u32 %v9341_v10, %v3421_v22  ;;  %v3279_v8 = vand.u32 2147483647, %v3278_v53  ;;  %v3281_v2 = vcvt.s32.f32 %v3274_v39  ;;  %v3431_v12 = vshrl.u32 %v9341_v10, %v8498_v16 }
 0x3b2   : > { %v3434_v7 = vshrl.u32 %v9339_v54, %v8498_v16  ;;  %v3183_v19 = vsel %vm8366_vm9, %v9492_v23, %v3180_v9  ;;  %v3364_v32 = vadd.s32 536870912, %v3363_v56  ;;  %v8537_v63 = vshrl.u32 %v3419_v28, 5 }
 0x3b3   : > { %v3430_v35 = vshll.u32 %v9349_v29, %v3421_v22  ;;  %vm3086_vm5 = vcmp.lt.s32.totalorder %v8448_v50, 2  ;;  %v3282_v51 = vmul.f32 %v3281_v2, %v3279_v8  ;;  %v3426_v3 = vor.u32 %v3425_v45, %v3424_v40 }
 0x3b4   : > { %v3429_v39 = vor.u32 %v3428_v36, %v3427_v20  ;;  %v3435_v27 = vor.u32 %v3434_v7, %v3433_v21  ;;  %v3286_v53 = vsel %vm3201_vm14, %v3285_v38, %v8450_v49  ;;  %vm3305_vm11 = vcmp.lt.s32.totalorder %v9509_v41, 0 }
 0x3b5   : > { %v3365_v25 = vshrl.u32 %v3364_v32, 30  ;;  %v3415_v26 = vor.u32 8388608, %v3414_v46  ;;  %v3437_v28 = vshrl.u32 %v9342_v30, %v8498_v16  ;;  %4935 = vcosq.f32 %v3183_v19 }
 0x3b6   : > { %v3283_v9 = vxor.u32 2147483648, %v3282_v51  ;;  %v3432_v62 = vor.u32 %v3431_v12, %v3430_v35  ;;  %v3436_v55 = vshll.u32 %v9339_v54, %v3421_v22  ;;  %vm2979_vm9 = vweird.f32 %v9483_v37 }
 0x3b7   : > { %4937 = vsinq.f32 %v3183_v19  ;;  %v3366_v40 = vshll.u32 %v3365_v25, 30  ;;  %vm3439_vm1 = vcmp.lt.s32.totalorder %v8537_v63, 1  ;;  %vm3442_vm2 = vcmp.lt.s32.totalorder %v8537_v63, 4 }
 0x3b8   : > { %vm3083_vm3 = vweird.f32 %v9487_v5  ;;  %v3284_v49 = vsel %vm3201_vm14, %v3283_v9, %v3282_v51  ;;  %v9518_v46 = vand.u32 2147483647, %v9509_v41  ;;  %v3438_v22 = vor.u32 %v3437_v28, %v3436_v55 }
 0x3b9   : > { %v3447_v20 = vsel %vm3439_vm1, %v3426_v3, %v3429_v39  ;;  %v3448_v45 = vsel %vm3442_vm2, %v3435_v27, 920167782  ;;  %v3287_v36 = vsel %vm8518_vm0, %v9497_v58, %v3284_v49  ;;  %v8567_v21 = vsub.s32 %v3363_v56, %v3366_v40 }
 0x3ba   : > { %vm8556_vm13 = vcmp.le.f32.partialorder %v9518_v46, 0.7853982  ;;  %vm3441_vm4 = vcmp.lt.s32.totalorder %v8537_v63, 3  ;;  %v3455_v8 = vshll.u32 %v3415_v26, 8  ;;  %v3288_v2 = vsel %vm8518_vm0, 0, %v3286_v53 }
 0x3bb   : > { %v3389_v12 = vsub.s32 4, %v3365_v25  ;;  %vm3440_vm6 = vcmp.lt.s32.totalorder %v8537_v63, 2  ;;  %v3449_v55 = vsel %vm3441_vm4, %v3432_v62, %v3448_v45  ;;  %4939 = vcosq.f32 %v3287_v36 }
 0x3bc   : > { %v3369_v7 = vsub.s32 0, %v8567_v21  ;;  %v3444_v19 = vsel %vm3442_vm2, %v3432_v62, 2102212464  ;;  %v3450_v56 = vsel %vm3440_vm6, %v3447_v20, %v3449_v55  ;;  %v3451_v32 = vsel %vm3439_vm1, %v3429_v39, %v3432_v62 }
 0x3bd   : > { %v3452_v52 = vsel %vm3442_vm2, %v3438_v22, 1326507024  ;;  %v8584_v35 = vmul.u32.u64.low %v3455_v8, %v3450_v56  ;;  %v8585_v51 = vmul.u32.u64.high %v3455_v8, %v3450_v56, %v8584_v35  ;;  %v3093_v53 = vsel %vm3086_vm5, %v8504_v18, %v8508_v24 }
 0x3be   : > { %v4455_v26 = vmin.u32 %v3369_v7, %v8567_v21  ;;  %v3423_v28 = vshrl.u32 %v9351_v44, %v8498_v16  ;;  %v3453_v62 = vsel %vm3441_vm4, %v3435_v27, %v3452_v52  ;;  %v3292_v9 = vadd.s32 3, %v3288_v2 }
 0x3bf   : > { %v3390_v40 = vsel %vm3305_vm11, %v3389_v12, %v3365_v25  ;;  %v3454_v49 = vsel %vm3440_vm6, %v3451_v32, %v3453_v62  ;;  %v3514_v46 = vand.u32 2139095040, %v9514_v48  ;;  %4941 = vsinq.f32 %v3287_v36  ;;  %v4936_v24 = vpop.eup %4935 }
 0x3c0   : > { %v3371_v50 = vclz %v4455_v26  ;;  %v3443_v18 = vsel %vm3439_vm1, %v3423_v28, %v3426_v3  ;;  %v3445_v16 = vsel %vm3441_vm4, %v3429_v39, %v3444_v19  ;;  %v8609_v27 = vsel %vm2979_vm9, nan, %v8446_v15 }
 0x3c1   : > { %9521 = vst [vmem:[#allocation13_spill] sm:$0xff] %v8609_v27  ;;  %v8611_v25 = vmul.u32.u64.low %v3455_v8, %v3454_v49  ;;  %v8612_v22 = vmul.u32.u64.high %v3455_v8, %v3454_v49, %v8611_v25  ;;  %v3515_v20 = vshrl.u32 %v3514_v46, 23  ;;  %v4938_v45 = vpop.eup %4937  ;;  %v8616_v36 = vsel %vm3083_vm3, nan, %v3093_v53  ;;  %v9524_v49 = vld [vmem:[#allocation6_spill] sm:$0xff] }
 0x3c2   : > { %9522 = vst [vmem:[#allocation16_spill] sm:$0xff] %v8616_v36  ;;  %vm3191_vm7 = vcmp.eq.s32.totalorder %v8452_v59, 0  ;;  %vm3194_vm8 = vcmp.eq.s32.totalorder %v8452_v59, 2  ;;  %v4456_v3 = vadd.s32 4294967294, %v3371_v50  ;;  %v3392_v39 = vsel %vm8556_vm13, 0, %v3390_v40 }
 0x3c3   : > { %v3446_v37 = vsel %vm3440_vm6, %v3443_v18, %v3445_v16  ;;  %v3465_v15 = vadd.s32 1, %v8585_v51  ;;  %v4462_v2 = vadd.s32 4294967169, %v3515_v20  ;;  %v9523_v12 = vand.u32 2147483647, %v9514_v48 }
 0x3c4   : > { %v3195_v5 = vxor.u32 2147483648, %v4936_v24  ;;  %v8627_v7 = vand.u32 3, %v3292_v9  ;;  %v3359_v19 = vadd.s32 %v8484_v13, %v8490_v1  ;;  %vm4457_vm12 = vcmp.lt.s32.totalorder %v4456_v3, 0 }
 0x3c5   : > { %v3518_v55 = vand.u32 8388607, %v9523_v12  ;;  %v3192_v56 = vxor.u32 2147483648, %v4938_v45  ;;  %v3374_v32 = vsel %vm4457_vm12, 0, %v4456_v3  ;;  %vm3464_vm10 = vc.u32 %v8612_v22, %v8584_v35  ;;  %v8633_v52 = vpop.eup %4939 }
 0x3c6   : > { %v3521_v63 = vadd.s32 1, %v4462_v2  ;;  %v3375_v53 = vsub.s32 32, %v3374_v32  ;;  %v3379_v26 = vsub.s32 4294967266, %v3374_v32  ;;  %v3396_v28 = vadd.s32 3, %v3392_v39 }
 0x3c7   : > { %v3462_v62 = vmul.u32 %v3455_v8, %v3446_v37  ;;  %v3466_v40 = vsel %vm3464_vm10, %v3465_v15, %v8585_v51  ;;  %v3519_v9 = vor.u32 8388608, %v3518_v55  ;;  %v3618_v46 = vand.u32 2139095040, %v9524_v49 }
 0x3c8   : > { %vm3522_vm14 = vcmp.gt.s32.totalorder %v3521_v63, 0  ;;  %v3376_v13 = vshll.u32 %v8567_v21, %v3374_v32  ;;  %v3377_v1 = vshrl.u32 %v3359_v19, %v3375_v53  ;;  %v3380_v50 = vadd.s32 127, %v3379_v26  ;;  %v9525_v19 = vld [vmem:[#allocation11_spill] sm:$0xff] }
 0x3c9   : > { %v3467_v18 = vadd.s32 %v3466_v40, %v3462_v62  ;;  %v8640_v16 = vsel %vm3194_vm8, %v3195_v5, %v4938_v45  ;;  %vm3298_vm15 = vcmp.eq.s32.totalorder %v8627_v7, 2  ;;  %v3523_v25 = vsel %vm3522_vm14, %v3521_v63, 0  ;;  %v8644_v20 = vpop.eup %4941 }
 0x3ca   : > { %v9323_v8 = vand.u32 2147483647, %v9524_v49  ;;  %v3299_v51 = vxor.u32 2147483648, %v8633_v52  ;;  %v3378_v3 = vor.u32 %v3377_v1, %v3376_v13  ;;  %v3381_v39 = vshll.u32 %v3380_v50, 23 }
 0x3cb   : > { %v3468_v37 = vadd.s32 536870912, %v3467_v18  ;;  %v8649_v21 = vsel %vm3191_vm7, %v4936_v24, %v3192_v56  ;;  %v8651_v15 = vand.u32 3, %v3396_v28  ;;  %v3525_v45 = vand.u32 31, %v3523_v25 }
 0x3cc   : > { %v3619_v2 = vshrl.u32 %v3618_v46, 23  ;;  %v3382_v12 = vor.u32 4788187, %v3381_v39  ;;  %v8655_v5 = vshll.u32 %v3519_v9, 8  ;;  %v8661_v53 = vadd.s32 %v8584_v35, %v8612_v22 }
 0x3cd   : > { %v8653_v55 = vshrl.u32 %v3468_v37, 30  ;;  %v3526_v26 = vsub.s32 32, %v3525_v45  ;;  %v8665_v24 = vand.u32 8388607, %v9323_v8  ;;  %v8670_v56 = vsel %vm3298_vm15, %v3299_v51, %v8644_v20 }
 0x3ce   : > { %v3383_v28 = vand.u32 2147483647, %v3382_v12  ;;  %v3385_v62 = vcvt.s32.f32 %v3378_v3  ;;  %v4466_v22 = vadd.s32 4294967169, %v3619_v2  ;;  %v3528_v50 = vshll.u32 %v9351_v44, %v3525_v45 }
 0x3cf   : > { %v3470_v40 = vshll.u32 %v8653_v55, 30  ;;  %v3529_v9 = vshrl.u32 %v9357_v43, %v3526_v26  ;;  %v3532_v46 = vshrl.u32 %v9349_v29, %v3526_v26  ;;  %v3535_v35 = vshrl.u32 %v9341_v10, %v3526_v26 }
 0x3d0   : > { %v3386_v13 = vmul.f32 %v3385_v62, %v3383_v28  ;;  %v3538_v39 = vshrl.u32 %v9339_v54, %v3526_v26  ;;  %v3524_v51 = vshrl.u32 %v3523_v25, 5  ;;  %v3531_v37 = vshll.u32 %v9357_v43, %v3525_v45 }
 0x3d1   : > { %v8676_v1 = vsub.s32 %v3467_v18, %v3470_v40  ;;  %v3534_v3 = vshll.u32 %v9349_v29, %v3525_v45  ;;  %v3623_v12 = vor.u32 8388608, %v8665_v24  ;;  %v3530_v63 = vor.u32 %v3529_v9, %v3528_v50 }
 0x3d2   : > { %v3387_v8 = vxor.u32 2147483648, %v3386_v13  ;;  %v3537_v2 = vshll.u32 %v9341_v10, %v3525_v45  ;;  %vm3409_vm0 = vcmp.lt.s32.totalorder %v9510_v11, 0  ;;  %v3533_v18 = vor.u32 %v3532_v46, %v3531_v37 }
 0x3d3   : > { %v3473_v32 = vsub.s32 0, %v8676_v1  ;;  %v3536_v28 = vor.u32 %v3535_v35, %v3534_v3  ;;  %v3540_v62 = vshll.u32 %v9339_v54, %v3525_v45  ;;  %v3541_v25 = vshrl.u32 %v9342_v30, %v3526_v26 }
 0x3d4   : > { %v3388_v40 = vsel %vm3305_vm11, %v3387_v8, %v3386_v13  ;;  %v3539_v24 = vor.u32 %v3538_v39, %v3537_v2  ;;  %v3625_v36 = vadd.s32 1, %v4466_v22  ;;  %vm3295_vm5 = vcmp.eq.s32.totalorder %v8627_v7, 0 }
 0x3d5   : > { %v4459_v49 = vmin.u32 %v3473_v32, %v8676_v1  ;;  %v3391_v9 = vsel %vm8556_vm13, %v9509_v41, %v3388_v40  ;;  %v3493_v46 = vsub.s32 4, %v8653_v55  ;;  %v3527_v35 = vshrl.u32 %v9351_v44, %v3526_v26 }
 0x3d6   : > { %v3542_v45 = vor.u32 %v3541_v25, %v3540_v62  ;;  %4943 = vcosq.f32 %v3391_v9  ;;  %v9526_v50 = vand.u32 2147483647, %v9510_v11  ;;  %vm3543_vm11 = vcmp.lt.s32.totalorder %v3524_v51, 1 }
 0x3d7   : > { %v3475_v32 = vclz %v4459_v49  ;;  %vm3546_vm1 = vcmp.lt.s32.totalorder %v3524_v51, 4  ;;  %4945 = vsinq.f32 %v3391_v9  ;;  %vm3544_vm2 = vcmp.lt.s32.totalorder %v3524_v51, 2 }
 0x3d8   : > { %vm8699_vm9 = vcmp.le.f32.partialorder %v9526_v50, 0.7853982  ;;  %v3548_v22 = vsel %vm3546_vm1, %v3536_v28, 2102212464  ;;  %v3551_v38 = vsel %vm3543_vm11, %v3530_v63, %v3533_v18  ;;  %vm3545_vm3 = vcmp.lt.s32.totalorder %v3524_v51, 3 }
 0x3d9   : > { %v4460_v13 = vadd.s32 4294967294, %v3475_v32  ;;  %v3552_v39 = vsel %vm3546_vm1, %v3539_v24, 920167782  ;;  %v3555_v37 = vsel %vm3543_vm11, %v3533_v18, %v3536_v28  ;;  %v3547_v26 = vsel %vm3543_vm11, %v3527_v35, %v3530_v63 }
 0x3da   : > { %v3553_v3 = vsel %vm3545_vm3, %v3536_v28, %v3552_v39  ;;  %v3556_v2 = vsel %vm3546_vm1, %v3542_v45, 1326507024  ;;  %vm3626_vm13 = vcmp.gt.s32.totalorder %v3625_v36, 0  ;;  %v3549_v62 = vsel %vm3545_vm3, %v3533_v18, %v3548_v22 }
 0x3db   : > { %vm4461_vm4 = vcmp.lt.s32.totalorder %v4460_v13, 0  ;;  %v3554_v25 = vsel %vm3544_vm2, %v3551_v38, %v3553_v3  ;;  %v3557_v40 = vsel %vm3545_vm3, %v3539_v24, %v3556_v2  ;;  %v3494_v63 = vsel %vm3409_vm0, %v3493_v46, %v8653_v55 }
 0x3dc   : > { %v3478_v49 = vsel %vm4461_vm4, 0, %v4460_v13  ;;  %v3558_v50 = vsel %vm3544_vm2, %v3555_v37, %v3557_v40  ;;  %v8706_v9 = vmul.u32.u64.low %v8655_v5, %v3554_v25  ;;  %v8707_v27 = vmul.u32.u64.high %v8655_v5, %v3554_v25, %v8706_v9 }
 0x3dd   : > { %v3479_v32 = vsub.s32 32, %v3478_v49  ;;  %v3483_v61 = vsub.s32 4294967266, %v3478_v49  ;;  %v3627_v28 = vsel %vm3626_vm13, %v3625_v36, 0  ;;  %v3550_v18 = vsel %vm3544_vm2, %v3547_v26, %v3549_v62 }
 0x3de   : > { %v8715_v35 = vmul.u32.u64.low %v8655_v5, %v3558_v50  ;;  %v8716_v24 = vmul.u32.u64.high %v8655_v5, %v3558_v50, %v8715_v35  ;;  %v3629_v45 = vand.u32 31, %v3627_v28  ;;  %v9529_v22 = vxor.u32 2147483648, %v8644_v20 }
 0x3df   : > { %vm3402_vm6 = vcmp.eq.s32.totalorder %v8651_v15, 2  ;;  %v3480_v13 = vshll.u32 %v8676_v1, %v3478_v49  ;;  %v3481_v36 = vshrl.u32 %v8661_v53, %v3479_v32  ;;  %v3484_v55 = vadd.s32 127, %v3483_v61 }
 0x3e0   : > { %v8723_v38 = vsel %vm3295_vm5, %v8633_v52, %v9529_v22  ;;  %vm3399_vm7 = vcmp.eq.s32.totalorder %v8651_v15, 0  ;;  %v3496_v51 = vsel %vm8699_vm9, 0, %v3494_v63  ;;  %v3569_v46 = vadd.s32 1, %v8707_v27  ;;  %v4944_v37 = vpop.eup %4943 }
 0x3e1   : > { %v3630_v20 = vsub.s32 32, %v3629_v45  ;;  %v8732_v39 = vshll.u32 %v3623_v12, 8  ;;  %v3482_v52 = vor.u32 %v3481_v36, %v3480_v13  ;;  %v3485_v26 = vshll.u32 %v3484_v55, 23  ;;  %v4946_v1 = vpop.eup %4945 }
 0x3e2   : > { %v3566_v3 = vmul.u32 %v8655_v5, %v3550_v18  ;;  %v8735_v2 = vshrl.u32 %v3627_v28, 5  ;;  %vm3568_vm8 = vc.u32 %v8716_v24, %v8706_v9  ;;  %v3632_v61 = vshll.u32 %v9351_v44, %v3629_v45 }
 0x3e3   : > { %v3635_v53 = vshll.u32 %v9357_v43, %v3629_v45  ;;  %v3638_v62 = vshll.u32 %v9349_v29, %v3629_v45  ;;  %v3403_v25 = vxor.u32 2147483648, %v4944_v37  ;;  %v3486_v12 = vor.u32 4788187, %v3485_v26 }
 0x3e4   : > { %vm3513_vm12 = vcmp.lt.s32.totalorder %v9514_v48, 0  ;;  %v3570_v40 = vsel %vm3568_vm8, %v3569_v46, %v8707_v27  ;;  %v3641_v5 = vshll.u32 %v9341_v10, %v3629_v45  ;;  %v3400_v49 = vxor.u32 2147483648, %v4946_v1 }
 0x3e5   : > { %v3571_v50 = vadd.s32 %v3570_v40, %v3566_v3  ;;  %v3633_v32 = vshrl.u32 %v9357_v43, %v3630_v20  ;;  %v3636_v63 = vshrl.u32 %v9349_v29, %v3630_v20  ;;  %v3487_v28 = vand.u32 2147483647, %v3486_v12 }
 0x3e6   : > { %v3489_v18 = vcvt.s32.f32 %v3482_v52  ;;  %v9530_v35 = vand.u32 2147483647, %v9514_v48  ;;  %v3639_v13 = vshrl.u32 %v9341_v10, %v3630_v20  ;;  %v3642_v27 = vshrl.u32 %v9339_v54, %v3630_v20 }
 0x3e7   : > { %v3500_v36 = vadd.s32 3, %v3496_v51  ;;  %v3572_v55 = vadd.s32 536870912, %v3571_v50  ;;  %v3631_v46 = vshrl.u32 %v9351_v44, %v3630_v20  ;;  %v3634_v26 = vor.u32 %v3633_v32, %v3632_v61 }
 0x3e8   : > { %vm8749_vm10 = vcmp.le.f32.partialorder %v9530_v35, 0.7853982  ;;  %vm3190_vm14 = vcmp.lt.s32.totalorder %v8452_v59, 2  ;;  %v3490_v3 = vmul.f32 %v3489_v18, %v3487_v28  ;;  %v3637_v12 = vor.u32 %v3636_v63, %v3635_v53 }
 0x3e9   : > { %v3640_v52 = vor.u32 %v3639_v13, %v3638_v62  ;;  %v3643_v40 = vor.u32 %v3642_v27, %v3641_v5  ;;  %vm3294_vm15 = vcmp.lt.s32.totalorder %v8627_v7, 2  ;;  %v3404_v35 = vsel %vm3402_vm6, %v3403_v25, %v4946_v1 }
 0x3ea   : > { %v3573_v0 = vshrl.u32 %v3572_v55, 30  ;;  %v3644_v57 = vshll.u32 %v9339_v54, %v3629_v45  ;;  %v3645_v51 = vshrl.u32 %v9342_v30, %v3630_v20  ;;  %v3401_v14 = vsel %vm3399_vm7, %v4944_v37, %v3400_v49 }
 0x3eb   : > { %v3491_v61 = vxor.u32 2147483648, %v3490_v3  ;;  %vm3647_vm5 = vcmp.lt.s32.totalorder %v8735_v2, 1  ;;  %vm3648_vm11 = vcmp.lt.s32.totalorder %v8735_v2, 2  ;;  %vm3650_vm1 = vcmp.lt.s32.totalorder %v8735_v2, 4 }
 0x3ec   : > { %v3574_v53 = vshll.u32 %v3573_v0, 30  ;;  %v3597_v62 = vsub.s32 4, %v3573_v0  ;;  %v3646_v5 = vor.u32 %v3645_v51, %v3644_v57  ;;  %vm3187_vm2 = vweird.f32 %v9492_v23 }
 0x3ed   : > { %vm3291_vm3 = vweird.f32 %v9497_v58  ;;  %v3492_v45 = vsel %vm3409_vm0, %v3491_v61, %v3490_v3  ;;  %v3652_v20 = vsel %vm3650_vm1, %v3640_v52, 2102212464  ;;  %v3655_v37 = vsel %vm3647_vm5, %v3634_v26, %v3637_v12 }
 0x3ee   : > { %v3656_v1 = vsel %vm3650_vm1, %v3643_v40, 920167782  ;;  %v3495_v57 = vsel %vm8699_vm9, %v9510_v11, %v3492_v45  ;;  %v8780_v25 = vsub.s32 %v3571_v50, %v3574_v53  ;;  %v3598_v49 = vsel %vm3513_vm12, %v3597_v62, %v3573_v0 }
 0x3ef   : > { %vm3649_vm0 = vcmp.lt.s32.totalorder %v8735_v2, 3  ;;  %vm3395_vm13 = vweird.f32 %v9509_v41  ;;  %4947 = vcosq.f32 %v3495_v57  ;;  %v3651_v32 = vsel %vm3647_vm5, %v3631_v46, %v3634_v26 }
 0x3f0   : > { %v3653_v63 = vsel %vm3649_vm0, %v3637_v12, %v3652_v20  ;;  %v3657_v8 = vsel %vm3649_vm0, %v3640_v52, %v3656_v1  ;;  %4949 = vsinq.f32 %v3495_v57  ;;  %v3577_v50 = vsub.s32 0, %v8780_v25 }
 0x3f1   : > { %v3600_v0 = vsel %vm8749_vm10, 0, %v3598_v49  ;;  %v3658_v28 = vsel %vm3648_vm11, %v3655_v37, %v3657_v8  ;;  %v3659_v18 = vsel %vm3647_vm5, %v3637_v12, %v3640_v52  ;;  %v3660_v13 = vsel %vm3650_vm1, %v3646_v5, 1326507024 }
 0x3f2   : > { %v8802_v27 = vmul.u32.u64.low %v8732_v39, %v3658_v28  ;;  %v8803_v55 = vmul.u32.u64.high %v8732_v39, %v3658_v28, %v8802_v27  ;;  %v3197_v46 = vsel %vm3190_vm14, %v8649_v21, %v8640_v16  ;;  %v3501_v26 = vand.u32 3, %v3500_v36 }
 0x3f3   : > { %v4463_v3 = vmin.u32 %v3577_v50, %v8780_v25  ;;  %v3661_v51 = vsel %vm3649_vm0, %v3643_v40, %v3660_v13  ;;  %v3301_v12 = vsel %vm3294_vm15, %v8723_v38, %v8670_v56  ;;  %vm3398_vm9 = vcmp.lt.s32.totalorder %v8651_v15, 2 }
 0x3f4   : > { %v3662_v52 = vsel %vm3648_vm11, %v3659_v18, %v3661_v51  ;;  %v3722_v61 = vand.u32 2139095040, %v9525_v19  ;;  %v3405_v59 = vsel %vm3398_vm9, %v3401_v14, %v3404_v35  ;;  %v3604_v21 = vadd.s32 3, %v3600_v0 }
 0x3f5   : > { %v3579_v16 = vclz %v4463_v3  ;;  %v3654_v36 = vsel %vm3648_vm11, %v3651_v32, %v3653_v63  ;;  %v8824_v40 = vmul.u32.u64.low %v8732_v39, %v3662_v52  ;;  %v8825_v53 = vmul.u32.u64.high %v8732_v39, %v3662_v52, %v8824_v40  ;;  %v9534_v32 = vld [vmem:[#allocation3_spill] sm:$0xff] }
 0x3f6   : > { %v3723_v62 = vshrl.u32 %v3722_v61, 23  ;;  %v9533_v7 = vand.u32 2147483647, %v9525_v19  ;;  %v8831_v15 = vsel %vm3187_vm2, nan, %v3197_v46  ;;  %v8835_v14 = vsel %vm3291_vm3, nan, %v3301_v12 }
 0x3f7   : > { %vm3503_vm4 = vcmp.eq.s32.totalorder %v3501_v26, 0  ;;  %v4464_v38 = vadd.s32 4294967294, %v3579_v16  ;;  %vm3502_vm6 = vcmp.lt.s32.totalorder %v3501_v26, 2  ;;  %vm3506_vm7 = vcmp.eq.s32.totalorder %v3501_v26, 2  ;;  %v9536_v16 = vld [vmem:[#allocation25_spill] sm:$0xff] }
 0x3f8   : > { %v3726_v56 = vand.u32 8388607, %v9533_v7  ;;  %v3567_v2 = vadd.s32 %v8706_v9, %v8716_v24  ;;  %v3673_v35 = vadd.s32 1, %v8803_v55  ;;  %v4470_v5 = vadd.s32 4294967169, %v3723_v62  ;;  %v9538_v7 = vld [vmem:[#allocation9_spill] sm:$0xff] }
 0x3f9   : > { %v8842_v45 = vsel %vm3395_vm13, nan, %v3405_v59  ;;  %vm4465_vm8 = vcmp.lt.s32.totalorder %v4464_v38, 0  ;;  %v8844_v23 = vand.u32 3, %v3604_v21  ;;  %v3670_v58 = vmul.u32 %v8732_v39, %v3654_v36  ;;  %v4948_v20 = vpop.eup %4947  ;;  %v9535_v39 = vld [vmem:[#allocation24_spill] sm:$0xff] }
 0x3fa   : > { %v3582_v37 = vsel %vm4465_vm8, 0, %v4464_v38  ;;  %vm3672_vm14 = vc.u32 %v8825_v53, %v8802_v27  ;;  %v3727_v1 = vor.u32 8388608, %v3726_v56  ;;  %v3729_v57 = vadd.s32 1, %v4470_v5  ;;  %v4950_v9 = vpop.eup %4949  ;;  %v9539_v5 = vld [vmem:[#allocation17_spill] sm:$0xff] }
 0x3fb   : > { %vm3499_vm15 = vweird.f32 %v9510_v11  ;;  %v3507_v24 = vxor.u32 2147483648, %v4948_v20  ;;  %v3583_v49 = vsub.s32 32, %v3582_v37  ;;  %v3587_v41 = vsub.s32 4294967266, %v3582_v37 }
 0x3fc   : > { %v4523_v63 = vpack.c.bf16 %v9534_v32, %v9534_v32  ;;  %v3504_v8 = vxor.u32 2147483648, %v4950_v9  ;;  %v3674_v50 = vsel %vm3672_vm14, %v3673_v35, %v8803_v55  ;;  %vm3730_vm5 = vcmp.gt.s32.totalorder %v3729_v57, 0 }
 0x3fd   : > { %v4524_v0 = vpack.c.bf16 %v9535_v39, %v9535_v39  ;;  %v3584_v28 = vshll.u32 %v8780_v25, %v3582_v37  ;;  %v3585_v18 = vshrl.u32 %v3567_v2, %v3583_v49  ;;  %v3588_v13 = vadd.s32 127, %v3587_v41  ;;  %v9537_v25 = vld [vmem:[#allocation8_spill] sm:$0xff] }
 0x3fe   : > { %v3675_v46 = vadd.s32 %v3674_v50, %v3670_v58  ;;  %v3505_v3 = vsel %vm3503_vm4, %v4948_v20, %v3504_v8  ;;  %v3508_v51 = vsel %vm3506_vm7, %v3507_v24, %v4950_v9  ;;  %v3731_v12 = vsel %vm3730_vm5, %v3729_v57, 0  ;;  %v9541_v9 = vld [vmem:[#allocation5_spill] sm:$0xff] }
 0x3ff   : > { %v4525_v52 = vpack.c.bf16 %v6603_v47, %v6603_v47  ;;  %v3586_v61 = vor.u32 %v3585_v18, %v3584_v28  ;;  %v3589_v59 = vshll.u32 %v3588_v13, 23  ;;  %v4526_v21 = vpack.c.bf16 %v9536_v16, %v9536_v16 }
 0x400   : > { %v3676_v55 = vadd.s32 536870912, %v3675_v46  ;;  %v3733_v36 = vand.u32 31, %v3731_v12  ;;  %v8862_v40 = vshll.u32 %v3727_v1, 8  ;;  %v4527_v62 = vpack.c.bf16 %v9537_v25, %v9537_v25  ;;  %v9540_v1 = vld [vmem:[#allocation32_spill] sm:$0xff] }
 0x401   : > { %v4528_v56 = vpack.c.bf16 %v9538_v7, %v9538_v7  ;;  %v3509_v38 = vsel %vm3502_vm6, %v3505_v3, %v3508_v51  ;;  %v3590_v2 = vor.u32 4788187, %v3589_v59  ;;  %v4529_v58 = vpack.c.bf16 %v9539_v5, %v9539_v5 }
 0x402   : > { %v8869_v35 = vshrl.u32 %v3676_v55, 30  ;;  %v8875_v20 = vadd.s32 %v8802_v27, %v8825_v53  ;;  %v3734_v37 = vsub.s32 32, %v3733_v36  ;;  %v4530_v57 = vpack.c.bf16 %v9540_v1, %v9540_v1 }
 0x403   : > { %v3591_v49 = vand.u32 2147483647, %v3590_v2  ;;  %v3593_v26 = vcvt.s32.f32 %v3586_v61  ;;  %v8886_v50 = vsel %vm3499_vm15, nan, %v3509_v38  ;;  %v3736_v3 = vshll.u32 %v9351_v44, %v3733_v36 }
 0x404   : > { %v3678_v41 = vshll.u32 %v8869_v35, 30  ;;  %v3737_v27 = vshrl.u32 %v9357_v43, %v3734_v37  ;;  %v3740_v53 = vshrl.u32 %v9349_v29, %v3734_v37  ;;  %v3743_v28 = vshrl.u32 %v9341_v10, %v3734_v37 }
 0x405   : > { %v3594_v18 = vmul.f32 %v3593_v26, %v3591_v49  ;;  %v3746_v51 = vshrl.u32 %v9339_v54, %v3734_v37  ;;  %v3732_v61 = vshrl.u32 %v3731_v12, 5  ;;  %v3739_v59 = vshll.u32 %v9357_v43, %v3733_v36 }
 0x406   : > { %v8891_v13 = vsub.s32 %v3675_v46, %v3678_v41  ;;  %v3742_v11 = vshll.u32 %v9349_v29, %v3733_v36  ;;  %v3738_v8 = vor.u32 %v3737_v27, %v3736_v3  ;;  %v3745_v49 = vshll.u32 %v9341_v10, %v3733_v36 }
 0x407   : > { %v3595_v38 = vxor.u32 2147483648, %v3594_v18  ;;  %v3741_v46 = vor.u32 %v3740_v53, %v3739_v59  ;;  %v3748_v41 = vshll.u32 %v9339_v54, %v3733_v36  ;;  %v3749_v24 = vshrl.u32 %v9342_v30, %v3734_v37 }
 0x408   : > { %v3681_v2 = vsub.s32 0, %v8891_v13  ;;  %v3744_v26 = vor.u32 %v3743_v28, %v3742_v11  ;;  %v3735_v12 = vshrl.u32 %v9351_v44, %v3734_v37  ;;  %v3747_v55 = vor.u32 %v3746_v51, %v3745_v49 }
 0x409   : > { %v3596_v43 = vsel %vm3513_vm12, %v3595_v38, %v3594_v18  ;;  %v3750_v3 = vor.u32 %v3749_v24, %v3748_v41  ;;  %vm3751_vm11 = vcmp.lt.s32.totalorder %v3732_v61, 1  ;;  %vm3752_vm1 = vcmp.lt.s32.totalorder %v3732_v61, 2 }
 0x40a   : > { %v4467_v29 = vmin.u32 %v3681_v2, %v8891_v13  ;;  %v3599_v27 = vsel %vm8749_vm10, %v9514_v48, %v3596_v43  ;;  %vm3754_vm2 = vcmp.lt.s32.totalorder %v3732_v61, 4  ;;  %v3755_v54 = vsel %vm3751_vm11, %v3735_v12, %v3738_v8 }
 0x40b   : > { %4951 = vcosq.f32 %v3599_v27  ;;  %vm3753_vm3 = vcmp.lt.s32.totalorder %v3732_v61, 3  ;;  %v3756_v30 = vsel %vm3754_vm2, %v3744_v26, 2102212464  ;;  %v3759_v36 = vsel %vm3751_vm11, %v3738_v8, %v3741_v46 }
 0x40c   : > { %v3683_v10 = vclz %v4467_v29  ;;  %4953 = vsinq.f32 %v3599_v27  ;;  %v3757_v28 = vsel %vm3753_vm3, %v3741_v46, %v3756_v30  ;;  %v3760_v18 = vsel %vm3754_vm2, %v3747_v55, 920167782 }
 0x40d   : > { %v3763_v44 = vsel %vm3751_vm11, %v3741_v46, %v3744_v26  ;;  %v3758_v37 = vsel %vm3752_vm1, %v3755_v54, %v3757_v28  ;;  %v3761_v51 = vsel %vm3753_vm3, %v3744_v26, %v3760_v18  ;;  %v3764_v22 = vsel %vm3754_vm2, %v3750_v3, 1326507024  ;;  %v9544_v28 = vld [vmem:[#allocation26_spill] sm:$0xff] }
 0x40e   : > { %v4468_v53 = vadd.s32 4294967294, %v3683_v10  ;;  %v4534_v24 = vpack.c.bf16 %v7537_v4, %v7537_v4  ;;  %vm3610_vm12 = vcmp.eq.s32.totalorder %v8844_v23, 2  ;;  %v3762_v59 = vsel %vm3752_vm1, %v3759_v36, %v3761_v51 }
 0x40f   : > { %v3765_v11 = vsel %vm3753_vm3, %v3747_v55, %v3764_v22  ;;  %v4535_v8 = vpack.c.bf16 %v7543_v31, %v7543_v31  ;;  %vm3607_vm0 = vcmp.eq.s32.totalorder %v8844_v23, 0  ;;  %vm3606_vm13 = vcmp.lt.s32.totalorder %v8844_v23, 2  ;;  %v9546_v22 = vld [vmem:[#allocation21_spill] sm:$0xff]  ;;  %v9553_v31 = vld [vmem:[#allocation6_spill] sm:$0xff] }
 0x410   : > { %vm4469_vm10 = vcmp.lt.s32.totalorder %v4468_v53, 0  ;;  %v3766_v2 = vsel %vm3752_vm1, %v3763_v44, %v3765_v11  ;;  %v8920_v49 = vmul.u32.u64.low %v8862_v40, %v3762_v59  ;;  %v8921_v46 = vmul.u32.u64.high %v8862_v40, %v3762_v59, %v8920_v49 }
 0x411   : > { %v3686_v38 = vsel %vm4469_vm10, 0, %v4468_v53  ;;  %v3774_v55 = vmul.u32 %v8862_v40, %v3758_v37  ;;  %vm3603_vm9 = vweird.f32 %v9514_v48  ;;  %v4536_v12 = vpack.c.bf16 %v7557_v60, %v7557_v60  ;;  %v9543_v53 = vld [vmem:[#allocation15_spill] sm:$0xff]  ;;  %v9545_v37 = vld [vmem:[#allocation30_spill] sm:$0xff] }
 0x412   : > { %v3687_v26 = vsub.s32 32, %v3686_v38  ;;  %v3688_v41 = vshll.u32 %v8891_v13, %v3686_v38  ;;  %v3691_v43 = vsub.s32 4294967266, %v3686_v38  ;;  %v4537_v27 = vpack.c.bf16 %v7747_v33, %v7747_v33  ;;  %v9542_v13 = vld [vmem:[#allocation20_spill] sm:$0xff] }
 0x413   : > { %v8930_v29 = vmul.u32.u64.low %v8862_v40, %v3766_v2  ;;  %v8931_v61 = vmul.u32.u64.high %v8862_v40, %v3766_v2, %v8930_v29  ;;  %v4538_v54 = vpack.c.bf16 %v9542_v13, %v9542_v13  ;;  %v4539_v30 = vpack.c.bf16 %v7881_v6, %v7881_v6  ;;  %v9548_v2 = vld [vmem:[#allocation13_spill] sm:$0xff] }
 0x414   : > { %v3689_v3 = vshrl.u32 %v8875_v20, %v3687_v26  ;;  %v3692_v10 = vadd.s32 127, %v3691_v43  ;;  %v3777_v36 = vadd.s32 1, %v8921_v46  ;;  %v4540_v40 = vpack.c.bf16 %v7997_v34, %v7997_v34  ;;  %v9547_v34 = vld [vmem:[#allocation4_spill] sm:$0xff] }
 0x415   : > { %v4541_v60 = vpack.c.bf16 %v9543_v53, %v9543_v53  ;;  %v4542_v33 = vpack.c.bf16 %v9544_v28, %v9544_v28  ;;  %v4952_v18 = vpop.eup %4951  ;;  %v4543_v51 = vpack.c.bf16 %v9545_v37, %v9545_v37  ;;  %v4544_v6 = vpack.c.bf16 %v9546_v22, %v9546_v22  ;;  %v9549_v53 = vld [vmem:[#allocation16_spill] sm:$0xff] }
 0x416   : > { %v3690_v20 = vor.u32 %v3689_v3, %v3688_v41  ;;  %v3693_v44 = vshll.u32 %v3692_v10, 23  ;;  %v4954_v59 = vpop.eup %4953  ;;  %v3611_v11 = vxor.u32 2147483648, %v4952_v18  ;;  %vm3776_vm4 = vc.u32 %v8931_v61, %v8920_v49 }
 0x417   : > { %v4545_v38 = vpack.c.bf16 %v9547_v34, %v9547_v34  ;;  %v4546_v26 = vpack.c.bf16 %v9548_v2, %v9548_v2  ;;  %v3608_v43 = vxor.u32 2147483648, %v4954_v59  ;;  %v3778_v3 = vsel %vm3776_vm4, %v3777_v36, %v8921_v46 }
 0x418   : > { %v3694_v41 = vor.u32 4788187, %v3693_v44  ;;  %v3697_v29 = vcvt.s32.f32 %v3690_v20  ;;  %v3612_v10 = vsel %vm3610_vm12, %v3611_v11, %v4954_v59  ;;  %v3779_v13 = vadd.s32 %v3778_v3, %v3774_v55 }
 0x419   : > { %v4547_v28 = vpack.c.bf16 %v9549_v53, %v9549_v53  ;;  %v4548_v37 = vpack.c.bf16 %v8831_v15, %v8831_v15  ;;  %v3609_v22 = vsel %vm3607_vm0, %v4952_v18, %v3608_v43  ;;  %v4549_v44 = vpack.c.bf16 %v8835_v14, %v8835_v14 }
 0x41a   : > { %v3695_v34 = vand.u32 2147483647, %v3694_v41  ;;  %v4550_v46 = vpack.c.bf16 %v8842_v45, %v8842_v45  ;;  %v3613_v36 = vsel %vm3606_vm13, %v3609_v22, %v3612_v10  ;;  %v3780_v55 = vadd.s32 536870912, %v3779_v13 }
 0x41b   : > { %v4551_v20 = vpack.c.bf16 %v8886_v50, %v8886_v50  ;;  %vm3951_vm6 = vcmask 519168   ;;  %v3614_v15 = vsel %vm3603_vm9, nan, %v3613_v36  ;;  %v3701_v18 = vsub.s32 4, %v8869_v35 }
 0x41c   : > { %v3698_v59 = vmul.f32 %v3697_v29, %v3695_v34  ;;  %3952 = vst.msk [vmem:[%s8979_s6] sm:$0xf] %vm3951_vm6, %v4523_v63  ;;  %3953 = vst.msk [vmem:[%s8979_s6 + $0x4] sm:$0xf] %vm3951_vm6, %v4524_v0  ;;  %v9550_v47 = vpack.c.bf16 %v9541_v9, %v9541_v9  ;;  %v9551_v48 = vpack.c.bf16 %v7231_v42, %v7231_v42  ;;  %v3781_v42 = vshrl.u32 %v3780_v55, 30 }
 0x41d   : > { %3954 = vst.msk [vmem:[%s8979_s6 + $0x8] sm:$0xf] %vm3951_vm6, %v4525_v52  ;;  %3955 = vst.msk [vmem:[%s8979_s6 + $0xc] sm:$0xf] %vm3951_vm6, %v4526_v21  ;;  %v9552_v14 = vpack.c.bf16 %v7240_v17, %v7240_v17  ;;  %v4552_v17 = vpack.c.bf16 %v3614_v15, %v3614_v15  ;;  %vm3617_vm7 = vcmp.lt.s32.totalorder %v9553_v31, 0  ;;  %vm3707_vm1 = vweird.f32 %v9553_v31 }
 0x41e   : > { %3956 = vst.msk [vmem:[%s8979_s6 + $0x10] sm:$0xf] %vm3951_vm6, %v4527_v62  ;;  %3957 = vst.msk [vmem:[%s8979_s6 + $0x14] sm:$0xf] %vm3951_vm6, %v4528_v56  ;;  %v3699_v4 = vxor.u32 2147483648, %v3698_v59  ;;  %v3782_v45 = vshll.u32 %v3781_v42, 30  ;;  %v3702_v63 = vsel %vm3617_vm7, %v3701_v18, %v8869_v35  ;;  %v3775_v35 = vadd.s32 %v8920_v49, %v8931_v61 }
 0x41f   : > { %3958 = vst.msk [vmem:[%s8979_s6 + $0x18] sm:$0xf] %vm3951_vm6, %v4529_v58  ;;  %3959 = vst.msk [vmem:[%s8979_s6 + $0x1c] sm:$0xf] %vm3951_vm6, %v4530_v57  ;;  %v9554_v23 = vand.u32 2147483647, %v9553_v31  ;;  %vm3811_vm13 = vweird.f32 %v9525_v19 }
 0x420   : > { %3960 = vst.msk [vmem:[%s8979_s6 + $0x20] sm:$0xf] %vm3951_vm6, %v9550_v47  ;;  %3961 = vst.msk [vmem:[%s8979_s6 + $0x24] sm:$0xf] %vm3951_vm6, %v9551_v48  ;;  %v3700_v32 = vsel %vm3617_vm7, %v3699_v4, %v3698_v59  ;;  %v3783_v0 = vsub.s32 %v3779_v13, %v3782_v45  ;;  %v3805_v2 = vsub.s32 4, %v3781_v42  ;;  %vm3721_vm2 = vcmp.lt.s32.totalorder %v9525_v19, 0 }
 0x421   : > { %3962 = vst.msk [vmem:[%s8979_s6 + $0x28] sm:$0xf] %vm3951_vm6, %v9552_v14  ;;  %3963 = vst.msk [vmem:[%s8979_s6 + $0x2c] sm:$0xf] %vm3951_vm6, %v4534_v24  ;;  %vm3616_vm8 = vcmp.le.f32.partialorder %v9554_v23, 0.7853982 }
 0x422   : > { %3964 = vst.msk [vmem:[%s8979_s6 + $0x30] sm:$0xf] %vm3951_vm6, %v4535_v8  ;;  %3965 = vst.msk [vmem:[%s8979_s6 + $0x34] sm:$0xf] %vm3951_vm6, %v4536_v12  ;;  %v3703_v39 = vsel %vm3616_vm8, %v9553_v31, %v3700_v32  ;;  %v3704_v52 = vsel %vm3616_vm8, 0, %v3702_v63  ;;  %v3785_v16 = vsub.s32 0, %v3783_v0  ;;  %v3806_v29 = vsel %vm3721_vm2, %v3805_v2, %v3781_v42 }
 0x423   : > { %3966 = vst.msk [vmem:[%s8979_s6 + $0x38] sm:$0xf] %vm3951_vm6, %v4537_v27  ;;  %3967 = vst.msk [vmem:[%s8979_s6 + $0x3c] sm:$0xf] %vm3951_vm6, %v4538_v54  ;;  %4955 = vcosq.f32 %v3703_v39  ;;  %v3708_v25 = vadd.s32 3, %v3704_v52 }
 0x424   : > { %3968 = vst.msk [vmem:[%s8979_s6 + $0x40] sm:$0xf] %vm3951_vm6, %v4539_v30  ;;  %3969 = vst.msk [vmem:[%s8979_s6 + $0x44] sm:$0xf] %vm3951_vm6, %v4540_v40  ;;  %4957 = vsinq.f32 %v3703_v39  ;;  %v4471_v21 = vmin.u32 %v3785_v16, %v3783_v0  ;;  %v9555_v43 = vand.u32 2147483647, %v9525_v19 }
 0x425   : > { %3970 = vst.msk [vmem:[%s8979_s6 + $0x48] sm:$0xf] %vm3951_vm6, %v4541_v60  ;;  %3971 = vst.msk [vmem:[%s8979_s6 + $0x4c] sm:$0xf] %vm3951_vm6, %v4542_v33  ;;  %v3709_v56 = vand.u32 3, %v3708_v25 }
 0x426   : > { %3972 = vst.msk [vmem:[%s8979_s6 + $0x50] sm:$0xf] %vm3951_vm6, %v4543_v51  ;;  %3973 = vst.msk [vmem:[%s8979_s6 + $0x54] sm:$0xf] %vm3951_vm6, %v4544_v6  ;;  %v3787_v62 = vclz %v4471_v21  ;;  %vm3720_vm3 = vcmp.le.f32.partialorder %v9555_v43, 0.7853982 }
 0x427   : > { %3974 = vst.msk [vmem:[%s8979_s6 + $0x58] sm:$0xf] %vm3951_vm6, %v4545_v38  ;;  %3975 = vst.msk [vmem:[%s8979_s6 + $0x5c] sm:$0xf] %vm3951_vm6, %v4546_v26  ;;  %vm3711_vm15 = vcmp.eq.s32.totalorder %v3709_v56, 0  ;;  %vm3714_vm5 = vcmp.eq.s32.totalorder %v3709_v56, 2 }
 0x428   : > { %3976 = vst.msk [vmem:[%s8979_s6 + $0x60] sm:$0xf] %vm3951_vm6, %v4547_v28  ;;  %3977 = vst.msk [vmem:[%s8979_s6 + $0x64] sm:$0xf] %vm3951_vm6, %v4548_v37  ;;  %v4472_v7 = vadd.s32 4294967294, %v3787_v62  ;;  %vm3710_vm11 = vcmp.lt.s32.totalorder %v3709_v56, 2 }
 0x429   : > { %3978 = vst.msk [vmem:[%s8979_s6 + $0x68] sm:$0xf] %vm3951_vm6, %v4549_v44  ;;  %3979 = vst.msk [vmem:[%s8979_s6 + $0x6c] sm:$0xf] %vm3951_vm6, %v4550_v46  ;;  %v3808_v10 = vsel %vm3720_vm3, 0, %v3806_v29 }
 0x42a   : > { %3980 = vst.msk [vmem:[%s8979_s6 + $0x70] sm:$0xf] %vm3951_vm6, %v4551_v20  ;;  %3981 = vst.msk [vmem:[%s8979_s6 + $0x74] sm:$0xf] %vm3951_vm6, %v4552_v17  ;;  %vm4473_vm14 = vcmp.lt.s32.totalorder %v4472_v7, 0  ;;  %v3812_v13 = vadd.s32 3, %v3808_v10 }
 0x42b   : > { %v3790_v58 = vsel %vm4473_vm14, 0, %v4472_v7 }
 0x42c   : > { %v3791_v9 = vsub.s32 32, %v3790_v58  ;;  %v3795_v50 = vsub.s32 4294967266, %v3790_v58  ;;  %v3792_v12 = vshll.u32 %v3783_v0, %v3790_v58  ;;  %v3813_v53 = vand.u32 3, %v3812_v13 }
 0x42d   : > { %v4956_v5 = vpop.eup %4955 }
 0x42e   : > { %v4958_v1 = vpop.eup %4957  ;;  %v3715_v57 = vxor.u32 2147483648, %v4956_v5  ;;  %v3793_v27 = vshrl.u32 %v3775_v35, %v3791_v9  ;;  %v3796_v54 = vadd.s32 127, %v3795_v50  ;;  %vm3818_vm12 = vcmp.eq.s32.totalorder %v3813_v53, 2 }
 0x42f   : > { %v3712_v24 = vxor.u32 2147483648, %v4958_v1  ;;  %vm3815_vm10 = vcmp.eq.s32.totalorder %v3813_v53, 0  ;;  %vm3814_vm0 = vcmp.lt.s32.totalorder %v3813_v53, 2 }
 0x430   : > { %v3716_v8 = vsel %vm3714_vm5, %v3715_v57, %v4958_v1  ;;  %v3794_v60 = vor.u32 %v3793_v27, %v3792_v12  ;;  %v3797_v33 = vshll.u32 %v3796_v54, 23 }
 0x431   : > { %v3713_v30 = vsel %vm3711_vm15, %v4956_v5, %v3712_v24 }
 0x432   : > { %v3717_v40 = vsel %vm3710_vm11, %v3713_v30, %v3716_v8  ;;  %v3798_v6 = vor.u32 4788187, %v3797_v33  ;;  %v3801_v11 = vcvt.s32.f32 %v3794_v60 }
 0x433   : > { %v3718_v51 = vsel %vm3707_vm1, nan, %v3717_v40 }
 0x434   : > { %v4553_v49 = vpack.c.bf16 %v3718_v51, %v3718_v51  ;;  %v3799_v61 = vand.u32 2147483647, %v3798_v6 }
 0x436   : > { %3982 = vst.msk [vmem:[%s8979_s6 + $0x78] sm:$0xf] %vm3951_vm6, %v4553_v49  ;;  %v3802_v38 = vmul.f32 %v3801_v11, %v3799_v61 }
 0x438   : > { %v3803_v26 = vxor.u32 2147483648, %v3802_v38 }
 0x43a   : > { %v3804_v41 = vsel %vm3721_vm2, %v3803_v26, %v3802_v38 }
 0x43b   : > { %v3807_v3 = vsel %vm3720_vm3, %v9525_v19, %v3804_v41 }
 0x43c   : > { %4959 = vcosq.f32 %v3807_v3 }
 0x43d   : > { %4961 = vsinq.f32 %v3807_v3 }
 0x446   : > { %v4960_v28 = vpop.eup %4959 }
 0x447   : > { %v4962_v37 = vpop.eup %4961  ;;  %v3819_v22 = vxor.u32 2147483648, %v4960_v28 }
 0x448   : > { %v3816_v34 = vxor.u32 2147483648, %v4962_v37 }
 0x449   : > { %v3820_v44 = vsel %vm3818_vm12, %v3819_v22, %v4962_v37  ;;  %3990 = sbr.rel (!%p5102_p4) target bundleno = 1174 (0x496), region = 36 }
 0x44a   : > { %v3817_v46 = vsel %vm3815_vm10, %v4960_v28, %v3816_v34 }
 0x44b   : > { %v3821_v36 = vsel %vm3814_vm0, %v3817_v46, %v3820_v44 }
 0x44c   : > { %v3822_v55 = vsel %vm3811_vm13, nan, %v3821_v36 }
 0x44d   : > { %v4554_v20 = vpack.c.bf16 %v3822_v55, %v3822_v55 }
 0x44f   : > { %3983 = vst.msk [vmem:[%s8979_s6 + $0x7c] sm:$0xf] %vm3951_vm6, %v4554_v20 }
 0x450   : > { %s9563_s7 = smov (!%p3993_p8, %s3992_s7), 32 }
 0x451   : > { %s4508_s12 = sshll.u32 %s9563_s7, 6 }
 0x452   : > { %p4511_p9 = scmp.eq.s32.totalorder %s4508_s12, 0 }
 0x453   : > { %s9110_s14 = sshrl.u32 (!%p4511_p9), %s9563_s7, 5 }
 0x454   : > { %4001 = sbr.rel (%p4511_p9) target bundleno = 1174 (0x496), region = 40  ;;  %p4512_p10 = scmp.le.s32.totalorder (!%p4511_p9), %s9110_s14, 0 }
 0x45b   : > { %4278 = sbr.rel (%p4512_p10) target bundleno = 1153 (0x481), region = 112  ;;  %s9556_s15 = smov (!%p4512_p10), %s9104_s11 }
 0x45c   : > { %s9557_s17 = smov (!%p4512_p10), %s8979_s6  ;;  %s9119_s18 = smov (!%p4512_p10), 0  }
 0x45d   : > { %s9121_s20 = smov (!%p4512_p10), 0  }
 0x462 LB: >> { %v4017_v19 = vld [vmem:[%s5025_s17] sm:$0xf]  ;;  %v4019_v15 = vld [vmem:[%s5025_s17 + $0x4] sm:$0xf]  ;;  %v4021_v59 = vld [vmem:[%s5025_s17 + $0x8] sm:$0xf]  ;;  %s5033_s20 = sphi %s9121_s20, %s4011_s20   ;;  %s5029_s18 = sphi %s9119_s18, %s9558_s18   ;;  %s5025_s17 = sphi %s9557_s17, %s4086_s17   ;;  %s5021_s15 = sphi %s9556_s15, %s4087_s15  }
 0x463   : >> { %4018 = vst [vmem:[%s5021_s15] sm:$0xf] %v4017_v19  ;;  %4020 = vst [vmem:[%s5021_s15 + $0x4] sm:$0xf] %v4019_v15  ;;  %v4023_v18 = vld [vmem:[%s5025_s17 + $0xc] sm:$0xf]  ;;  %s4081_s21 = sadd.s32 1, %s5029_s18 }
 0x464   : >> { %4022 = vst [vmem:[%s5021_s15 + $0x8] sm:$0xf] %v4021_v59  ;;  %v4025_v47 = vld [vmem:[%s5025_s17 + $0x10] sm:$0xf]  ;;  %v4027_v48 = vld [vmem:[%s5025_s17 + $0x14] sm:$0xf]  ;;  %p4082_p11 = scmp.ge.s32.totalorder %s4081_s21, %s9110_s14 }
 0x465   : >> { %4024 = vst [vmem:[%s5021_s15 + $0xc] sm:$0xf] %v4023_v18  ;;  %4026 = vst [vmem:[%s5021_s15 + $0x10] sm:$0xf] %v4025_v47  ;;  %v4029_v14 = vld [vmem:[%s5025_s17 + $0x18] sm:$0xf] }
 0x466   : >> { %4028 = vst [vmem:[%s5021_s15 + $0x14] sm:$0xf] %v4027_v48  ;;  %v4031_v42 = vld [vmem:[%s5025_s17 + $0x1c] sm:$0xf]  ;;  %v4033_v17 = vld [vmem:[%s5025_s17 + $0x20] sm:$0xf] }
 0x467   : >> { %4030 = vst [vmem:[%s5021_s15 + $0x18] sm:$0xf] %v4029_v14  ;;  %4032 = vst [vmem:[%s5021_s15 + $0x1c] sm:$0xf] %v4031_v42  ;;  %v4035_v4 = vld [vmem:[%s5025_s17 + $0x24] sm:$0xf] }
 0x468   : >> { %4034 = vst [vmem:[%s5021_s15 + $0x20] sm:$0xf] %v4033_v17  ;;  %v4037_v31 = vld [vmem:[%s5025_s17 + $0x28] sm:$0xf]  ;;  %v4039_v45 = vld [vmem:[%s5025_s17 + $0x2c] sm:$0xf] }
 0x469   : >> { %4036 = vst [vmem:[%s5021_s15 + $0x24] sm:$0xf] %v4035_v4  ;;  %4038 = vst [vmem:[%s5021_s15 + $0x28] sm:$0xf] %v4037_v31  ;;  %v4041_v23 = vld [vmem:[%s5025_s17 + $0x30] sm:$0xf] }
 0x46a   : >> { %4040 = vst [vmem:[%s5021_s15 + $0x2c] sm:$0xf] %v4039_v45  ;;  %v4043_v32 = vld [vmem:[%s5025_s17 + $0x34] sm:$0xf]  ;;  %v4045_v63 = vld [vmem:[%s5025_s17 + $0x38] sm:$0xf] }
 0x46b   : >> { %4042 = vst [vmem:[%s5021_s15 + $0x30] sm:$0xf] %v4041_v23  ;;  %4044 = vst [vmem:[%s5021_s15 + $0x34] sm:$0xf] %v4043_v32  ;;  %v4047_v39 = vld [vmem:[%s5025_s17 + $0x3c] sm:$0xf] }
 0x46c   : >> { %4046 = vst [vmem:[%s5021_s15 + $0x38] sm:$0xf] %v4045_v63  ;;  %v4049_v0 = vld [vmem:[%s5025_s17 + $0x40] sm:$0xf]  ;;  %v4051_v52 = vld [vmem:[%s5025_s17 + $0x44] sm:$0xf] }
 0x46d   : >> { %4048 = vst [vmem:[%s5021_s15 + $0x3c] sm:$0xf] %v4047_v39  ;;  %4050 = vst [vmem:[%s5021_s15 + $0x40] sm:$0xf] %v4049_v0  ;;  %v4053_v16 = vld [vmem:[%s5025_s17 + $0x48] sm:$0xf] }
 0x46e   : >> { %4052 = vst [vmem:[%s5021_s15 + $0x44] sm:$0xf] %v4051_v52  ;;  %v4055_v21 = vld [vmem:[%s5025_s17 + $0x4c] sm:$0xf]  ;;  %v4057_v25 = vld [vmem:[%s5025_s17 + $0x50] sm:$0xf] }
 0x46f   : >> { %4054 = vst [vmem:[%s5021_s15 + $0x48] sm:$0xf] %v4053_v16  ;;  %4056 = vst [vmem:[%s5021_s15 + $0x4c] sm:$0xf] %v4055_v21  ;;  %v4059_v62 = vld [vmem:[%s5025_s17 + $0x54] sm:$0xf] }
 0x470   : >> { %4058 = vst [vmem:[%s5021_s15 + $0x50] sm:$0xf] %v4057_v25  ;;  %v4061_v7 = vld [vmem:[%s5025_s17 + $0x58] sm:$0xf]  ;;  %v4063_v56 = vld [vmem:[%s5025_s17 + $0x5c] sm:$0xf] }
 0x471   : >> { %4060 = vst [vmem:[%s5021_s15 + $0x54] sm:$0xf] %v4059_v62  ;;  %4062 = vst [vmem:[%s5021_s15 + $0x58] sm:$0xf] %v4061_v7  ;;  %v4065_v5 = vld [vmem:[%s5025_s17 + $0x60] sm:$0xf] }
 0x472   : >> { %4064 = vst [vmem:[%s5021_s15 + $0x5c] sm:$0xf] %v4063_v56  ;;  %v4067_v58 = vld [vmem:[%s5025_s17 + $0x64] sm:$0xf]  ;;  %v4069_v1 = vld [vmem:[%s5025_s17 + $0x68] sm:$0xf] }
 0x473   : >> { %4066 = vst [vmem:[%s5021_s15 + $0x60] sm:$0xf] %v4065_v5  ;;  %4068 = vst [vmem:[%s5021_s15 + $0x64] sm:$0xf] %v4067_v58  ;;  %v4071_v57 = vld [vmem:[%s5025_s17 + $0x6c] sm:$0xf] }
 0x474   : >> { %4070 = vst [vmem:[%s5021_s15 + $0x68] sm:$0xf] %v4069_v1  ;;  %v4073_v35 = vld [vmem:[%s5025_s17 + $0x70] sm:$0xf]  ;;  %v4075_v9 = vld [vmem:[%s5025_s17 + $0x74] sm:$0xf] }
 0x475   : >> { %4072 = vst [vmem:[%s5021_s15 + $0x6c] sm:$0xf] %v4071_v57  ;;  %4074 = vst [vmem:[%s5021_s15 + $0x70] sm:$0xf] %v4073_v35  ;;  %v4077_v50 = vld [vmem:[%s5025_s17 + $0x78] sm:$0xf] }
 0x476   : >> { %4076 = vst [vmem:[%s5021_s15 + $0x74] sm:$0xf] %v4075_v9  ;;  %v4079_v24 = vld [vmem:[%s5025_s17 + $0x7c] sm:$0xf]  ;;  %4078 = vst [vmem:[%s5021_s15 + $0x78] sm:$0xf] %v4077_v50 }
 0x477   : >> { %4080 = vst [vmem:[%s5021_s15 + $0x7c] sm:$0xf] %v4079_v24  ;;  %s9565_s21 = smov (%p4082_p11, %s4081_s21), 0  ;;  %s4011_s20 = sadd.s32 1, %s5033_s20  }
 0x478   : >> { %s4513_s22 = sshll.u32 %s9565_s21, 7  ;;  %p4010_p12 = scmp.ge.s32.totalorder %s4011_s20, %s9110_s14 }
 0x479   : >> { %s4086_s17 = scalar_lea.vmem %s8979_s6, %s4513_s22 [#allocation2]   ;;  %s4087_s15 = scalar_lea.vmem %s9104_s11, %s4513_s22  }
 0x47a   : >> { %s9558_s18 = smov %s9565_s21  ;;  %4013 = sbr.rel (!%p4010_p12) target bundleno = 1122 (0x462), region = 118 }
 0x481 PF: > { %s9214_s23 = sand.u32 31, %s9563_s7   ;;  %s4556_s24 = sshll.u32 %s9110_s14, 7 }
 0x482   : > { %s4092_s25 = scalar_lea.vmem %s8979_s6, %s4556_s24 [#allocation2]   ;;  %s4094_s26 = scalar_lea.vmem %s9104_s11, %s4556_s24  }
 0x483   : > { %p4518_p13 = scmp.le.s32.totalorder %s9214_s23, 0 }
 0x484   : > { %s5035_s27 = smov (!%p4518_p13), %s4094_s26   ;;  %s5039_s28 = smov (!%p4518_p13), %s4092_s25  }
 0x485   : > { %4292 = sbr.rel (%p4518_p13) target bundleno = 1174 (0x496), region = 123  ;;  %s5043_s29 = smov (!%p4518_p13), 0  }
 0x486   : > { %s5047_s30 = smov (!%p4518_p13), 0  }
 0x48c LB: >> { %v4104_v8 = vld [vmem:[%s5041_s28] sm:$0xf]  ;;  %s4106_s4 = sadd.s32 1, %s5045_s29  ;;  %s4098_s30 = sadd.s32 1, %s5049_s30   ;;  %s5049_s30 = sphi %s5047_s30, %s4098_s30   ;;  %s5045_s29 = sphi %s5043_s29, %s5044_s29   ;;  %s5041_s28 = sphi %s5039_s28, %s4111_s28   ;;  %s5037_s27 = sphi %s5035_s27, %s4112_s27  }
 0x48d   : >> { %4105 = vst [vmem:[%s5037_s27] sm:$0xf] %v4104_v8  ;;  %p4107_p0 = scmp.ge.s32.totalorder %s4106_s4, %s9214_s23  ;;  %p4097_p1 = scmp.ge.s32.totalorder %s4098_s30, %s9214_s23 }
 0x48f   : >> { %s9567_s4 = smov (%p4107_p0, %s4106_s4), 0  ;;  %4100 = sbr.rel (!%p4097_p1) target bundleno = 1164 (0x48c), region = 129 }
 0x490   : >> { %s4519_s5 = sshll.u32 %s9567_s4, 2  ;;  %s5044_s29 = smov %s9567_s4  }
 0x491   : >> { %s4111_s28 = scalar_lea.vmem %s4092_s25, %s4519_s5 [#allocation2]   ;;  %s4112_s27 = scalar_lea.vmem %s4094_s26, %s4519_s5  }
 0x496 PF: > { %p10_p2 = scmp.ge.s32.totalorder %s5092_s16, 4   ;;  %s9559_s12 = smov %s5013_s13 }
 0x497   : > { %s9560_s13 = smov %s5100_s19  ;;  %s9561_s14 = smov %s5092_s16 }
 0x498   :  { %12 = sbr.rel (!%p10_p2) target bundleno = 2 (0x2), region = 140 }

</bundles_post_ra>
